<compile_context>
chip_gen: v7x
topology: tpu7x:2x2x1
jax: 0.10.0
libtpu: 0.0.40
codegen_flags: <defaults>
</compile_context>

<pallas_src>
import jax
import jax.numpy as jnp
from jax import lax
from jax.experimental import pallas as pl
from jax.experimental.pallas import tpu as pltpu

# ---------------------------- model hyper-params (small) ----------------------------
B, N, Q, A, O = 2, 4, 8, 6, 5          # batch, answer choices, q-len, a-len, objects
EMB = 32                               # word embedding dim fed to embed_span
OBJ_DIM = 32                           # detector.final_dim (== 2*SPAN_H, required by
                                       #  BilinearMatrixAttention's matmul semantics)
SPAN_H = 16                            # span LSTM hidden (bidirectional -> 32)
REASON_H = 16                          # reasoning LSTM hidden (bidirectional -> 32)
HID = 32                               # hidden_dim_maxpool
NUM_CLASSES = 10
# input_dropout = 0.0  -> all Dropout layers are identity.


# ================================ Pallas kernels ====================================

def _fused_attention_kernel(q_ref, a_ref, obj_ref, wspan_ref, wobj_ref,
                            qcode_ref, ocode_ref, aq_ref, ao_ref):
    """Flat block-masked span + object attention for the whole (B*N) batch.

    q_ref    : (G*Q, D)   question span reps, rows ordered (g, q)
    a_ref    : (G*A, D)   answer span reps, rows ordered (g, a)
    obj_ref  : (B*O, Do)  object reps, rows ordered (b, o)
    wspan_ref: (D, D)     span bilinear weight (nn.Linear weight, used as a @ W^T)
    wobj_ref : (Do, D)    obj bilinear weight  (used un-transposed: a @ W)
    qcode_ref: (G*A, G*Q) int32 code mask: 3 keep sim, 2 -> -10000, else -> -inf
    ocode_ref: (G*A, B*O) int32 code mask (same encoding)
    aq_ref   : (G*A, D)   attended question  (output)
    ao_ref   : (G*A, Do)  attended objects   (output)
    """
    a = a_ref[...]
    q = q_ref[...]
    obj = obj_ref[...]
    neg_inf = float("-inf")

    # --- span attention: sim^T = (a W^T) q^T, masked softmax over the lane axis -------
    proj_q = jnp.dot(a, wspan_ref[...].T, preferred_element_type=jnp.float32)  # (GA, D)
    sim_q = jnp.dot(proj_q, q.T, preferred_element_type=jnp.float32)           # (GA, GQ)
    code_q = qcode_ref[...]
    sim_q = jnp.where(code_q == 3, sim_q,
                      jnp.where(code_q == 2, -10000.0, neg_inf))
    mq = jnp.max(sim_q, axis=-1, keepdims=True)
    eq = jnp.exp(sim_q - mq)                      # cross-group lanes -> exp(-inf) = 0
    p_q = eq / jnp.sum(eq, axis=-1, keepdims=True)
    aq_ref[...] = jnp.dot(p_q, q, preferred_element_type=jnp.float32)          # (GA, D)

    # --- object attention: sim = (a W_obj) obj^T, masked softmax over the lane axis ---
    proj_o = jnp.dot(a, wobj_ref[...], preferred_element_type=jnp.float32)     # (GA, D)
    sim_o = jnp.dot(proj_o, obj.T, preferred_element_type=jnp.float32)         # (GA, BO)
    code_o = ocode_ref[...]
    sim_o = jnp.where(code_o == 3, sim_o,
                      jnp.where(code_o == 2, -10000.0, neg_inf))
    mo = jnp.max(sim_o, axis=-1, keepdims=True)
    eo = jnp.exp(sim_o - mo)
    p_o = eo / jnp.sum(eo, axis=-1, keepdims=True)
    ao_ref[...] = jnp.dot(p_o, obj, preferred_element_type=jnp.float32)        # (GA, Do)


def fused_attention(q_rep, a_rep, obj_reps, question_mask, box_masks, w_span, w_obj):
    """q_rep: (B,N,Q,D), a_rep: (B,N,A,D), obj_reps: (B,O,Do)
       -> attended_q (G*A, D), attended_o (G*A, Do) with rows ordered (g, a)."""
    Bd, Nd, Qd, D = q_rep.shape
    Ad = a_rep.shape[2]
    Od, Do = obj_reps.shape[1], obj_reps.shape[2]
    G = Bd * Nd

    q_flat = q_rep.reshape(G * Qd, D)
    a_flat = a_rep.reshape(G * Ad, D)
    obj_flat = obj_reps.reshape(Bd * Od, Do)          # no N-fold broadcast in HBM

    # Block-diagonal code masks; the iota/compare part is a compile-time constant and
    # only the merge with the runtime masks is a tiny fused elementwise op.
    row_g = jnp.arange(G * Ad, dtype=jnp.int32) // Ad
    col_gq = jnp.arange(G * Qd, dtype=jnp.int32) // Qd
    qvalid = (question_mask.reshape(G * Qd) > 0).astype(jnp.int32)
    qcode = jnp.where(row_g[:, None] == col_gq[None, :], 2 + qvalid[None, :], 0)

    row_b = jnp.arange(G * Ad, dtype=jnp.int32) // (Nd * Ad)
    col_bo = jnp.arange(Bd * Od, dtype=jnp.int32) // Od
    bvalid = (box_masks.reshape(Bd * Od) > 0).astype(jnp.int32)
    ocode = jnp.where(row_b[:, None] == col_bo[None, :], 2 + bvalid[None, :], 0)

    attended_q, attended_o = pl.pallas_call(
        _fused_attention_kernel,
        out_shape=(jax.ShapeDtypeStruct((G * Ad, D), jnp.float32),
                   jax.ShapeDtypeStruct((G * Ad, Do), jnp.float32)),
        grid=(1,),
        in_specs=[
            pl.BlockSpec(q_flat.shape, lambda i: (0, 0)),
            pl.BlockSpec(a_flat.shape, lambda i: (0, 0)),
            pl.BlockSpec(obj_flat.shape, lambda i: (0, 0)),
            pl.BlockSpec(w_span.shape, lambda i: (0, 0)),
            pl.BlockSpec(w_obj.shape, lambda i: (0, 0)),
            pl.BlockSpec(qcode.shape, lambda i: (0, 0)),
            pl.BlockSpec(ocode.shape, lambda i: (0, 0)),
        ],
        out_specs=(pl.BlockSpec((G * Ad, D), lambda i: (0, 0)),
                   pl.BlockSpec((G * Ad, Do), lambda i: (0, 0))),
        compiler_params=pltpu.CompilerParams(dimension_semantics=("arbitrary",)),
    )(q_flat, a_flat, obj_flat, w_span, w_obj, qcode, ocode)
    return attended_q, attended_o


def _reasoning_head_kernel(x_ref, mask_ref, wif_ref, whf_ref, bf_ref,
                           wib_ref, whb_ref, bb_ref,
                           w1_ref, b1_ref, w2_ref, b2_ref, out_ref):
    """Fused reasoning BiLSTM + masked max-pool + Linear-ReLU-Linear head.

    Replicates the reference quirk: nn.LSTM (batch_first=False) is applied to a
    (B*N, A, Din) tensor, so axis 0 (B*N) is time and axis 1 (A) is the batch.

    x_ref   : (G, A, Din)  reasoning input (time-major for this quirk already)
    mask_ref: (G, A, 1)    answer mask (float)
    wif/whf : (Din, 4H) / (H, 4H)  forward LSTM weights (pre-transposed)
    bf      : (1, 4H)              forward bias (b_ih + b_hh)
    wib/whb/bb : backward direction
    w1      : (2H, HID), b1: (1, HID), w2: (1, HID), b2: (1, 1)
    out_ref : (G, 1) logits
    """
    Tt = x_ref.shape[0]
    Ab = x_ref.shape[1]
    H = whf_ref.shape[0]

    wif = wif_ref[...]; whf = whf_ref[...]; bf = bf_ref[...]
    wib = wib_ref[...]; whb = whb_ref[...]; bb = bb_ref[...]
    xs = [x_ref[t] for t in range(Tt)]                       # each (A, Din)

    def cell(x_t, h, c, wih, whh, b):
        gates = (jnp.dot(x_t, wih, preferred_element_type=jnp.float32)
                 + jnp.dot(h, whh, preferred_element_type=jnp.float32) + b)
        i = jax.nn.sigmoid(gates[:, 0:H])
        f = jax.nn.sigmoid(gates[:, H:2 * H])
        g = jnp.tanh(gates[:, 2 * H:3 * H])
        o = jax.nn.sigmoid(gates[:, 3 * H:4 * H])
        c = f * c + i * g
        h = o * jnp.tanh(c)
        return h, c

    zeros = jnp.zeros((Ab, H), jnp.float32)

    h, c = zeros, zeros
    hs_f = []
    for t in range(Tt):                                      # forward direction
        h, c = cell(xs[t], h, c, wif, whf, bf)
        hs_f.append(h)

    h, c = zeros, zeros
    hs_b = [None] * Tt
    for t in range(Tt - 1, -1, -1):                          # backward direction
        h, c = cell(xs[t], h, c, wib, whb, bb)
        hs_b[t] = h

    # masked max-pool over the A axis per time step; reasoning_out never hits HBM.
    pooled_rows = []
    for t in range(Tt):
        hcat = jnp.concatenate([hs_f[t], hs_b[t]], axis=-1)  # (A, 2H)
        masked = jnp.where(mask_ref[t] > 0, hcat, -1e7)      # replace_masked_values
        pooled_rows.append(jnp.max(masked, axis=0, keepdims=True))
    pooled = jnp.concatenate(pooled_rows, axis=0)            # (G, 2H)

    h1 = jnp.maximum(
        jnp.dot(pooled, w1_ref[...], preferred_element_type=jnp.float32)
        + b1_ref[...], 0.0)                                  # (G, HID)
    out_ref[...] = jnp.sum(h1 * w2_ref[...], axis=-1, keepdims=True) + b2_ref[...]


def reasoning_head(reasoning_inp_flat, answer_mask, lstm_p, w1, b1, w2, b2):
    """reasoning_inp_flat: (G*A, Din), answer_mask: (B, N, A) -> logits (G,)."""
    Bd, Nd, Ad = answer_mask.shape
    G = Bd * Nd
    Din = reasoning_inp_flat.shape[-1]
    x = reasoning_inp_flat.reshape(G, Ad, Din)
    mask = answer_mask.reshape(G, Ad, 1).astype(jnp.float32)

    wif = lstm_p["w_ih_f"].T; whf = lstm_p["w_hh_f"].T
    bf = (lstm_p["b_ih_f"] + lstm_p["b_hh_f"]).reshape(1, -1)
    wib = lstm_p["w_ih_b"].T; whb = lstm_p["w_hh_b"].T
    bb = (lstm_p["b_ih_b"] + lstm_p["b_hh_b"]).reshape(1, -1)
    b1r = b1.reshape(1, -1)
    w2r = w2.reshape(1, -1)
    b2r = b2.reshape(1, 1)

    logits = pl.pallas_call(
        _reasoning_head_kernel,
        out_shape=jax.ShapeDtypeStruct((G, 1), jnp.float32),
        grid=(1,),
        in_specs=[
            pl.BlockSpec(x.shape, lambda i: (0, 0, 0)),
            pl.BlockSpec(mask.shape, lambda i: (0, 0, 0)),
            pl.BlockSpec(wif.shape, lambda i: (0, 0)),
            pl.BlockSpec(whf.shape, lambda i: (0, 0)),
            pl.BlockSpec(bf.shape, lambda i: (0, 0)),
            pl.BlockSpec(wib.shape, lambda i: (0, 0)),
            pl.BlockSpec(whb.shape, lambda i: (0, 0)),
            pl.BlockSpec(bb.shape, lambda i: (0, 0)),
            pl.BlockSpec(w1.shape, lambda i: (0, 0)),
            pl.BlockSpec(b1r.shape, lambda i: (0, 0)),
            pl.BlockSpec(w2r.shape, lambda i: (0, 0)),
            pl.BlockSpec(b2r.shape, lambda i: (0, 0)),
        ],
        out_specs=pl.BlockSpec((G, 1), lambda i: (0, 0)),
        compiler_params=pltpu.CompilerParams(dimension_semantics=("arbitrary",)),
    )(x, mask, wif, whf, bf, wib, whb, bb, w1, b1r, w2r, b2r)
    return logits.reshape(G)


# ================================= plain-JAX glue ====================================

def lstm_layer(x, w_ih, w_hh, b_ih, b_hh, reverse=False):
    # TODO(synk): span-encoder LSTM recurrence kept as a plain-JAX lax.scan (sequential
    # dependence); gate matmuls are tiny at these shapes.
    Tt, Bb, _ = x.shape
    H = w_hh.shape[1]

    def step(carry, x_t):
        h, c = carry
        gates = x_t @ w_ih.T + h @ w_hh.T + b_ih + b_hh
        i, f, g, o = jnp.split(gates, 4, axis=-1)
        i, f, o = jax.nn.sigmoid(i), jax.nn.sigmoid(f), jax.nn.sigmoid(o)
        g = jnp.tanh(g)
        c = f * c + i * g
        h = o * jnp.tanh(c)
        return (h, c), h

    h0 = jnp.zeros((Bb, H), jnp.float32)
    c0 = jnp.zeros((Bb, H), jnp.float32)
    xs = x[::-1] if reverse else x
    _, ys = lax.scan(step, (h0, c0), xs)
    return ys[::-1] if reverse else ys


def bilstm(x, p):
    # NOTE: nn.LSTM default batch_first=False is applied to a (B*N, K, D) tensor in the
    # reference module, so axis 0 is treated as time and axis 1 as batch — replicated.
    fwd = lstm_layer(x, p["w_ih_f"], p["w_hh_f"], p["b_ih_f"], p["b_hh_f"])
    bwd = lstm_layer(x, p["w_ih_b"], p["w_hh_b"], p["b_ih_b"], p["b_hh_b"], reverse=True)
    return jnp.concatenate([fwd, bwd], axis=-1)


def detector_stub(p, images, boxes, box_masks, classes, segms):
    # TODO(synk): SimpleDetector (pretrained ResNet backbone + ROI pooling) is not
    # provided in the reference source; replaced by a deterministic stand-in that
    # produces obj_reps of the same shape (B, O, final_dim) and a zero cnn reg loss.
    img_feat = jnp.mean(images, axis=(1, 2, 3))                  # (B,)
    box_feat = jnp.dot(boxes, p["w_box"])                        # (B, O, F)
    cls_feat = p["class_emb"][classes]                           # (B, O, F)
    obj_reps = jnp.tanh(box_feat + cls_feat + img_feat[:, None, None])
    obj_reps = obj_reps * box_masks[..., None].astype(jnp.float32)
    return {"obj_reps": obj_reps, "cnn_regularization_loss": jnp.float32(0.0)}


def collect_obj_reps(span_tags, object_reps):
    tags = jnp.clip(span_tags, 0, None)                          # (B, N, K)
    row = jnp.arange(tags.shape[0])[:, None, None]
    return object_reps[row, tags]                                # (B, N, K, OBJ_DIM)


def embed_span(params, span, span_tags, span_mask, object_reps):
    features = collect_obj_reps(span_tags, object_reps)
    span_rep = jnp.concatenate([span, features], axis=-1)
    Bd, Nd, K, D = span_rep.shape
    reps = bilstm(span_rep.reshape(Bd * Nd, K, D), params["span_lstm"])
    return reps.reshape(Bd, Nd, K, -1), features


# =================================== forward =========================================

def attention_qa_forward(params, images, objects, segms, boxes, box_masks,
                         question, question_tags, question_mask,
                         answers, answer_tags, answer_mask, label):
    # NOTE: the reference's host-side `int(box_masks.sum(1).max().item())` trimming and
    # tag-range ValueError checks are dropped (device->host sync + recompile per
    # max_len); padded objects are neutralized by box_masks everywhere they matter.
    obj = detector_stub(params["detector"], images, boxes, box_masks, objects, segms)
    obj_reps = obj["obj_reps"]                                   # (B, O, OBJ_DIM)

    q_rep, _ = embed_span(params, question, question_tags, question_mask, obj_reps)
    a_rep, _ = embed_span(params, answers, answer_tags, answer_mask, obj_reps)

    Bd, Nd, Ad, D = a_rep.shape
    G = Bd * Nd

    # --- fused (bilinear + block-masked softmax + attend), both directions, one call --
    attended_q, attended_o = fused_attention(
        q_rep, a_rep, obj_reps, question_mask, box_masks,
        params["w_span_att"], params["w_obj_att"])               # each (G*A, D)

    # reasoning_use_answer / _obj / _question are all True
    reasoning_inp = jnp.concatenate(
        [a_rep.reshape(G * Ad, D), attended_o, attended_q], axis=-1)   # (G*A, 3D)

    # --- fused reasoning BiLSTM + masked max-pool + MLP head (single Pallas call) -----
    logits = reasoning_head(reasoning_inp, answer_mask,
                            params["reasoning_lstm"],
                            params["mlp_w1"], params["mlp_b1"],
                            params["mlp_w2"], params["mlp_b2"]).reshape(Bd, Nd)

    probs = jax.nn.softmax(logits, axis=-1)
    out = {"label_logits": logits, "label_probs": probs,
           "cnn_regularization_loss": obj["cnn_regularization_loss"]}
    if label is not None:
        lbl = label.astype(jnp.int32).reshape(-1)
        logp = jax.nn.log_softmax(logits, axis=-1)
        loss = -jnp.mean(jnp.take_along_axis(logp, lbl[:, None], axis=-1))
        out["loss"] = loss[None]
        out["accuracy"] = jnp.sum(jnp.argmax(logits, axis=-1) == lbl)
    return out


# =============================== deterministic init ==================================

def init_params(key):
    ks = jax.random.split(key, 16)

    def u(k, shape, lim=0.1):
        return jax.random.uniform(k, shape, jnp.float32, -lim, lim)

    def xavier(k, shape):
        lim = (6.0 / (shape[0] + shape[1])) ** 0.5
        return jax.random.uniform(k, shape, jnp.float32, -lim, lim)

    def lstm_params(k, din, h):
        kk = jax.random.split(k, 4)
        zeros = jnp.zeros((4 * h,), jnp.float32)
        return {"w_ih_f": u(kk[0], (4 * h, din)), "w_hh_f": u(kk[1], (4 * h, h)),
                "b_ih_f": zeros, "b_hh_f": zeros,
                "w_ih_b": u(kk[2], (4 * h, din)), "w_hh_b": u(kk[3], (4 * h, h)),
                "b_ih_b": zeros, "b_hh_b": zeros}

    span_in = EMB + OBJ_DIM
    reason_in = 2 * SPAN_H + OBJ_DIM + 2 * SPAN_H
    return {
        "detector": {"w_box": xavier(ks[0], (4, OBJ_DIM)),
                     "class_emb": u(ks[1], (NUM_CLASSES, OBJ_DIM), 1.0)},
        "span_lstm": lstm_params(ks[2], span_in, SPAN_H),
        "reasoning_lstm": lstm_params(ks[3], reason_in, REASON_H),
        # nn.Linear(d1, d2).weight has shape (d2, d1); the reference forward uses it
        # un-transposed (m1 @ W) — replicated here.
        "w_span_att": xavier(ks[4], (2 * SPAN_H, 2 * SPAN_H)),
        "w_obj_att": xavier(ks[5], (OBJ_DIM, 2 * SPAN_H)),
        "mlp_w1": u(ks[6], (2 * REASON_H, HID)),
        "mlp_b1": jnp.zeros((1, HID), jnp.float32),
        "mlp_w2": u(ks[7], (HID, 1)),
        "mlp_b2": jnp.zeros((1, 1), jnp.float32),
    }


# ====================================== main =========================================

if __name__ == "__main__":
    key = jax.random.PRNGKey(0)
    params = init_params(key)
    k = jax.random.split(jax.random.PRNGKey(1), 12)

    images = jax.random.normal(k[0], (B, 3, 32, 32), jnp.float32)      # NCHW
    objects = jax.random.randint(k[1], (B, O), 0, NUM_CLASSES)
    segms = jax.random.normal(k[2], (B, O, 14, 14), jnp.float32)
    boxes = jax.random.uniform(k[3], (B, O, 4), jnp.float32)
    box_masks = jnp.ones((B, O), jnp.int32)

    question = jax.random.normal(k[4], (B, N, Q, EMB), jnp.float32)
    question_tags = jax.random.randint(k[5], (B, N, Q), -1, O)
    question_mask = (jax.random.uniform(k[6], (B, N, Q)) > 0.2).astype(jnp.int32)
    question_mask = question_mask.at[..., 0].set(1)

    answers = jax.random.normal(k[7], (B, N, A, EMB), jnp.float32)
    answer_tags = jax.random.randint(k[8], (B, N, A), -1, O)
    answer_mask = (jax.random.uniform(k[9], (B, N, A)) > 0.2).astype(jnp.int32)
    answer_mask = answer_mask.at[..., 0].set(1)

    label = jax.random.randint(k[10], (B,), 0, N)

    fwd = jax.jit(attention_qa_forward)
    out = fwd(params, images, objects, segms, boxes, box_masks,
              question, question_tags, question_mask,
              answers, answer_tags, answer_mask, label)
    jax.block_until_ready(out["label_logits"])
    jax.block_until_ready(out["label_probs"])
    jax.block_until_ready(out["loss"])

    assert out["label_logits"].shape == (B, N)
    assert out["label_probs"].shape == (B, N)
    assert out["loss"].shape == (1,)
    print("KERNEL_OK")
</pallas_src>

<mosaic_0001>
module attributes {stable_mosaic.version = 11 : i64} {
  func.func @_fused_attention_kernel(%arg0: i32, %arg1: memref<64x32xf32, #tpu.memory_space<vmem>>, %arg2: memref<48x32xf32, #tpu.memory_space<vmem>>, %arg3: memref<10x32xf32, #tpu.memory_space<vmem>>, %arg4: memref<32x32xf32, #tpu.memory_space<vmem>>, %arg5: memref<32x32xf32, #tpu.memory_space<vmem>>, %arg6: memref<48x64xi32, #tpu.memory_space<vmem>>, %arg7: memref<48x10xi32, #tpu.memory_space<vmem>>, %arg8: memref<48x32xf32, #tpu.memory_space<vmem>>, %arg9: memref<48x32xf32, #tpu.memory_space<vmem>>) attributes {dimension_semantics = [#tpu.dimension_semantics<arbitrary>], iteration_bounds = array<i64: 1>, scalar_prefetch = 0 : i64, scratch_operands = 0 : i64, tpu.core_type = #tpu.core_type<tc>, window_params = [{pipeline_mode = #tpu.pipeline_mode<synchronous>, transform_indices = @transform_0, window_bounds = array<i64: 64, 32>}, {pipeline_mode = #tpu.pipeline_mode<synchronous>, transform_indices = @transform_1, window_bounds = array<i64: 48, 32>}, {pipeline_mode = #tpu.pipeline_mode<synchronous>, transform_indices = @transform_2, window_bounds = array<i64: 10, 32>}, {pipeline_mode = #tpu.pipeline_mode<synchronous>, transform_indices = @transform_3, window_bounds = array<i64: 32, 32>}, {pipeline_mode = #tpu.pipeline_mode<synchronous>, transform_indices = @transform_4, window_bounds = array<i64: 32, 32>}, {pipeline_mode = #tpu.pipeline_mode<synchronous>, transform_indices = @transform_5, window_bounds = array<i64: 48, 64>}, {pipeline_mode = #tpu.pipeline_mode<synchronous>, transform_indices = @transform_6, window_bounds = array<i64: 48, 10>}, {pipeline_mode = #tpu.pipeline_mode<synchronous>, transform_indices = @transform_7, window_bounds = array<i64: 48, 32>}, {pipeline_mode = #tpu.pipeline_mode<synchronous>, transform_indices = @transform_8, window_bounds = array<i64: 48, 32>}]} {
    %c0 = arith.constant 0 : index
    %c0_0 = arith.constant 0 : index
    %0 = vector.load %arg2[%c0, %c0_0] : memref<48x32xf32, #tpu.memory_space<vmem>>, vector<48x32xf32>
    %c0_1 = arith.constant 0 : index
    %c0_2 = arith.constant 0 : index
    %1 = vector.load %arg1[%c0_1, %c0_2] : memref<64x32xf32, #tpu.memory_space<vmem>>, vector<64x32xf32>
    %c0_3 = arith.constant 0 : index
    %c0_4 = arith.constant 0 : index
    %2 = vector.load %arg3[%c0_3, %c0_4] : memref<10x32xf32, #tpu.memory_space<vmem>>, vector<10x32xf32>
    %c0_5 = arith.constant 0 : index
    %c0_6 = arith.constant 0 : index
    %3 = vector.load %arg4[%c0_5, %c0_6] : memref<32x32xf32, #tpu.memory_space<vmem>>, vector<32x32xf32>
    %4 = tpu.transpose %3, [1, 0] : vector<32x32xf32> -> vector<32x32xf32>
    %cst = arith.constant dense<0.000000e+00> : vector<48x32xf32>
    %5 = tpu.matmul %0, %4, %cst {dimension_numbers = #tpu.dot_dimension_numbers<[1], [0], [0], [1], [0, 0, 1, 1], [], []>} : vector<48x32xf32>, vector<32x32xf32>, vector<48x32xf32> -> vector<48x32xf32>
    %6 = tpu.transpose %1, [1, 0] : vector<64x32xf32> -> vector<32x64xf32>
    %cst_7 = arith.constant dense<0.000000e+00> : vector<48x64xf32>
    %7 = tpu.matmul %5, %6, %cst_7 {dimension_numbers = #tpu.dot_dimension_numbers<[1], [0], [0], [1], [0, 0, 1, 1], [], []>} : vector<48x32xf32>, vector<32x64xf32>, vector<48x64xf32> -> vector<48x64xf32>
    %c0_8 = arith.constant 0 : index
    %c0_9 = arith.constant 0 : index
    %8 = vector.load %arg6[%c0_8, %c0_9] : memref<48x64xi32, #tpu.memory_space<vmem>>, vector<48x64xi32>
    %c3_i32 = arith.constant 3 : i32
    %9 = vector.broadcast %c3_i32 : i32 to vector<48x64xi32>
    %10 = arith.cmpi eq, %8, %9 : vector<48x64xi32>
    %c2_i32 = arith.constant 2 : i32
    %11 = vector.broadcast %c2_i32 : i32 to vector<48x64xi32>
    %12 = arith.cmpi eq, %8, %11 : vector<48x64xi32>
    %cst_10 = arith.constant -1.000000e+04 : f32
    %cst_11 = arith.constant 0xFF800000 : f32
    %13 = vector.broadcast %cst_10 : f32 to vector<48x64xf32>
    %14 = vector.broadcast %cst_11 : f32 to vector<48x64xf32>
    %15 = arith.select %12, %13, %14 : vector<48x64xi1>, vector<48x64xf32>
    %16 = arith.select %10, %7, %15 : vector<48x64xi1>, vector<48x64xf32>
    %cst_12 = arith.constant dense<0xFF800000> : vector<48xf32>
    %17 = vector.multi_reduction <maximumf>, %16, %cst_12 [1] : vector<48x64xf32> to vector<48xf32>
    %18 = vector.shape_cast %17 : vector<48xf32> to vector<48x1xf32>
    %19 = vector.broadcast %18 : vector<48x1xf32> to vector<48x64xf32>
    %20 = arith.subf %16, %19 : vector<48x64xf32>
    %21 = math.exp %20 : vector<48x64xf32>
    %cst_13 = arith.constant dense<0.000000e+00> : vector<48xf32>
    %22 = vector.multi_reduction <add>, %21, %cst_13 [1] : vector<48x64xf32> to vector<48xf32>
    %23 = vector.shape_cast %22 : vector<48xf32> to vector<48x1xf32>
    %24 = vector.broadcast %23 : vector<48x1xf32> to vector<48x64xf32>
    %25 = arith.divf %21, %24 : vector<48x64xf32>
    %cst_14 = arith.constant dense<0.000000e+00> : vector<48x32xf32>
    %26 = tpu.matmul %25, %1, %cst_14 {dimension_numbers = #tpu.dot_dimension_numbers<[1], [0], [0], [1], [0, 0, 1, 1], [], []>} : vector<48x64xf32>, vector<64x32xf32>, vector<48x32xf32> -> vector<48x32xf32>
    %c0_15 = arith.constant 0 : index
    %c0_16 = arith.constant 0 : index
    %27 = vector.load %arg8[%c0_15, %c0_16] : memref<48x32xf32, #tpu.memory_space<vmem>>, vector<48x32xf32>
    tpu.vector_store %arg8[%c0_15, %c0_16], %26 {strides = array<i32>} : memref<48x32xf32, #tpu.memory_space<vmem>>, vector<48x32xf32>,
    %c0_17 = arith.constant 0 : index
    %c0_18 = arith.constant 0 : index
    %28 = vector.load %arg5[%c0_17, %c0_18] : memref<32x32xf32, #tpu.memory_space<vmem>>, vector<32x32xf32>
    %cst_19 = arith.constant dense<0.000000e+00> : vector<48x32xf32>
    %29 = tpu.matmul %0, %28, %cst_19 {dimension_numbers = #tpu.dot_dimension_numbers<[1], [0], [0], [1], [0, 0, 1, 1], [], []>} : vector<48x32xf32>, vector<32x32xf32>, vector<48x32xf32> -> vector<48x32xf32>
    %30 = tpu.transpose %2, [1, 0] : vector<10x32xf32> -> vector<32x10xf32>
    %cst_20 = arith.constant dense<0.000000e+00> : vector<48x10xf32>
    %31 = tpu.matmul %29, %30, %cst_20 {dimension_numbers = #tpu.dot_dimension_numbers<[1], [0], [0], [1], [0, 0, 1, 1], [], []>} : vector<48x32xf32>, vector<32x10xf32>, vector<48x10xf32> -> vector<48x10xf32>
    %c0_21 = arith.constant 0 : index
    %c0_22 = arith.constant 0 : index
    %32 = vector.load %arg7[%c0_21, %c0_22] : memref<48x10xi32, #tpu.memory_space<vmem>>, vector<48x10xi32>
    %c3_i32_23 = arith.constant 3 : i32
    %33 = vector.broadcast %c3_i32_23 : i32 to vector<48x10xi32>
    %34 = arith.cmpi eq, %32, %33 : vector<48x10xi32>
    %c2_i32_24 = arith.constant 2 : i32
    %35 = vector.broadcast %c2_i32_24 : i32 to vector<48x10xi32>
    %36 = arith.cmpi eq, %32, %35 : vector<48x10xi32>
    %cst_25 = arith.constant -1.000000e+04 : f32
    %cst_26 = arith.constant 0xFF800000 : f32
    %37 = vector.broadcast %cst_25 : f32 to vector<48x10xf32>
    %38 = vector.broadcast %cst_26 : f32 to vector<48x10xf32>
    %39 = arith.select %36, %37, %38 : vector<48x10xi1>, vector<48x10xf32>
    %40 = arith.select %34, %31, %39 : vector<48x10xi1>, vector<48x10xf32>
    %cst_27 = arith.constant dense<0xFF800000> : vector<48xf32>
    %41 = vector.multi_reduction <maximumf>, %40, %cst_27 [1] : vector<48x10xf32> to vector<48xf32>
    %42 = vector.shape_cast %41 : vector<48xf32> to vector<48x1xf32>
    %43 = vector.broadcast %42 : vector<48x1xf32> to vector<48x10xf32>
    %44 = arith.subf %40, %43 : vector<48x10xf32>
    %45 = math.exp %44 : vector<48x10xf32>
    %cst_28 = arith.constant dense<0.000000e+00> : vector<48xf32>
    %46 = vector.multi_reduction <add>, %45, %cst_28 [1] : vector<48x10xf32> to vector<48xf32>
    %47 = vector.shape_cast %46 : vector<48xf32> to vector<48x1xf32>
    %48 = vector.broadcast %47 : vector<48x1xf32> to vector<48x10xf32>
    %49 = arith.divf %45, %48 : vector<48x10xf32>
    %cst_29 = arith.constant dense<0.000000e+00> : vector<48x32xf32>
    %50 = tpu.matmul %49, %2, %cst_29 {dimension_numbers = #tpu.dot_dimension_numbers<[1], [0], [0], [1], [0, 0, 1, 1], [], []>} : vector<48x10xf32>, vector<10x32xf32>, vector<48x32xf32> -> vector<48x32xf32>
    %c0_30 = arith.constant 0 : index
    %c0_31 = arith.constant 0 : index
    %51 = vector.load %arg9[%c0_30, %c0_31] : memref<48x32xf32, #tpu.memory_space<vmem>>, vector<48x32xf32>
    tpu.vector_store %arg9[%c0_30, %c0_31], %50 {strides = array<i32>} : memref<48x32xf32, #tpu.memory_space<vmem>>, vector<48x32xf32>,
    return
  }
  func.func @transform_0(%arg0: i32) -> (i32, i32) {
    %c0_i32 = arith.constant 0 : i32
    %c0_i32_0 = arith.constant 0 : i32
    %c0_i32_1 = arith.constant 0 : i32
    return %c0_i32, %c0_i32_0 : i32, i32
  }
  func.func @transform_1(%arg0: i32) -> (i32, i32) {
    %c0_i32 = arith.constant 0 : i32
    %c0_i32_0 = arith.constant 0 : i32
    %c0_i32_1 = arith.constant 0 : i32
    return %c0_i32, %c0_i32_0 : i32, i32
  }
  func.func @transform_2(%arg0: i32) -> (i32, i32) {
    %c0_i32 = arith.constant 0 : i32
    %c0_i32_0 = arith.constant 0 : i32
    %c0_i32_1 = arith.constant 0 : i32
    return %c0_i32, %c0_i32_0 : i32, i32
  }
  func.func @transform_3(%arg0: i32) -> (i32, i32) {
    %c0_i32 = arith.constant 0 : i32
    %c0_i32_0 = arith.constant 0 : i32
    %c0_i32_1 = arith.constant 0 : i32
    return %c0_i32, %c0_i32_0 : i32, i32
  }
  func.func @transform_4(%arg0: i32) -> (i32, i32) {
    %c0_i32 = arith.constant 0 : i32
    %c0_i32_0 = arith.constant 0 : i32
    %c0_i32_1 = arith.constant 0 : i32
    return %c0_i32, %c0_i32_0 : i32, i32
  }
  func.func @transform_5(%arg0: i32) -> (i32, i32) {
    %c0_i32 = arith.constant 0 : i32
    %c0_i32_0 = arith.constant 0 : i32
    %c0_i32_1 = arith.constant 0 : i32
    return %c0_i32, %c0_i32_0 : i32, i32
  }
  func.func @transform_6(%arg0: i32) -> (i32, i32) {
    %c0_i32 = arith.constant 0 : i32
    %c0_i32_0 = arith.constant 0 : i32
    %c0_i32_1 = arith.constant 0 : i32
    return %c0_i32, %c0_i32_0 : i32, i32
  }
  func.func @transform_7(%arg0: i32) -> (i32, i32) {
    %c0_i32 = arith.constant 0 : i32
    %c0_i32_0 = arith.constant 0 : i32
    %c0_i32_1 = arith.constant 0 : i32
    return %c0_i32, %c0_i32_0 : i32, i32
  }
  func.func @transform_8(%arg0: i32) -> (i32, i32) {
    %c0_i32 = arith.constant 0 : i32
    %c0_i32_0 = arith.constant 0 : i32
    %c0_i32_1 = arith.constant 0 : i32
    return %c0_i32, %c0_i32_0 : i32, i32
  }
}

module attributes {stable_mosaic.version = 11 : i64} {
  func.func @_reasoning_head_kernel(%arg0: i32, %arg1: memref<8x6x96xf32, #tpu.memory_space<vmem>>, %arg2: memref<8x6x1xf32, #tpu.memory_space<vmem>>, %arg3: memref<96x64xf32, #tpu.memory_space<vmem>>, %arg4: memref<16x64xf32, #tpu.memory_space<vmem>>, %arg5: memref<1x64xf32, #tpu.memory_space<vmem>>, %arg6: memref<96x64xf32, #tpu.memory_space<vmem>>, %arg7: memref<16x64xf32, #tpu.memory_space<vmem>>, %arg8: memref<1x64xf32, #tpu.memory_space<vmem>>, %arg9: memref<32x32xf32, #tpu.memory_space<vmem>>, %arg10: memref<1x32xf32, #tpu.memory_space<vmem>>, %arg11: memref<1x32xf32, #tpu.memory_space<vmem>>, %arg12: memref<1x1xf32, #tpu.memory_space<vmem>>, %arg13: memref<8x1xf32, #tpu.memory_space<vmem>>) attributes {dimension_semantics = [#tpu.dimension_semantics<arbitrary>], iteration_bounds = array<i64: 1>, scalar_prefetch = 0 : i64, scratch_operands = 0 : i64, tpu.core_type = #tpu.core_type<tc>, window_params = [{pipeline_mode = #tpu.pipeline_mode<synchronous>, transform_indices = @transform_0, window_bounds = array<i64: 8, 6, 96>}, {pipeline_mode = #tpu.pipeline_mode<synchronous>, transform_indices = @transform_1, window_bounds = array<i64: 8, 6, 1>}, {pipeline_mode = #tpu.pipeline_mode<synchronous>, transform_indices = @transform_2, window_bounds = array<i64: 96, 64>}, {pipeline_mode = #tpu.pipeline_mode<synchronous>, transform_indices = @transform_3, window_bounds = array<i64: 16, 64>}, {pipeline_mode = #tpu.pipeline_mode<synchronous>, transform_indices = @transform_4, window_bounds = array<i64: 1, 64>}, {pipeline_mode = #tpu.pipeline_mode<synchronous>, transform_indices = @transform_5, window_bounds = array<i64: 96, 64>}, {pipeline_mode = #tpu.pipeline_mode<synchronous>, transform_indices = @transform_6, window_bounds = array<i64: 16, 64>}, {pipeline_mode = #tpu.pipeline_mode<synchronous>, transform_indices = @transform_7, window_bounds = array<i64: 1, 64>}, {pipeline_mode = #tpu.pipeline_mode<synchronous>, transform_indices = @transform_8, window_bounds = array<i64: 32, 32>}, {pipeline_mode = #tpu.pipeline_mode<synchronous>, transform_indices = @transform_9, window_bounds = array<i64: 1, 32>}, {pipeline_mode = #tpu.pipeline_mode<synchronous>, transform_indices = @transform_10, window_bounds = array<i64: 1, 32>}, {pipeline_mode = #tpu.pipeline_mode<synchronous>, transform_indices = @transform_11, window_bounds = array<i64: 1, 1>}, {pipeline_mode = #tpu.pipeline_mode<synchronous>, transform_indices = @transform_12, window_bounds = array<i64: 8, 1>}]} {
    %c0 = arith.constant 0 : index
    %c0_0 = arith.constant 0 : index
    %0 = vector.load %arg3[%c0, %c0_0] : memref<96x64xf32, #tpu.memory_space<vmem>>, vector<96x64xf32>
    %c0_1 = arith.constant 0 : index
    %c0_2 = arith.constant 0 : index
    %1 = vector.load %arg4[%c0_1, %c0_2] : memref<16x64xf32, #tpu.memory_space<vmem>>, vector<16x64xf32>
    %c0_3 = arith.constant 0 : index
    %c0_4 = arith.constant 0 : index
    %2 = vector.load %arg5[%c0_3, %c0_4] : memref<1x64xf32, #tpu.memory_space<vmem>>, vector<1x64xf32>
    %c0_5 = arith.constant 0 : index
    %c0_6 = arith.constant 0 : index
    %3 = vector.load %arg6[%c0_5, %c0_6] : memref<96x64xf32, #tpu.memory_space<vmem>>, vector<96x64xf32>
    %c0_7 = arith.constant 0 : index
    %c0_8 = arith.constant 0 : index
    %4 = vector.load %arg7[%c0_7, %c0_8] : memref<16x64xf32, #tpu.memory_space<vmem>>, vector<16x64xf32>
    %c0_9 = arith.constant 0 : index
    %c0_10 = arith.constant 0 : index
    %5 = vector.load %arg8[%c0_9, %c0_10] : memref<1x64xf32, #tpu.memory_space<vmem>>, vector<1x64xf32>
    %c0_11 = arith.constant 0 : index
    %c0_12 = arith.constant 0 : index
    %c0_13 = arith.constant 0 : index
    %6 = vector.load %arg1[%c0_11, %c0_12, %c0_13] : memref<8x6x96xf32, #tpu.memory_space<vmem>>, vector<1x6x96xf32>
    %7 = vector.shape_cast %6 : vector<1x6x96xf32> to vector<6x96xf32>
    %c1 = arith.constant 1 : index
    %c0_14 = arith.constant 0 : index
    %c0_15 = arith.constant 0 : index
    %8 = vector.load %arg1[%c1, %c0_14, %c0_15] : memref<8x6x96xf32, #tpu.memory_space<vmem>>, vector<1x6x96xf32>
    %9 = vector.shape_cast %8 : vector<1x6x96xf32> to vector<6x96xf32>
    %c2 = arith.constant 2 : index
    %c0_16 = arith.constant 0 : index
    %c0_17 = arith.constant 0 : index
    %10 = vector.load %arg1[%c2, %c0_16, %c0_17] : memref<8x6x96xf32, #tpu.memory_space<vmem>>, vector<1x6x96xf32>
    %11 = vector.shape_cast %10 : vector<1x6x96xf32> to vector<6x96xf32>
    %c3 = arith.constant 3 : index
    %c0_18 = arith.constant 0 : index
    %c0_19 = arith.constant 0 : index
    %12 = vector.load %arg1[%c3, %c0_18, %c0_19] : memref<8x6x96xf32, #tpu.memory_space<vmem>>, vector<1x6x96xf32>
    %13 = vector.shape_cast %12 : vector<1x6x96xf32> to vector<6x96xf32>
    %c4 = arith.constant 4 : index
    %c0_20 = arith.constant 0 : index
    %c0_21 = arith.constant 0 : index
    %14 = vector.load %arg1[%c4, %c0_20, %c0_21] : memref<8x6x96xf32, #tpu.memory_space<vmem>>, vector<1x6x96xf32>
    %15 = vector.shape_cast %14 : vector<1x6x96xf32> to vector<6x96xf32>
    %c5 = arith.constant 5 : index
    %c0_22 = arith.constant 0 : index
    %c0_23 = arith.constant 0 : index
    %16 = vector.load %arg1[%c5, %c0_22, %c0_23] : memref<8x6x96xf32, #tpu.memory_space<vmem>>, vector<1x6x96xf32>
    %17 = vector.shape_cast %16 : vector<1x6x96xf32> to vector<6x96xf32>
    %c6 = arith.constant 6 : index
    %c0_24 = arith.constant 0 : index
    %c0_25 = arith.constant 0 : index
    %18 = vector.load %arg1[%c6, %c0_24, %c0_25] : memref<8x6x96xf32, #tpu.memory_space<vmem>>, vector<1x6x96xf32>
    %19 = vector.shape_cast %18 : vector<1x6x96xf32> to vector<6x96xf32>
    %c7 = arith.constant 7 : index
    %c0_26 = arith.constant 0 : index
    %c0_27 = arith.constant 0 : index
    %20 = vector.load %arg1[%c7, %c0_26, %c0_27] : memref<8x6x96xf32, #tpu.memory_space<vmem>>, vector<1x6x96xf32>
    %21 = vector.shape_cast %20 : vector<1x6x96xf32> to vector<6x96xf32>
    %cst = arith.constant 0.000000e+00 : f32
    %22 = vector.broadcast %cst : f32 to vector<6x16xf32>
    %cst_28 = arith.constant dense<0.000000e+00> : vector<6x64xf32>
    %23 = tpu.matmul %7, %0, %cst_28 {dimension_numbers = #tpu.dot_dimension_numbers<[1], [0], [0], [1], [0, 0, 1, 1], [], []>} : vector<6x96xf32>, vector<96x64xf32>, vector<6x64xf32> -> vector<6x64xf32>
    %cst_29 = arith.constant dense<0.000000e+00> : vector<6x64xf32>
    %24 = tpu.matmul %22, %1, %cst_29 {dimension_numbers = #tpu.dot_dimension_numbers<[1], [0], [0], [1], [0, 0, 1, 1], [], []>} : vector<6x16xf32>, vector<16x64xf32>, vector<6x64xf32> -> vector<6x64xf32>
    %25 = arith.addf %23, %24 : vector<6x64xf32>
    %26 = vector.broadcast %2 : vector<1x64xf32> to vector<6x64xf32>
    %27 = arith.addf %25, %26 : vector<6x64xf32>
    %28 = vector.extract_strided_slice %27 {offsets = [0, 0], sizes = [6, 16], strides = [1, 1]} : vector<6x64xf32> to vector<6x16xf32>
    %29 = arith.negf %28 : vector<6x16xf32>
    %30 = math.exp %29 : vector<6x16xf32>
    %cst_30 = arith.constant 1.000000e+00 : f32
    %31 = vector.broadcast %cst_30 : f32 to vector<6x16xf32>
    %32 = arith.addf %31, %30 : vector<6x16xf32>
    %33 = arith.divf %31, %32 : vector<6x16xf32>
    %34 = vector.extract_strided_slice %27 {offsets = [0, 16], sizes = [6, 16], strides = [1, 1]} : vector<6x64xf32> to vector<6x16xf32>
    %35 = arith.negf %34 : vector<6x16xf32>
    %36 = math.exp %35 : vector<6x16xf32>
    %cst_31 = arith.constant 1.000000e+00 : f32
    %37 = vector.broadcast %cst_31 : f32 to vector<6x16xf32>
    %38 = arith.addf %37, %36 : vector<6x16xf32>
    %39 = arith.divf %37, %38 : vector<6x16xf32>
    %40 = vector.extract_strided_slice %27 {offsets = [0, 32], sizes = [6, 16], strides = [1, 1]} : vector<6x64xf32> to vector<6x16xf32>
    %41 = math.tanh %40 : vector<6x16xf32>
    %42 = vector.extract_strided_slice %27 {offsets = [0, 48], sizes = [6, 16], strides = [1, 1]} : vector<6x64xf32> to vector<6x16xf32>
    %43 = arith.negf %42 : vector<6x16xf32>
    %44 = math.exp %43 : vector<6x16xf32>
    %cst_32 = arith.constant 1.000000e+00 : f32
    %45 = vector.broadcast %cst_32 : f32 to vector<6x16xf32>
    %46 = arith.addf %45, %44 : vector<6x16xf32>
    %47 = arith.divf %45, %46 : vector<6x16xf32>
    %48 = arith.mulf %39, %22 : vector<6x16xf32>
    %49 = arith.mulf %33, %41 : vector<6x16xf32>
    %50 = arith.addf %48, %49 : vector<6x16xf32>
    %51 = math.tanh %50 : vector<6x16xf32>
    %52 = arith.mulf %47, %51 : vector<6x16xf32>
    %cst_33 = arith.constant dense<0.000000e+00> : vector<6x64xf32>
    %53 = tpu.matmul %9, %0, %cst_33 {dimension_numbers = #tpu.dot_dimension_numbers<[1], [0], [0], [1], [0, 0, 1, 1], [], []>} : vector<6x96xf32>, vector<96x64xf32>, vector<6x64xf32> -> vector<6x64xf32>
    %cst_34 = arith.constant dense<0.000000e+00> : vector<6x64xf32>
    %54 = tpu.matmul %52, %1, %cst_34 {dimension_numbers = #tpu.dot_dimension_numbers<[1], [0], [0], [1], [0, 0, 1, 1], [], []>} : vector<6x16xf32>, vector<16x64xf32>, vector<6x64xf32> -> vector<6x64xf32>
    %55 = arith.addf %53, %54 : vector<6x64xf32>
    %56 = vector.broadcast %2 : vector<1x64xf32> to vector<6x64xf32>
    %57 = arith.addf %55, %56 : vector<6x64xf32>
    %58 = vector.extract_strided_slice %57 {offsets = [0, 0], sizes = [6, 16], strides = [1, 1]} : vector<6x64xf32> to vector<6x16xf32>
    %59 = arith.negf %58 : vector<6x16xf32>
    %60 = math.exp %59 : vector<6x16xf32>
    %cst_35 = arith.constant 1.000000e+00 : f32
    %61 = vector.broadcast %cst_35 : f32 to vector<6x16xf32>
    %62 = arith.addf %61, %60 : vector<6x16xf32>
    %63 = arith.divf %61, %62 : vector<6x16xf32>
    %64 = vector.extract_strided_slice %57 {offsets = [0, 16], sizes = [6, 16], strides = [1, 1]} : vector<6x64xf32> to vector<6x16xf32>
    %65 = arith.negf %64 : vector<6x16xf32>
    %66 = math.exp %65 : vector<6x16xf32>
    %cst_36 = arith.constant 1.000000e+00 : f32
    %67 = vector.broadcast %cst_36 : f32 to vector<6x16xf32>
    %68 = arith.addf %67, %66 : vector<6x16xf32>
    %69 = arith.divf %67, %68 : vector<6x16xf32>
    %70 = vector.extract_strided_slice %57 {offsets = [0, 32], sizes = [6, 16], strides = [1, 1]} : vector<6x64xf32> to vector<6x16xf32>
    %71 = math.tanh %70 : vector<6x16xf32>
    %72 = vector.extract_strided_slice %57 {offsets = [0, 48], sizes = [6, 16], strides = [1, 1]} : vector<6x64xf32> to vector<6x16xf32>
    %73 = arith.negf %72 : vector<6x16xf32>
    %74 = math.exp %73 : vector<6x16xf32>
    %cst_37 = arith.constant 1.000000e+00 : f32
    %75 = vector.broadcast %cst_37 : f32 to vector<6x16xf32>
    %76 = arith.addf %75, %74 : vector<6x16xf32>
    %77 = arith.divf %75, %76 : vector<6x16xf32>
    %78 = arith.mulf %69, %50 : vector<6x16xf32>
    %79 = arith.mulf %63, %71 : vector<6x16xf32>
    %80 = arith.addf %78, %79 : vector<6x16xf32>
    %81 = math.tanh %80 : vector<6x16xf32>
    %82 = arith.mulf %77, %81 : vector<6x16xf32>
    %cst_38 = arith.constant dense<0.000000e+00> : vector<6x64xf32>
    %83 = tpu.matmul %11, %0, %cst_38 {dimension_numbers = #tpu.dot_dimension_numbers<[1], [0], [0], [1], [0, 0, 1, 1], [], []>} : vector<6x96xf32>, vector<96x64xf32>, vector<6x64xf32> -> vector<6x64xf32>
    %cst_39 = arith.constant dense<0.000000e+00> : vector<6x64xf32>
    %84 = tpu.matmul %82, %1, %cst_39 {dimension_numbers = #tpu.dot_dimension_numbers<[1], [0], [0], [1], [0, 0, 1, 1], [], []>} : vector<6x16xf32>, vector<16x64xf32>, vector<6x64xf32> -> vector<6x64xf32>
    %85 = arith.addf %83, %84 : vector<6x64xf32>
    %86 = vector.broadcast %2 : vector<1x64xf32> to vector<6x64xf32>
    %87 = arith.addf %85, %86 : vector<6x64xf32>
    %88 = vector.extract_strided_slice %87 {offsets = [0, 0], sizes = [6, 16], strides = [1, 1]} : vector<6x64xf32> to vector<6x16xf32>
    %89 = arith.negf %88 : vector<6x16xf32>
    %90 = math.exp %89 : vector<6x16xf32>
    %cst_40 = arith.constant 1.000000e+00 : f32
    %91 = vector.broadcast %cst_40 : f32 to vector<6x16xf32>
    %92 = arith.addf %91, %90 : vector<6x16xf32>
    %93 = arith.divf %91, %92 : vector<6x16xf32>
    %94 = vector.extract_strided_slice %87 {offsets = [0, 16], sizes = [6, 16], strides = [1, 1]} : vector<6x64xf32> to vector<6x16xf32>
    %95 = arith.negf %94 : vector<6x16xf32>
    %96 = math.exp %95 : vector<6x16xf32>
    %cst_41 = arith.constant 1.000000e+00 : f32
    %97 = vector.broadcast %cst_41 : f32 to vector<6x16xf32>
    %98 = arith.addf %97, %96 : vector<6x16xf32>
    %99 = arith.divf %97, %98 : vector<6x16xf32>
    %100 = vector.extract_strided_slice %87 {offsets = [0, 32], sizes = [6, 16], strides = [1, 1]} : vector<6x64xf32> to vector<6x16xf32>
    %101 = math.tanh %100 : vector<6x16xf32>
    %102 = vector.extract_strided_slice %87 {offsets = [0, 48], sizes = [6, 16], strides = [1, 1]} : vector<6x64xf32> to vector<6x16xf32>
    %103 = arith.negf %102 : vector<6x16xf32>
    %104 = math.exp %103 : vector<6x16xf32>
    %cst_42 = arith.constant 1.000000e+00 : f32
    %105 = vector.broadcast %cst_42 : f32 to vector<6x16xf32>
    %106 = arith.addf %105, %104 : vector<6x16xf32>
    %107 = arith.divf %105, %106 : vector<6x16xf32>
    %108 = arith.mulf %99, %80 : vector<6x16xf32>
    %109 = arith.mulf %93, %101 : vector<6x16xf32>
    %110 = arith.addf %108, %109 : vector<6x16xf32>
    %111 = math.tanh %110 : vector<6x16xf32>
    %112 = arith.mulf %107, %111 : vector<6x16xf32>
    %cst_43 = arith.constant dense<0.000000e+00> : vector<6x64xf32>
    %113 = tpu.matmul %13, %0, %cst_43 {dimension_numbers = #tpu.dot_dimension_numbers<[1], [0], [0], [1], [0, 0, 1, 1], [], []>} : vector<6x96xf32>, vector<96x64xf32>, vector<6x64xf32> -> vector<6x64xf32>
    %cst_44 = arith.constant dense<0.000000e+00> : vector<6x64xf32>
    %114 = tpu.matmul %112, %1, %cst_44 {dimension_numbers = #tpu.dot_dimension_numbers<[1], [0], [0], [1], [0, 0, 1, 1], [], []>} : vector<6x16xf32>, vector<16x64xf32>, vector<6x64xf32> -> vector<6x64xf32>
    %115 = arith.addf %113, %114 : vector<6x64xf32>
    %116 = vector.broadcast %2 : vector<1x64xf32> to vector<6x64xf32>
    %117 = arith.addf %115, %116 : vector<6x64xf32>
    %118 = vector.extract_strided_slice %117 {offsets = [0, 0], sizes = [6, 16], strides = [1, 1]} : vector<6x64xf32> to vector<6x16xf32>
    %119 = arith.negf %118 : vector<6x16xf32>
    %120 = math.exp %119 : vector<6x16xf32>
    %cst_45 = arith.constant 1.000000e+00 : f32
    %121 = vector.broadcast %cst_45 : f32 to vector<6x16xf32>
    %122 = arith.addf %121, %120 : vector<6x16xf32>
    %123 = arith.divf %121, %122 : vector<6x16xf32>
    %124 = vector.extract_strided_slice %117 {offsets = [0, 16], sizes = [6, 16], strides = [1, 1]} : vector<6x64xf32> to vector<6x16xf32>
    %125 = arith.negf %124 : vector<6x16xf32>
    %126 = math.exp %125 : vector<6x16xf32>
    %cst_46 = arith.constant 1.000000e+00 : f32
    %127 = vector.broadcast %cst_46 : f32 to vector<6x16xf32>
    %128 = arith.addf %127, %126 : vector<6x16xf32>
    %129 = arith.divf %127, %128 : vector<6x16xf32>
    %130 = vector.extract_strided_slice %117 {offsets = [0, 32], sizes = [6, 16], strides = [1, 1]} : vector<6x64xf32> to vector<6x16xf32>
    %131 = math.tanh %130 : vector<6x16xf32>
    %132 = vector.extract_strided_slice %117 {offsets = [0, 48], sizes = [6, 16], strides = [1, 1]} : vector<6x64xf32> to vector<6x16xf32>
    %133 = arith.negf %132 : vector<6x16xf32>
    %134 = math.exp %133 : vector<6x16xf32>
    %cst_47 = arith.constant 1.000000e+00 : f32
    %135 = vector.broadcast %cst_47 : f32 to vector<6x16xf32>
    %136 = arith.addf %135, %134 : vector<6x16xf32>
    %137 = arith.divf %135, %136 : vector<6x16xf32>
    %138 = arith.mulf %129, %110 : vector<6x16xf32>
    %139 = arith.mulf %123, %131 : vector<6x16xf32>
    %140 = arith.addf %138, %139 : vector<6x16xf32>
    %141 = math.tanh %140 : vector<6x16xf32>
    %142 = arith.mulf %137, %141 : vector<6x16xf32>
    %cst_48 = arith.constant dense<0.000000e+00> : vector<6x64xf32>
    %143 = tpu.matmul %15, %0, %cst_48 {dimension_numbers = #tpu.dot_dimension_numbers<[1], [0], [0], [1], [0, 0, 1, 1], [], []>} : vector<6x96xf32>, vector<96x64xf32>, vector<6x64xf32> -> vector<6x64xf32>
    %cst_49 = arith.constant dense<0.000000e+00> : vector<6x64xf32>
    %144 = tpu.matmul %142, %1, %cst_49 {dimension_numbers = #tpu.dot_dimension_numbers<[1], [0], [0], [1], [0, 0, 1, 1], [], []>} : vector<6x16xf32>, vector<16x64xf32>, vector<6x64xf32> -> vector<6x64xf32>
    %145 = arith.addf %143, %144 : vector<6x64xf32>
    %146 = vector.broadcast %2 : vector<1x64xf32> to vector<6x64xf32>
    %147 = arith.addf %145, %146 : vector<6x64xf32>
    %148 = vector.extract_strided_slice %147 {offsets = [0, 0], sizes = [6, 16], strides = [1, 1]} : vector<6x64xf32> to vector<6x16xf32>
    %149 = arith.negf %148 : vector<6x16xf32>
    %150 = math.exp %149 : vector<6x16xf32>
    %cst_50 = arith.constant 1.000000e+00 : f32
    %151 = vector.broadcast %cst_50 : f32 to vector<6x16xf32>
    %152 = arith.addf %151, %150 : vector<6x16xf32>
    %153 = arith.divf %151, %152 : vector<6x16xf32>
    %154 = vector.extract_strided_slice %147 {offsets = [0, 16], sizes = [6, 16], strides = [1, 1]} : vector<6x64xf32> to vector<6x16xf32>
    %155 = arith.negf %154 : vector<6x16xf32>
    %156 = math.exp %155 : vector<6x16xf32>
    %cst_51 = arith.constant 1.000000e+00 : f32
    %157 = vector.broadcast %cst_51 : f32 to vector<6x16xf32>
    %158 = arith.addf %157, %156 : vector<6x16xf32>
    %159 = arith.divf %157, %158 : vector<6x16xf32>
    %160 = vector.extract_strided_slice %147 {offsets = [0, 32], sizes = [6, 16], strides = [1, 1]} : vector<6x64xf32> to vector<6x16xf32>
    %161 = math.tanh %160 : vector<6x16xf32>
    %162 = vector.extract_strided_slice %147 {offsets = [0, 48], sizes = [6, 16], strides = [1, 1]} : vector<6x64xf32> to vector<6x16xf32>
    %163 = arith.negf %162 : vector<6x16xf32>
    %164 = math.exp %163 : vector<6x16xf32>
    %cst_52 = arith.constant 1.000000e+00 : f32
    %165 = vector.broadcast %cst_52 : f32 to vector<6x16xf32>
    %166 = arith.addf %165, %164 : vector<6x16xf32>
    %167 = arith.divf %165, %166 : vector<6x16xf32>
    %168 = arith.mulf %159, %140 : vector<6x16xf32>
    %169 = arith.mulf %153, %161 : vector<6x16xf32>
    %170 = arith.addf %168, %169 : vector<6x16xf32>
    %171 = math.tanh %170 : vector<6x16xf32>
    %172 = arith.mulf %167, %171 : vector<6x16xf32>
    %cst_53 = arith.constant dense<0.000000e+00> : vector<6x64xf32>
    %173 = tpu.matmul %17, %0, %cst_53 {dimension_numbers = #tpu.dot_dimension_numbers<[1], [0], [0], [1], [0, 0, 1, 1], [], []>} : vector<6x96xf32>, vector<96x64xf32>, vector<6x64xf32> -> vector<6x64xf32>
    %cst_54 = arith.constant dense<0.000000e+00> : vector<6x64xf32>
    %174 = tpu.matmul %172, %1, %cst_54 {dimension_numbers = #tpu.dot_dimension_numbers<[1], [0], [0], [1], [0, 0, 1, 1], [], []>} : vector<6x16xf32>, vector<16x64xf32>, vector<6x64xf32> -> vector<6x64xf32>
    %175 = arith.addf %173, %174 : vector<6x64xf32>
    %176 = vector.broadcast %2 : vector<1x64xf32> to vector<6x64xf32>
    %177 = arith.addf %175, %176 : vector<6x64xf32>
    %178 = vector.extract_strided_slice %177 {offsets = [0, 0], sizes = [6, 16], strides = [1, 1]} : vector<6x64xf32> to vector<6x16xf32>
    %179 = arith.negf %178 : vector<6x16xf32>
    %180 = math.exp %179 : vector<6x16xf32>
    %cst_55 = arith.constant 1.000000e+00 : f32
    %181 = vector.broadcast %cst_55 : f32 to vector<6x16xf32>
    %182 = arith.addf %181, %180 : vector<6x16xf32>
    %183 = arith.divf %181, %182 : vector<6x16xf32>
    %184 = vector.extract_strided_slice %177 {offsets = [0, 16], sizes = [6, 16], strides = [1, 1]} : vector<6x64xf32> to vector<6x16xf32>
    %185 = arith.negf %184 : vector<6x16xf32>
    %186 = math.exp %185 : vector<6x16xf32>
    %cst_56 = arith.constant 1.000000e+00 : f32
    %187 = vector.broadcast %cst_56 : f32 to vector<6x16xf32>
    %188 = arith.addf %187, %186 : vector<6x16xf32>
    %189 = arith.divf %187, %188 : vector<6x16xf32>
    %190 = vector.extract_strided_slice %177 {offsets = [0, 32], sizes = [6, 16], strides = [1, 1]} : vector<6x64xf32> to vector<6x16xf32>
    %191 = math.tanh %190 : vector<6x16xf32>
    %192 = vector.extract_strided_slice %177 {offsets = [0, 48], sizes = [6, 16], strides = [1, 1]} : vector<6x64xf32> to vector<6x16xf32>
    %193 = arith.negf %192 : vector<6x16xf32>
    %194 = math.exp %193 : vector<6x16xf32>
    %cst_57 = arith.constant 1.000000e+00 : f32
    %195 = vector.broadcast %cst_57 : f32 to vector<6x16xf32>
    %196 = arith.addf %195, %194 : vector<6x16xf32>
    %197 = arith.divf %195, %196 : vector<6x16xf32>
    %198 = arith.mulf %189, %170 : vector<6x16xf32>
    %199 = arith.mulf %183, %191 : vector<6x16xf32>
    %200 = arith.addf %198, %199 : vector<6x16xf32>
    %201 = math.tanh %200 : vector<6x16xf32>
    %202 = arith.mulf %197, %201 : vector<6x16xf32>
    %cst_58 = arith.constant dense<0.000000e+00> : vector<6x64xf32>
    %203 = tpu.matmul %19, %0, %cst_58 {dimension_numbers = #tpu.dot_dimension_numbers<[1], [0], [0], [1], [0, 0, 1, 1], [], []>} : vector<6x96xf32>, vector<96x64xf32>, vector<6x64xf32> -> vector<6x64xf32>
    %cst_59 = arith.constant dense<0.000000e+00> : vector<6x64xf32>
    %204 = tpu.matmul %202, %1, %cst_59 {dimension_numbers = #tpu.dot_dimension_numbers<[1], [0], [0], [1], [0, 0, 1, 1], [], []>} : vector<6x16xf32>, vector<16x64xf32>, vector<6x64xf32> -> vector<6x64xf32>
    %205 = arith.addf %203, %204 : vector<6x64xf32>
    %206 = vector.broadcast %2 : vector<1x64xf32> to vector<6x64xf32>
    %207 = arith.addf %205, %206 : vector<6x64xf32>
    %208 = vector.extract_strided_slice %207 {offsets = [0, 0], sizes = [6, 16], strides = [1, 1]} : vector<6x64xf32> to vector<6x16xf32>
    %209 = arith.negf %208 : vector<6x16xf32>
    %210 = math.exp %209 : vector<6x16xf32>
    %cst_60 = arith.constant 1.000000e+00 : f32
    %211 = vector.broadcast %cst_60 : f32 to vector<6x16xf32>
    %212 = arith.addf %211, %210 : vector<6x16xf32>
    %213 = arith.divf %211, %212 : vector<6x16xf32>
    %214 = vector.extract_strided_slice %207 {offsets = [0, 16], sizes = [6, 16], strides = [1, 1]} : vector<6x64xf32> to vector<6x16xf32>
    %215 = arith.negf %214 : vector<6x16xf32>
    %216 = math.exp %215 : vector<6x16xf32>
    %cst_61 = arith.constant 1.000000e+00 : f32
    %217 = vector.broadcast %cst_61 : f32 to vector<6x16xf32>
    %218 = arith.addf %217, %216 : vector<6x16xf32>
    %219 = arith.divf %217, %218 : vector<6x16xf32>
    %220 = vector.extract_strided_slice %207 {offsets = [0, 32], sizes = [6, 16], strides = [1, 1]} : vector<6x64xf32> to vector<6x16xf32>
    %221 = math.tanh %220 : vector<6x16xf32>
    %222 = vector.extract_strided_slice %207 {offsets = [0, 48], sizes = [6, 16], strides = [1, 1]} : vector<6x64xf32> to vector<6x16xf32>
    %223 = arith.negf %222 : vector<6x16xf32>
    %224 = math.exp %223 : vector<6x16xf32>
    %cst_62 = arith.constant 1.000000e+00 : f32
    %225 = vector.broadcast %cst_62 : f32 to vector<6x16xf32>
    %226 = arith.addf %225, %224 : vector<6x16xf32>
    %227 = arith.divf %225, %226 : vector<6x16xf32>
    %228 = arith.mulf %219, %200 : vector<6x16xf32>
    %229 = arith.mulf %213, %221 : vector<6x16xf32>
    %230 = arith.addf %228, %229 : vector<6x16xf32>
    %231 = math.tanh %230 : vector<6x16xf32>
    %232 = arith.mulf %227, %231 : vector<6x16xf32>
    %cst_63 = arith.constant dense<0.000000e+00> : vector<6x64xf32>
    %233 = tpu.matmul %21, %0, %cst_63 {dimension_numbers = #tpu.dot_dimension_numbers<[1], [0], [0], [1], [0, 0, 1, 1], [], []>} : vector<6x96xf32>, vector<96x64xf32>, vector<6x64xf32> -> vector<6x64xf32>
    %cst_64 = arith.constant dense<0.000000e+00> : vector<6x64xf32>
    %234 = tpu.matmul %232, %1, %cst_64 {dimension_numbers = #tpu.dot_dimension_numbers<[1], [0], [0], [1], [0, 0, 1, 1], [], []>} : vector<6x16xf32>, vector<16x64xf32>, vector<6x64xf32> -> vector<6x64xf32>
    %235 = arith.addf %233, %234 : vector<6x64xf32>
    %236 = vector.broadcast %2 : vector<1x64xf32> to vector<6x64xf32>
    %237 = arith.addf %235, %236 : vector<6x64xf32>
    %238 = vector.extract_strided_slice %237 {offsets = [0, 0], sizes = [6, 16], strides = [1, 1]} : vector<6x64xf32> to vector<6x16xf32>
    %239 = arith.negf %238 : vector<6x16xf32>
    %240 = math.exp %239 : vector<6x16xf32>
    %cst_65 = arith.constant 1.000000e+00 : f32
    %241 = vector.broadcast %cst_65 : f32 to vector<6x16xf32>
    %242 = arith.addf %241, %240 : vector<6x16xf32>
    %243 = arith.divf %241, %242 : vector<6x16xf32>
    %244 = vector.extract_strided_slice %237 {offsets = [0, 16], sizes = [6, 16], strides = [1, 1]} : vector<6x64xf32> to vector<6x16xf32>
    %245 = arith.negf %244 : vector<6x16xf32>
    %246 = math.exp %245 : vector<6x16xf32>
    %cst_66 = arith.constant 1.000000e+00 : f32
    %247 = vector.broadcast %cst_66 : f32 to vector<6x16xf32>
    %248 = arith.addf %247, %246 : vector<6x16xf32>
    %249 = arith.divf %247, %248 : vector<6x16xf32>
    %250 = vector.extract_strided_slice %237 {offsets = [0, 32], sizes = [6, 16], strides = [1, 1]} : vector<6x64xf32> to vector<6x16xf32>
    %251 = math.tanh %250 : vector<6x16xf32>
    %252 = vector.extract_strided_slice %237 {offsets = [0, 48], sizes = [6, 16], strides = [1, 1]} : vector<6x64xf32> to vector<6x16xf32>
    %253 = arith.negf %252 : vector<6x16xf32>
    %254 = math.exp %253 : vector<6x16xf32>
    %cst_67 = arith.constant 1.000000e+00 : f32
    %255 = vector.broadcast %cst_67 : f32 to vector<6x16xf32>
    %256 = arith.addf %255, %254 : vector<6x16xf32>
    %257 = arith.divf %255, %256 : vector<6x16xf32>
    %258 = arith.mulf %249, %230 : vector<6x16xf32>
    %259 = arith.mulf %243, %251 : vector<6x16xf32>
    %260 = arith.addf %258, %259 : vector<6x16xf32>
    %261 = math.tanh %260 : vector<6x16xf32>
    %262 = arith.mulf %257, %261 : vector<6x16xf32>
    %cst_68 = arith.constant dense<0.000000e+00> : vector<6x64xf32>
    %263 = tpu.matmul %21, %3, %cst_68 {dimension_numbers = #tpu.dot_dimension_numbers<[1], [0], [0], [1], [0, 0, 1, 1], [], []>} : vector<6x96xf32>, vector<96x64xf32>, vector<6x64xf32> -> vector<6x64xf32>
    %cst_69 = arith.constant dense<0.000000e+00> : vector<6x64xf32>
    %264 = tpu.matmul %22, %4, %cst_69 {dimension_numbers = #tpu.dot_dimension_numbers<[1], [0], [0], [1], [0, 0, 1, 1], [], []>} : vector<6x16xf32>, vector<16x64xf32>, vector<6x64xf32> -> vector<6x64xf32>
    %265 = arith.addf %263, %264 : vector<6x64xf32>
    %266 = vector.broadcast %5 : vector<1x64xf32> to vector<6x64xf32>
    %267 = arith.addf %265, %266 : vector<6x64xf32>
    %268 = vector.extract_strided_slice %267 {offsets = [0, 0], sizes = [6, 16], strides = [1, 1]} : vector<6x64xf32> to vector<6x16xf32>
    %269 = arith.negf %268 : vector<6x16xf32>
    %270 = math.exp %269 : vector<6x16xf32>
    %cst_70 = arith.constant 1.000000e+00 : f32
    %271 = vector.broadcast %cst_70 : f32 to vector<6x16xf32>
    %272 = arith.addf %271, %270 : vector<6x16xf32>
    %273 = arith.divf %271, %272 : vector<6x16xf32>
    %274 = vector.extract_strided_slice %267 {offsets = [0, 16], sizes = [6, 16], strides = [1, 1]} : vector<6x64xf32> to vector<6x16xf32>
    %275 = arith.negf %274 : vector<6x16xf32>
    %276 = math.exp %275 : vector<6x16xf32>
    %cst_71 = arith.constant 1.000000e+00 : f32
    %277 = vector.broadcast %cst_71 : f32 to vector<6x16xf32>
    %278 = arith.addf %277, %276 : vector<6x16xf32>
    %279 = arith.divf %277, %278 : vector<6x16xf32>
    %280 = vector.extract_strided_slice %267 {offsets = [0, 32], sizes = [6, 16], strides = [1, 1]} : vector<6x64xf32> to vector<6x16xf32>
    %281 = math.tanh %280 : vector<6x16xf32>
    %282 = vector.extract_strided_slice %267 {offsets = [0, 48], sizes = [6, 16], strides = [1, 1]} : vector<6x64xf32> to vector<6x16xf32>
    %283 = arith.negf %282 : vector<6x16xf32>
    %284 = math.exp %283 : vector<6x16xf32>
    %cst_72 = arith.constant 1.000000e+00 : f32
    %285 = vector.broadcast %cst_72 : f32 to vector<6x16xf32>
    %286 = arith.addf %285, %284 : vector<6x16xf32>
    %287 = arith.divf %285, %286 : vector<6x16xf32>
    %288 = arith.mulf %279, %22 : vector<6x16xf32>
    %289 = arith.mulf %273, %281 : vector<6x16xf32>
    %290 = arith.addf %288, %289 : vector<6x16xf32>
    %291 = math.tanh %290 : vector<6x16xf32>
    %292 = arith.mulf %287, %291 : vector<6x16xf32>
    %cst_73 = arith.constant dense<0.000000e+00> : vector<6x64xf32>
    %293 = tpu.matmul %19, %3, %cst_73 {dimension_numbers = #tpu.dot_dimension_numbers<[1], [0], [0], [1], [0, 0, 1, 1], [], []>} : vector<6x96xf32>, vector<96x64xf32>, vector<6x64xf32> -> vector<6x64xf32>
    %cst_74 = arith.constant dense<0.000000e+00> : vector<6x64xf32>
    %294 = tpu.matmul %292, %4, %cst_74 {dimension_numbers = #tpu.dot_dimension_numbers<[1], [0], [0], [1], [0, 0, 1, 1], [], []>} : vector<6x16xf32>, vector<16x64xf32>, vector<6x64xf32> -> vector<6x64xf32>
    %295 = arith.addf %293, %294 : vector<6x64xf32>
    %296 = vector.broadcast %5 : vector<1x64xf32> to vector<6x64xf32>
    %297 = arith.addf %295, %296 : vector<6x64xf32>
    %298 = vector.extract_strided_slice %297 {offsets = [0, 0], sizes = [6, 16], strides = [1, 1]} : vector<6x64xf32> to vector<6x16xf32>
    %299 = arith.negf %298 : vector<6x16xf32>
    %300 = math.exp %299 : vector<6x16xf32>
    %cst_75 = arith.constant 1.000000e+00 : f32
    %301 = vector.broadcast %cst_75 : f32 to vector<6x16xf32>
    %302 = arith.addf %301, %300 : vector<6x16xf32>
    %303 = arith.divf %301, %302 : vector<6x16xf32>
    %304 = vector.extract_strided_slice %297 {offsets = [0, 16], sizes = [6, 16], strides = [1, 1]} : vector<6x64xf32> to vector<6x16xf32>
    %305 = arith.negf %304 : vector<6x16xf32>
    %306 = math.exp %305 : vector<6x16xf32>
    %cst_76 = arith.constant 1.000000e+00 : f32
    %307 = vector.broadcast %cst_76 : f32 to vector<6x16xf32>
    %308 = arith.addf %307, %306 : vector<6x16xf32>
    %309 = arith.divf %307, %308 : vector<6x16xf32>
    %310 = vector.extract_strided_slice %297 {offsets = [0, 32], sizes = [6, 16], strides = [1, 1]} : vector<6x64xf32> to vector<6x16xf32>
    %311 = math.tanh %310 : vector<6x16xf32>
    %312 = vector.extract_strided_slice %297 {offsets = [0, 48], sizes = [6, 16], strides = [1, 1]} : vector<6x64xf32> to vector<6x16xf32>
    %313 = arith.negf %312 : vector<6x16xf32>
    %314 = math.exp %313 : vector<6x16xf32>
    %cst_77 = arith.constant 1.000000e+00 : f32
    %315 = vector.broadcast %cst_77 : f32 to vector<6x16xf32>
    %316 = arith.addf %315, %314 : vector<6x16xf32>
    %317 = arith.divf %315, %316 : vector<6x16xf32>
    %318 = arith.mulf %309, %290 : vector<6x16xf32>
    %319 = arith.mulf %303, %311 : vector<6x16xf32>
    %320 = arith.addf %318, %319 : vector<6x16xf32>
    %321 = math.tanh %320 : vector<6x16xf32>
    %322 = arith.mulf %317, %321 : vector<6x16xf32>
    %cst_78 = arith.constant dense<0.000000e+00> : vector<6x64xf32>
    %323 = tpu.matmul %17, %3, %cst_78 {dimension_numbers = #tpu.dot_dimension_numbers<[1], [0], [0], [1], [0, 0, 1, 1], [], []>} : vector<6x96xf32>, vector<96x64xf32>, vector<6x64xf32> -> vector<6x64xf32>
    %cst_79 = arith.constant dense<0.000000e+00> : vector<6x64xf32>
    %324 = tpu.matmul %322, %4, %cst_79 {dimension_numbers = #tpu.dot_dimension_numbers<[1], [0], [0], [1], [0, 0, 1, 1], [], []>} : vector<6x16xf32>, vector<16x64xf32>, vector<6x64xf32> -> vector<6x64xf32>
    %325 = arith.addf %323, %324 : vector<6x64xf32>
    %326 = vector.broadcast %5 : vector<1x64xf32> to vector<6x64xf32>
    %327 = arith.addf %325, %326 : vector<6x64xf32>
    %328 = vector.extract_strided_slice %327 {offsets = [0, 0], sizes = [6, 16], strides = [1, 1]} : vector<6x64xf32> to vector<6x16xf32>
    %329 = arith.negf %328 : vector<6x16xf32>
    %330 = math.exp %329 : vector<6x16xf32>
    %cst_80 = arith.constant 1.000000e+00 : f32
    %331 = vector.broadcast %cst_80 : f32 to vector<6x16xf32>
    %332 = arith.addf %331, %330 : vector<6x16xf32>
    %333 = arith.divf %331, %332 : vector<6x16xf32>
    %334 = vector.extract_strided_slice %327 {offsets = [0, 16], sizes = [6, 16], strides = [1, 1]} : vector<6x64xf32> to vector<6x16xf32>
    %335 = arith.negf %334 : vector<6x16xf32>
    %336 = math.exp %335 : vector<6x16xf32>
    %cst_81 = arith.constant 1.000000e+00 : f32
    %337 = vector.broadcast %cst_81 : f32 to vector<6x16xf32>
    %338 = arith.addf %337, %336 : vector<6x16xf32>
    %339 = arith.divf %337, %338 : vector<6x16xf32>
    %340 = vector.extract_strided_slice %327 {offsets = [0, 32], sizes = [6, 16], strides = [1, 1]} : vector<6x64xf32> to vector<6x16xf32>
    %341 = math.tanh %340 : vector<6x16xf32>
    %342 = vector.extract_strided_slice %327 {offsets = [0, 48], sizes = [6, 16], strides = [1, 1]} : vector<6x64xf32> to vector<6x16xf32>
    %343 = arith.negf %342 : vector<6x16xf32>
    %344 = math.exp %343 : vector<6x16xf32>
    %cst_82 = arith.constant 1.000000e+00 : f32
    %345 = vector.broadcast %cst_82 : f32 to vector<6x16xf32>
    %346 = arith.addf %345, %344 : vector<6x16xf32>
    %347 = arith.divf %345, %346 : vector<6x16xf32>
    %348 = arith.mulf %339, %320 : vector<6x16xf32>
    %349 = arith.mulf %333, %341 : vector<6x16xf32>
    %350 = arith.addf %348, %349 : vector<6x16xf32>
    %351 = math.tanh %350 : vector<6x16xf32>
    %352 = arith.mulf %347, %351 : vector<6x16xf32>
    %cst_83 = arith.constant dense<0.000000e+00> : vector<6x64xf32>
    %353 = tpu.matmul %15, %3, %cst_83 {dimension_numbers = #tpu.dot_dimension_numbers<[1], [0], [0], [1], [0, 0, 1, 1], [], []>} : vector<6x96xf32>, vector<96x64xf32>, vector<6x64xf32> -> vector<6x64xf32>
    %cst_84 = arith.constant dense<0.000000e+00> : vector<6x64xf32>
    %354 = tpu.matmul %352, %4, %cst_84 {dimension_numbers = #tpu.dot_dimension_numbers<[1], [0], [0], [1], [0, 0, 1, 1], [], []>} : vector<6x16xf32>, vector<16x64xf32>, vector<6x64xf32> -> vector<6x64xf32>
    %355 = arith.addf %353, %354 : vector<6x64xf32>
    %356 = vector.broadcast %5 : vector<1x64xf32> to vector<6x64xf32>
    %357 = arith.addf %355, %356 : vector<6x64xf32>
    %358 = vector.extract_strided_slice %357 {offsets = [0, 0], sizes = [6, 16], strides = [1, 1]} : vector<6x64xf32> to vector<6x16xf32>
    %359 = arith.negf %358 : vector<6x16xf32>
    %360 = math.exp %359 : vector<6x16xf32>
    %cst_85 = arith.constant 1.000000e+00 : f32
    %361 = vector.broadcast %cst_85 : f32 to vector<6x16xf32>
    %362 = arith.addf %361, %360 : vector<6x16xf32>
    %363 = arith.divf %361, %362 : vector<6x16xf32>
    %364 = vector.extract_strided_slice %357 {offsets = [0, 16], sizes = [6, 16], strides = [1, 1]} : vector<6x64xf32> to vector<6x16xf32>
    %365 = arith.negf %364 : vector<6x16xf32>
    %366 = math.exp %365 : vector<6x16xf32>
    %cst_86 = arith.constant 1.000000e+00 : f32
    %367 = vector.broadcast %cst_86 : f32 to vector<6x16xf32>
    %368 = arith.addf %367, %366 : vector<6x16xf32>
    %369 = arith.divf %367, %368 : vector<6x16xf32>
    %370 = vector.extract_strided_slice %357 {offsets = [0, 32], sizes = [6, 16], strides = [1, 1]} : vector<6x64xf32> to vector<6x16xf32>
    %371 = math.tanh %370 : vector<6x16xf32>
    %372 = vector.extract_strided_slice %357 {offsets = [0, 48], sizes = [6, 16], strides = [1, 1]} : vector<6x64xf32> to vector<6x16xf32>
    %373 = arith.negf %372 : vector<6x16xf32>
    %374 = math.exp %373 : vector<6x16xf32>
    %cst_87 = arith.constant 1.000000e+00 : f32
    %375 = vector.broadcast %cst_87 : f32 to vector<6x16xf32>
    %376 = arith.addf %375, %374 : vector<6x16xf32>
    %377 = arith.divf %375, %376 : vector<6x16xf32>
    %378 = arith.mulf %369, %350 : vector<6x16xf32>
    %379 = arith.mulf %363, %371 : vector<6x16xf32>
    %380 = arith.addf %378, %379 : vector<6x16xf32>
    %381 = math.tanh %380 : vector<6x16xf32>
    %382 = arith.mulf %377, %381 : vector<6x16xf32>
    %cst_88 = arith.constant dense<0.000000e+00> : vector<6x64xf32>
    %383 = tpu.matmul %13, %3, %cst_88 {dimension_numbers = #tpu.dot_dimension_numbers<[1], [0], [0], [1], [0, 0, 1, 1], [], []>} : vector<6x96xf32>, vector<96x64xf32>, vector<6x64xf32> -> vector<6x64xf32>
    %cst_89 = arith.constant dense<0.000000e+00> : vector<6x64xf32>
    %384 = tpu.matmul %382, %4, %cst_89 {dimension_numbers = #tpu.dot_dimension_numbers<[1], [0], [0], [1], [0, 0, 1, 1], [], []>} : vector<6x16xf32>, vector<16x64xf32>, vector<6x64xf32> -> vector<6x64xf32>
    %385 = arith.addf %383, %384 : vector<6x64xf32>
    %386 = vector.broadcast %5 : vector<1x64xf32> to vector<6x64xf32>
    %387 = arith.addf %385, %386 : vector<6x64xf32>
    %388 = vector.extract_strided_slice %387 {offsets = [0, 0], sizes = [6, 16], strides = [1, 1]} : vector<6x64xf32> to vector<6x16xf32>
    %389 = arith.negf %388 : vector<6x16xf32>
    %390 = math.exp %389 : vector<6x16xf32>
    %cst_90 = arith.constant 1.000000e+00 : f32
    %391 = vector.broadcast %cst_90 : f32 to vector<6x16xf32>
    %392 = arith.addf %391, %390 : vector<6x16xf32>
    %393 = arith.divf %391, %392 : vector<6x16xf32>
    %394 = vector.extract_strided_slice %387 {offsets = [0, 16], sizes = [6, 16], strides = [1, 1]} : vector<6x64xf32> to vector<6x16xf32>
    %395 = arith.negf %394 : vector<6x16xf32>
    %396 = math.exp %395 : vector<6x16xf32>
    %cst_91 = arith.constant 1.000000e+00 : f32
    %397 = vector.broadcast %cst_91 : f32 to vector<6x16xf32>
    %398 = arith.addf %397, %396 : vector<6x16xf32>
    %399 = arith.divf %397, %398 : vector<6x16xf32>
    %400 = vector.extract_strided_slice %387 {offsets = [0, 32], sizes = [6, 16], strides = [1, 1]} : vector<6x64xf32> to vector<6x16xf32>
    %401 = math.tanh %400 : vector<6x16xf32>
    %402 = vector.extract_strided_slice %387 {offsets = [0, 48], sizes = [6, 16], strides = [1, 1]} : vector<6x64xf32> to vector<6x16xf32>
    %403 = arith.negf %402 : vector<6x16xf32>
    %404 = math.exp %403 : vector<6x16xf32>
    %cst_92 = arith.constant 1.000000e+00 : f32
    %405 = vector.broadcast %cst_92 : f32 to vector<6x16xf32>
    %406 = arith.addf %405, %404 : vector<6x16xf32>
    %407 = arith.divf %405, %406 : vector<6x16xf32>
    %408 = arith.mulf %399, %380 : vector<6x16xf32>
    %409 = arith.mulf %393, %401 : vector<6x16xf32>
    %410 = arith.addf %408, %409 : vector<6x16xf32>
    %411 = math.tanh %410 : vector<6x16xf32>
    %412 = arith.mulf %407, %411 : vector<6x16xf32>
    %cst_93 = arith.constant dense<0.000000e+00> : vector<6x64xf32>
    %413 = tpu.matmul %11, %3, %cst_93 {dimension_numbers = #tpu.dot_dimension_numbers<[1], [0], [0], [1], [0, 0, 1, 1], [], []>} : vector<6x96xf32>, vector<96x64xf32>, vector<6x64xf32> -> vector<6x64xf32>
    %cst_94 = arith.constant dense<0.000000e+00> : vector<6x64xf32>
    %414 = tpu.matmul %412, %4, %cst_94 {dimension_numbers = #tpu.dot_dimension_numbers<[1], [0], [0], [1], [0, 0, 1, 1], [], []>} : vector<6x16xf32>, vector<16x64xf32>, vector<6x64xf32> -> vector<6x64xf32>
    %415 = arith.addf %413, %414 : vector<6x64xf32>
    %416 = vector.broadcast %5 : vector<1x64xf32> to vector<6x64xf32>
    %417 = arith.addf %415, %416 : vector<6x64xf32>
    %418 = vector.extract_strided_slice %417 {offsets = [0, 0], sizes = [6, 16], strides = [1, 1]} : vector<6x64xf32> to vector<6x16xf32>
    %419 = arith.negf %418 : vector<6x16xf32>
    %420 = math.exp %419 : vector<6x16xf32>
    %cst_95 = arith.constant 1.000000e+00 : f32
    %421 = vector.broadcast %cst_95 : f32 to vector<6x16xf32>
    %422 = arith.addf %421, %420 : vector<6x16xf32>
    %423 = arith.divf %421, %422 : vector<6x16xf32>
    %424 = vector.extract_strided_slice %417 {offsets = [0, 16], sizes = [6, 16], strides = [1, 1]} : vector<6x64xf32> to vector<6x16xf32>
    %425 = arith.negf %424 : vector<6x16xf32>
    %426 = math.exp %425 : vector<6x16xf32>
    %cst_96 = arith.constant 1.000000e+00 : f32
    %427 = vector.broadcast %cst_96 : f32 to vector<6x16xf32>
    %428 = arith.addf %427, %426 : vector<6x16xf32>
    %429 = arith.divf %427, %428 : vector<6x16xf32>
    %430 = vector.extract_strided_slice %417 {offsets = [0, 32], sizes = [6, 16], strides = [1, 1]} : vector<6x64xf32> to vector<6x16xf32>
    %431 = math.tanh %430 : vector<6x16xf32>
    %432 = vector.extract_strided_slice %417 {offsets = [0, 48], sizes = [6, 16], strides = [1, 1]} : vector<6x64xf32> to vector<6x16xf32>
    %433 = arith.negf %432 : vector<6x16xf32>
    %434 = math.exp %433 : vector<6x16xf32>
    %cst_97 = arith.constant 1.000000e+00 : f32
    %435 = vector.broadcast %cst_97 : f32 to vector<6x16xf32>
    %436 = arith.addf %435, %434 : vector<6x16xf32>
    %437 = arith.divf %435, %436 : vector<6x16xf32>
    %438 = arith.mulf %429, %410 : vector<6x16xf32>
    %439 = arith.mulf %423, %431 : vector<6x16xf32>
    %440 = arith.addf %438, %439 : vector<6x16xf32>
    %441 = math.tanh %440 : vector<6x16xf32>
    %442 = arith.mulf %437, %441 : vector<6x16xf32>
    %cst_98 = arith.constant dense<0.000000e+00> : vector<6x64xf32>
    %443 = tpu.matmul %9, %3, %cst_98 {dimension_numbers = #tpu.dot_dimension_numbers<[1], [0], [0], [1], [0, 0, 1, 1], [], []>} : vector<6x96xf32>, vector<96x64xf32>, vector<6x64xf32> -> vector<6x64xf32>
    %cst_99 = arith.constant dense<0.000000e+00> : vector<6x64xf32>
    %444 = tpu.matmul %442, %4, %cst_99 {dimension_numbers = #tpu.dot_dimension_numbers<[1], [0], [0], [1], [0, 0, 1, 1], [], []>} : vector<6x16xf32>, vector<16x64xf32>, vector<6x64xf32> -> vector<6x64xf32>
    %445 = arith.addf %443, %444 : vector<6x64xf32>
    %446 = vector.broadcast %5 : vector<1x64xf32> to vector<6x64xf32>
    %447 = arith.addf %445, %446 : vector<6x64xf32>
    %448 = vector.extract_strided_slice %447 {offsets = [0, 0], sizes = [6, 16], strides = [1, 1]} : vector<6x64xf32> to vector<6x16xf32>
    %449 = arith.negf %448 : vector<6x16xf32>
    %450 = math.exp %449 : vector<6x16xf32>
    %cst_100 = arith.constant 1.000000e+00 : f32
    %451 = vector.broadcast %cst_100 : f32 to vector<6x16xf32>
    %452 = arith.addf %451, %450 : vector<6x16xf32>
    %453 = arith.divf %451, %452 : vector<6x16xf32>
    %454 = vector.extract_strided_slice %447 {offsets = [0, 16], sizes = [6, 16], strides = [1, 1]} : vector<6x64xf32> to vector<6x16xf32>
    %455 = arith.negf %454 : vector<6x16xf32>
    %456 = math.exp %455 : vector<6x16xf32>
    %cst_101 = arith.constant 1.000000e+00 : f32
    %457 = vector.broadcast %cst_101 : f32 to vector<6x16xf32>
    %458 = arith.addf %457, %456 : vector<6x16xf32>
    %459 = arith.divf %457, %458 : vector<6x16xf32>
    %460 = vector.extract_strided_slice %447 {offsets = [0, 32], sizes = [6, 16], strides = [1, 1]} : vector<6x64xf32> to vector<6x16xf32>
    %461 = math.tanh %460 : vector<6x16xf32>
    %462 = vector.extract_strided_slice %447 {offsets = [0, 48], sizes = [6, 16], strides = [1, 1]} : vector<6x64xf32> to vector<6x16xf32>
    %463 = arith.negf %462 : vector<6x16xf32>
    %464 = math.exp %463 : vector<6x16xf32>
    %cst_102 = arith.constant 1.000000e+00 : f32
    %465 = vector.broadcast %cst_102 : f32 to vector<6x16xf32>
    %466 = arith.addf %465, %464 : vector<6x16xf32>
    %467 = arith.divf %465, %466 : vector<6x16xf32>
    %468 = arith.mulf %459, %440 : vector<6x16xf32>
    %469 = arith.mulf %453, %461 : vector<6x16xf32>
    %470 = arith.addf %468, %469 : vector<6x16xf32>
    %471 = math.tanh %470 : vector<6x16xf32>
    %472 = arith.mulf %467, %471 : vector<6x16xf32>
    %cst_103 = arith.constant dense<0.000000e+00> : vector<6x64xf32>
    %473 = tpu.matmul %7, %3, %cst_103 {dimension_numbers = #tpu.dot_dimension_numbers<[1], [0], [0], [1], [0, 0, 1, 1], [], []>} : vector<6x96xf32>, vector<96x64xf32>, vector<6x64xf32> -> vector<6x64xf32>
    %cst_104 = arith.constant dense<0.000000e+00> : vector<6x64xf32>
    %474 = tpu.matmul %472, %4, %cst_104 {dimension_numbers = #tpu.dot_dimension_numbers<[1], [0], [0], [1], [0, 0, 1, 1], [], []>} : vector<6x16xf32>, vector<16x64xf32>, vector<6x64xf32> -> vector<6x64xf32>
    %475 = arith.addf %473, %474 : vector<6x64xf32>
    %476 = vector.broadcast %5 : vector<1x64xf32> to vector<6x64xf32>
    %477 = arith.addf %475, %476 : vector<6x64xf32>
    %478 = vector.extract_strided_slice %477 {offsets = [0, 0], sizes = [6, 16], strides = [1, 1]} : vector<6x64xf32> to vector<6x16xf32>
    %479 = arith.negf %478 : vector<6x16xf32>
    %480 = math.exp %479 : vector<6x16xf32>
    %cst_105 = arith.constant 1.000000e+00 : f32
    %481 = vector.broadcast %cst_105 : f32 to vector<6x16xf32>
    %482 = arith.addf %481, %480 : vector<6x16xf32>
    %483 = arith.divf %481, %482 : vector<6x16xf32>
    %484 = vector.extract_strided_slice %477 {offsets = [0, 16], sizes = [6, 16], strides = [1, 1]} : vector<6x64xf32> to vector<6x16xf32>
    %485 = arith.negf %484 : vector<6x16xf32>
    %486 = math.exp %485 : vector<6x16xf32>
    %cst_106 = arith.constant 1.000000e+00 : f32
    %487 = vector.broadcast %cst_106 : f32 to vector<6x16xf32>
    %488 = arith.addf %487, %486 : vector<6x16xf32>
    %489 = arith.divf %487, %488 : vector<6x16xf32>
    %490 = vector.extract_strided_slice %477 {offsets = [0, 32], sizes = [6, 16], strides = [1, 1]} : vector<6x64xf32> to vector<6x16xf32>
    %491 = math.tanh %490 : vector<6x16xf32>
    %492 = vector.extract_strided_slice %477 {offsets = [0, 48], sizes = [6, 16], strides = [1, 1]} : vector<6x64xf32> to vector<6x16xf32>
    %493 = arith.negf %492 : vector<6x16xf32>
    %494 = math.exp %493 : vector<6x16xf32>
    %cst_107 = arith.constant 1.000000e+00 : f32
    %495 = vector.broadcast %cst_107 : f32 to vector<6x16xf32>
    %496 = arith.addf %495, %494 : vector<6x16xf32>
    %497 = arith.divf %495, %496 : vector<6x16xf32>
    %498 = arith.mulf %489, %470 : vector<6x16xf32>
    %499 = arith.mulf %483, %491 : vector<6x16xf32>
    %500 = arith.addf %498, %499 : vector<6x16xf32>
    %501 = math.tanh %500 : vector<6x16xf32>
    %502 = arith.mulf %497, %501 : vector<6x16xf32>
    %503 = tpu.concatenate %52, %502 in 1 : vector<6x16xf32>, vector<6x16xf32> -> vector<6x32xf32>
    %c0_108 = arith.constant 0 : index
    %c0_109 = arith.constant 0 : index
    %c0_110 = arith.constant 0 : index
    %504 = vector.load %arg2[%c0_108, %c0_109, %c0_110] : memref<8x6x1xf32, #tpu.memory_space<vmem>>, vector<1x6x1xf32>
    %505 = vector.shape_cast %504 : vector<1x6x1xf32> to vector<6x1xf32>
    %cst_111 = arith.constant 0.000000e+00 : f32
    %506 = vector.broadcast %cst_111 : f32 to vector<6x1xf32>
    %507 = arith.cmpf ogt, %505, %506 : vector<6x1xf32>
    %cst_112 = arith.constant -1.000000e+07 : f32
    %508 = vector.shape_cast %507 : vector<6x1xi1> to vector<6x1xi1>
    %509 = vector.broadcast %508 : vector<6x1xi1> to vector<6x32xi1>
    %510 = vector.broadcast %cst_112 : f32 to vector<6x32xf32>
    %511 = arith.select %509, %503, %510 : vector<6x32xi1>, vector<6x32xf32>
    %cst_113 = arith.constant dense<0xFF800000> : vector<32xf32>
    %512 = vector.multi_reduction <maximumf>, %511, %cst_113 [0] : vector<6x32xf32> to vector<32xf32>
    %513 = vector.shape_cast %512 : vector<32xf32> to vector<1x32xf32>
    %514 = tpu.concatenate %82, %472 in 1 : vector<6x16xf32>, vector<6x16xf32> -> vector<6x32xf32>
    %c1_114 = arith.constant 1 : index
    %c0_115 = arith.constant 0 : index
    %c0_116 = arith.constant 0 : index
    %515 = vector.load %arg2[%c1_114, %c0_115, %c0_116] : memref<8x6x1xf32, #tpu.memory_space<vmem>>, vector<1x6x1xf32>
    %516 = vector.shape_cast %515 : vector<1x6x1xf32> to vector<6x1xf32>
    %cst_117 = arith.constant 0.000000e+00 : f32
    %517 = vector.broadcast %cst_117 : f32 to vector<6x1xf32>
    %518 = arith.cmpf ogt, %516, %517 : vector<6x1xf32>
    %cst_118 = arith.constant -1.000000e+07 : f32
    %519 = vector.shape_cast %518 : vector<6x1xi1> to vector<6x1xi1>
    %520 = vector.broadcast %519 : vector<6x1xi1> to vector<6x32xi1>
    %521 = vector.broadcast %cst_118 : f32 to vector<6x32xf32>
    %522 = arith.select %520, %514, %521 : vector<6x32xi1>, vector<6x32xf32>
    %cst_119 = arith.constant dense<0xFF800000> : vector<32xf32>
    %523 = vector.multi_reduction <maximumf>, %522, %cst_119 [0] : vector<6x32xf32> to vector<32xf32>
    %524 = vector.shape_cast %523 : vector<32xf32> to vector<1x32xf32>
    %525 = tpu.concatenate %112, %442 in 1 : vector<6x16xf32>, vector<6x16xf32> -> vector<6x32xf32>
    %c2_120 = arith.constant 2 : index
    %c0_121 = arith.constant 0 : index
    %c0_122 = arith.constant 0 : index
    %526 = vector.load %arg2[%c2_120, %c0_121, %c0_122] : memref<8x6x1xf32, #tpu.memory_space<vmem>>, vector<1x6x1xf32>
    %527 = vector.shape_cast %526 : vector<1x6x1xf32> to vector<6x1xf32>
    %cst_123 = arith.constant 0.000000e+00 : f32
    %528 = vector.broadcast %cst_123 : f32 to vector<6x1xf32>
    %529 = arith.cmpf ogt, %527, %528 : vector<6x1xf32>
    %cst_124 = arith.constant -1.000000e+07 : f32
    %530 = vector.shape_cast %529 : vector<6x1xi1> to vector<6x1xi1>
    %531 = vector.broadcast %530 : vector<6x1xi1> to vector<6x32xi1>
    %532 = vector.broadcast %cst_124 : f32 to vector<6x32xf32>
    %533 = arith.select %531, %525, %532 : vector<6x32xi1>, vector<6x32xf32>
    %cst_125 = arith.constant dense<0xFF800000> : vector<32xf32>
    %534 = vector.multi_reduction <maximumf>, %533, %cst_125 [0] : vector<6x32xf32> to vector<32xf32>
    %535 = vector.shape_cast %534 : vector<32xf32> to vector<1x32xf32>
    %536 = tpu.concatenate %142, %412 in 1 : vector<6x16xf32>, vector<6x16xf32> -> vector<6x32xf32>
    %c3_126 = arith.constant 3 : index
    %c0_127 = arith.constant 0 : index
    %c0_128 = arith.constant 0 : index
    %537 = vector.load %arg2[%c3_126, %c0_127, %c0_128] : memref<8x6x1xf32, #tpu.memory_space<vmem>>, vector<1x6x1xf32>
    %538 = vector.shape_cast %537 : vector<1x6x1xf32> to vector<6x1xf32>
    %cst_129 = arith.constant 0.000000e+00 : f32
    %539 = vector.broadcast %cst_129 : f32 to vector<6x1xf32>
    %540 = arith.cmpf ogt, %538, %539 : vector<6x1xf32>
    %cst_130 = arith.constant -1.000000e+07 : f32
    %541 = vector.shape_cast %540 : vector<6x1xi1> to vector<6x1xi1>
    %542 = vector.broadcast %541 : vector<6x1xi1> to vector<6x32xi1>
    %543 = vector.broadcast %cst_130 : f32 to vector<6x32xf32>
    %544 = arith.select %542, %536, %543 : vector<6x32xi1>, vector<6x32xf32>
    %cst_131 = arith.constant dense<0xFF800000> : vector<32xf32>
    %545 = vector.multi_reduction <maximumf>, %544, %cst_131 [0] : vector<6x32xf32> to vector<32xf32>
    %546 = vector.shape_cast %545 : vector<32xf32> to vector<1x32xf32>
    %547 = tpu.concatenate %172, %382 in 1 : vector<6x16xf32>, vector<6x16xf32> -> vector<6x32xf32>
    %c4_132 = arith.constant 4 : index
    %c0_133 = arith.constant 0 : index
    %c0_134 = arith.constant 0 : index
    %548 = vector.load %arg2[%c4_132, %c0_133, %c0_134] : memref<8x6x1xf32, #tpu.memory_space<vmem>>, vector<1x6x1xf32>
    %549 = vector.shape_cast %548 : vector<1x6x1xf32> to vector<6x1xf32>
    %cst_135 = arith.constant 0.000000e+00 : f32
    %550 = vector.broadcast %cst_135 : f32 to vector<6x1xf32>
    %551 = arith.cmpf ogt, %549, %550 : vector<6x1xf32>
    %cst_136 = arith.constant -1.000000e+07 : f32
    %552 = vector.shape_cast %551 : vector<6x1xi1> to vector<6x1xi1>
    %553 = vector.broadcast %552 : vector<6x1xi1> to vector<6x32xi1>
    %554 = vector.broadcast %cst_136 : f32 to vector<6x32xf32>
    %555 = arith.select %553, %547, %554 : vector<6x32xi1>, vector<6x32xf32>
    %cst_137 = arith.constant dense<0xFF800000> : vector<32xf32>
    %556 = vector.multi_reduction <maximumf>, %555, %cst_137 [0] : vector<6x32xf32> to vector<32xf32>
    %557 = vector.shape_cast %556 : vector<32xf32> to vector<1x32xf32>
    %558 = tpu.concatenate %202, %352 in 1 : vector<6x16xf32>, vector<6x16xf32> -> vector<6x32xf32>
    %c5_138 = arith.constant 5 : index
    %c0_139 = arith.constant 0 : index
    %c0_140 = arith.constant 0 : index
    %559 = vector.load %arg2[%c5_138, %c0_139, %c0_140] : memref<8x6x1xf32, #tpu.memory_space<vmem>>, vector<1x6x1xf32>
    %560 = vector.shape_cast %559 : vector<1x6x1xf32> to vector<6x1xf32>
    %cst_141 = arith.constant 0.000000e+00 : f32
    %561 = vector.broadcast %cst_141 : f32 to vector<6x1xf32>
    %562 = arith.cmpf ogt, %560, %561 : vector<6x1xf32>
    %cst_142 = arith.constant -1.000000e+07 : f32
    %563 = vector.shape_cast %562 : vector<6x1xi1> to vector<6x1xi1>
    %564 = vector.broadcast %563 : vector<6x1xi1> to vector<6x32xi1>
    %565 = vector.broadcast %cst_142 : f32 to vector<6x32xf32>
    %566 = arith.select %564, %558, %565 : vector<6x32xi1>, vector<6x32xf32>
    %cst_143 = arith.constant dense<0xFF800000> : vector<32xf32>
    %567 = vector.multi_reduction <maximumf>, %566, %cst_143 [0] : vector<6x32xf32> to vector<32xf32>
    %568 = vector.shape_cast %567 : vector<32xf32> to vector<1x32xf32>
    %569 = tpu.concatenate %232, %322 in 1 : vector<6x16xf32>, vector<6x16xf32> -> vector<6x32xf32>
    %c6_144 = arith.constant 6 : index
    %c0_145 = arith.constant 0 : index
    %c0_146 = arith.constant 0 : index
    %570 = vector.load %arg2[%c6_144, %c0_145, %c0_146] : memref<8x6x1xf32, #tpu.memory_space<vmem>>, vector<1x6x1xf32>
    %571 = vector.shape_cast %570 : vector<1x6x1xf32> to vector<6x1xf32>
    %cst_147 = arith.constant 0.000000e+00 : f32
    %572 = vector.broadcast %cst_147 : f32 to vector<6x1xf32>
    %573 = arith.cmpf ogt, %571, %572 : vector<6x1xf32>
    %cst_148 = arith.constant -1.000000e+07 : f32
    %574 = vector.shape_cast %573 : vector<6x1xi1> to vector<6x1xi1>
    %575 = vector.broadcast %574 : vector<6x1xi1> to vector<6x32xi1>
    %576 = vector.broadcast %cst_148 : f32 to vector<6x32xf32>
    %577 = arith.select %575, %569, %576 : vector<6x32xi1>, vector<6x32xf32>
    %cst_149 = arith.constant dense<0xFF800000> : vector<32xf32>
    %578 = vector.multi_reduction <maximumf>, %577, %cst_149 [0] : vector<6x32xf32> to vector<32xf32>
    %579 = vector.shape_cast %578 : vector<32xf32> to vector<1x32xf32>
    %580 = tpu.concatenate %262, %292 in 1 : vector<6x16xf32>, vector<6x16xf32> -> vector<6x32xf32>
    %c7_150 = arith.constant 7 : index
    %c0_151 = arith.constant 0 : index
    %c0_152 = arith.constant 0 : index
    %581 = vector.load %arg2[%c7_150, %c0_151, %c0_152] : memref<8x6x1xf32, #tpu.memory_space<vmem>>, vector<1x6x1xf32>
    %582 = vector.shape_cast %581 : vector<1x6x1xf32> to vector<6x1xf32>
    %cst_153 = arith.constant 0.000000e+00 : f32
    %583 = vector.broadcast %cst_153 : f32 to vector<6x1xf32>
    %584 = arith.cmpf ogt, %582, %583 : vector<6x1xf32>
    %cst_154 = arith.constant -1.000000e+07 : f32
    %585 = vector.shape_cast %584 : vector<6x1xi1> to vector<6x1xi1>
    %586 = vector.broadcast %585 : vector<6x1xi1> to vector<6x32xi1>
    %587 = vector.broadcast %cst_154 : f32 to vector<6x32xf32>
    %588 = arith.select %586, %580, %587 : vector<6x32xi1>, vector<6x32xf32>
    %cst_155 = arith.constant dense<0xFF800000> : vector<32xf32>
    %589 = vector.multi_reduction <maximumf>, %588, %cst_155 [0] : vector<6x32xf32> to vector<32xf32>
    %590 = vector.shape_cast %589 : vector<32xf32> to vector<1x32xf32>
    %591 = tpu.concatenate %513, %524, %535, %546, %557, %568, %579, %590 in 0 : vector<1x32xf32>, vector<1x32xf32>, vector<1x32xf32>, vector<1x32xf32>, vector<1x32xf32>, vector<1x32xf32>, vector<1x32xf32>, vector<1x32xf32> -> vector<8x32xf32>
    %c0_156 = arith.constant 0 : index
    %c0_157 = arith.constant 0 : index
    %592 = vector.load %arg9[%c0_156, %c0_157] : memref<32x32xf32, #tpu.memory_space<vmem>>, vector<32x32xf32>
    %cst_158 = arith.constant dense<0.000000e+00> : vector<8x32xf32>
    %593 = tpu.matmul %591, %592, %cst_158 {dimension_numbers = #tpu.dot_dimension_numbers<[1], [0], [0], [1], [0, 0, 1, 1], [], []>} : vector<8x32xf32>, vector<32x32xf32>, vector<8x32xf32> -> vector<8x32xf32>
    %c0_159 = arith.constant 0 : index
    %c0_160 = arith.constant 0 : index
    %594 = vector.load %arg10[%c0_159, %c0_160] : memref<1x32xf32, #tpu.memory_space<vmem>>, vector<1x32xf32>
    %595 = vector.broadcast %594 : vector<1x32xf32> to vector<8x32xf32>
    %596 = arith.addf %593, %595 : vector<8x32xf32>
    %cst_161 = arith.constant 0.000000e+00 : f32
    %597 = vector.broadcast %cst_161 : f32 to vector<8x32xf32>
    %598 = arith.maximumf %596, %597 : vector<8x32xf32>
    %c0_162 = arith.constant 0 : index
    %c0_163 = arith.constant 0 : index
    %599 = vector.load %arg11[%c0_162, %c0_163] : memref<1x32xf32, #tpu.memory_space<vmem>>, vector<1x32xf32>
    %600 = vector.broadcast %599 : vector<1x32xf32> to vector<8x32xf32>
    %601 = arith.mulf %598, %600 : vector<8x32xf32>
    %cst_164 = arith.constant dense<0.000000e+00> : vector<8xf32>
    %602 = vector.multi_reduction <add>, %601, %cst_164 [1] : vector<8x32xf32> to vector<8xf32>
    %603 = vector.shape_cast %602 : vector<8xf32> to vector<8x1xf32>
    %c0_165 = arith.constant 0 : index
    %c0_166 = arith.constant 0 : index
    %604 = vector.load %arg12[%c0_165, %c0_166] : memref<1x1xf32, #tpu.memory_space<vmem>>, vector<1x1xf32>
    %605 = vector.broadcast %604 : vector<1x1xf32> to vector<8x1xf32>
    %606 = arith.addf %603, %605 : vector<8x1xf32>
    %c0_167 = arith.constant 0 : index
    %c0_168 = arith.constant 0 : index
    %607 = vector.load %arg13[%c0_167, %c0_168] : memref<8x1xf32, #tpu.memory_space<vmem>>, vector<8x1xf32>
    tpu.vector_store %arg13[%c0_167, %c0_168], %606 {strides = array<i32>} : memref<8x1xf32, #tpu.memory_space<vmem>>, vector<8x1xf32>,
    return
  }
  func.func @transform_0(%arg0: i32) -> (i32, i32, i32) {
    %c0_i32 = arith.constant 0 : i32
    %c0_i32_0 = arith.constant 0 : i32
    %c0_i32_1 = arith.constant 0 : i32
    %c0_i32_2 = arith.constant 0 : i32
    return %c0_i32, %c0_i32_0, %c0_i32_1 : i32, i32, i32
  }
  func.func @transform_1(%arg0: i32) -> (i32, i32, i32) {
    %c0_i32 = arith.constant 0 : i32
    %c0_i32_0 = arith.constant 0 : i32
    %c0_i32_1 = arith.constant 0 : i32
    %c0_i32_2 = arith.constant 0 : i32
    return %c0_i32, %c0_i32_0, %c0_i32_1 : i32, i32, i32
  }
  func.func @transform_2(%arg0: i32) -> (i32, i32) {
    %c0_i32 = arith.constant 0 : i32
    %c0_i32_0 = arith.constant 0 : i32
    %c0_i32_1 = arith.constant 0 : i32
    return %c0_i32, %c0_i32_0 : i32, i32
  }
  func.func @transform_3(%arg0: i32) -> (i32, i32) {
    %c0_i32 = arith.constant 0 : i32
    %c0_i32_0 = arith.constant 0 : i32
    %c0_i32_1 = arith.constant 0 : i32
    return %c0_i32, %c0_i32_0 : i32, i32
  }
  func.func @transform_4(%arg0: i32) -> (i32, i32) {
    %c0_i32 = arith.constant 0 : i32
    %c0_i32_0 = arith.constant 0 : i32
    %c0_i32_1 = arith.constant 0 : i32
    return %c0_i32, %c0_i32_0 : i32, i32
  }
  func.func @transform_5(%arg0: i32) -> (i32, i32) {
    %c0_i32 = arith.constant 0 : i32
    %c0_i32_0 = arith.constant 0 : i32
    %c0_i32_1 = arith.constant 0 : i32
    return %c0_i32, %c0_i32_0 : i32, i32
  }
  func.func @transform_6(%arg0: i32) -> (i32, i32) {
    %c0_i32 = arith.constant 0 : i32
    %c0_i32_0 = arith.constant 0 : i32
    %c0_i32_1 = arith.constant 0 : i32
    return %c0_i32, %c0_i32_0 : i32, i32
  }
  func.func @transform_7(%arg0: i32) -> (i32, i32) {
    %c0_i32 = arith.constant 0 : i32
    %c0_i32_0 = arith.constant 0 : i32
    %c0_i32_1 = arith.constant 0 : i32
    return %c0_i32, %c0_i32_0 : i32, i32
  }
  func.func @transform_8(%arg0: i32) -> (i32, i32) {
    %c0_i32 = arith.constant 0 : i32
    %c0_i32_0 = arith.constant 0 : i32
    %c0_i32_1 = arith.constant 0 : i32
    return %c0_i32, %c0_i32_0 : i32, i32
  }
  func.func @transform_9(%arg0: i32) -> (i32, i32) {
    %c0_i32 = arith.constant 0 : i32
    %c0_i32_0 = arith.constant 0 : i32
    %c0_i32_1 = arith.constant 0 : i32
    return %c0_i32, %c0_i32_0 : i32, i32
  }
  func.func @transform_10(%arg0: i32) -> (i32, i32) {
    %c0_i32 = arith.constant 0 : i32
    %c0_i32_0 = arith.constant 0 : i32
    %c0_i32_1 = arith.constant 0 : i32
    return %c0_i32, %c0_i32_0 : i32, i32
  }
  func.func @transform_11(%arg0: i32) -> (i32, i32) {
    %c0_i32 = arith.constant 0 : i32
    %c0_i32_0 = arith.constant 0 : i32
    %c0_i32_1 = arith.constant 0 : i32
    return %c0_i32, %c0_i32_0 : i32, i32
  }
  func.func @transform_12(%arg0: i32) -> (i32, i32) {
    %c0_i32 = arith.constant 0 : i32
    %c0_i32_0 = arith.constant 0 : i32
    %c0_i32_1 = arith.constant 0 : i32
    return %c0_i32, %c0_i32_0 : i32, i32
  }
}

</mosaic_0001>

<bundles_post_ra>
// kernel: custom-call.8
= control target key start
LH: loop header
LB: loop body
LE: loop exit
PB: predicated region body
PF: predicated region fallthrough
CT: control target
= control target key end

     0   :  { %s6_s0 = inlined_call_operand.vmem [shape: bf16[8,16], index: 0, kind: output, shape index: {}]  }

// kernel: custom-call.9
= control target key start
LH: loop header
LB: loop body
LE: loop exit
PB: predicated region body
PF: predicated region fallthrough
CT: control target
= control target key end

     0   :  { %s6_s0 = inlined_call_operand.vmem [shape: f32[8,16], index: 0, kind: output, shape index: {}]  }

// kernel: custom-call.12
= control target key start
LH: loop header
LB: loop body
LE: loop exit
PB: predicated region body
PF: predicated region fallthrough
CT: control target
= control target key end

     0   :  { %s6_s0 = inlined_call_operand.vmem [shape: bf16[6,16], index: 0, kind: output, shape index: {}]  }

// kernel: custom-call.13
= control target key start
LH: loop header
LB: loop body
LE: loop exit
PB: predicated region body
PF: predicated region fallthrough
CT: control target
= control target key end

     0   :  { %s6_s0 = inlined_call_operand.vmem [shape: f32[6,16], index: 0, kind: output, shape index: {}]  }

// kernel: attention_qa_forward.2
= control target key start
LH: loop header
LB: loop body
LE: loop exit
PB: predicated region body
PF: predicated region fallthrough
CT: control target
= control target key end

     0   :  { %vm48_vm0 = vcmask 261120   ;;  %v1323_v34 = vmov -inf   ;;  %vm341_vm5 = vcmask 523264   ;;  %s1658_s3 = inlined_call_operand.vmem [shape: f32[32,32], index: 3, kind: input, shape index: {}]   ;;  %s1659_s1 = inlined_call_operand.vmem [shape: f32[48,32], index: 1, kind: input, shape index: {}]   ;;  %s1660_s0 = inlined_call_operand.vmem [shape: f32[64,32], index: 0, kind: input, shape index: {}]   ;;  %s1661_s5 = inlined_call_operand.vmem [shape: s32[48,64], index: 5, kind: input, shape index: {}]   ;;  %s1662_s4 = inlined_call_operand.vmem [shape: f32[32,32], index: 4, kind: input, shape index: {}]   ;;  %s1663_s2 = inlined_call_operand.vmem [shape: f32[10,32], index: 2, kind: input, shape index: {}]   ;;  %s1664_s7 = inlined_call_operand.vmem [shape: f32[48,32], index: 7, kind: output, shape index: {0}]   ;;  %s1665_s6 = inlined_call_operand.vmem [shape: s32[48,10], index: 6, kind: input, shape index: {}]   ;;  %s1666_s8 = inlined_call_operand.vmem [shape: f32[48,32], index: 8, kind: output, shape index: {1}]  }
   0x1   :  { %v44_v0 = vld [vmem:[%s1658_s3] sm:$0xff]  ;;  %v45_v1 = vld [vmem:[%s1658_s3 + $0x8] sm:$0xff]  ;;  %vm1378_vm1 = vmpackc.low %vm48_vm0, %vm48_vm0 }
   0x2   :  { %v1197_v3 = vpack.c.bf16 %v45_v1, %v44_v0  ;;  %v46_v4 = vld [vmem:[%s1658_s3 + $0x10] sm:$0xff]  ;;  %v47_v5 = vld [vmem:[%s1658_s3 + $0x18] sm:$0xff]  ;;  %v1391_v6 = vld [vmem:[%s1659_s1] sm:$0xff] }
   0x3   :  { %v1203_v7 = vpack.c.bf16 %v47_v5, %v46_v4  ;;  %1095 = vmatprep.mubr.msk.f32.mxu0 %vm48_vm0, %v1391_v6  ;;  %v34_v8 = vld [vmem:[%s1660_s0] sm:$0xff]  ;;  %v35_v9 = vld [vmem:[%s1660_s0 + $0x8] sm:$0xff]  ;;  %v36_v10 = vld [vmem:[%s1660_s0 + $0x10] sm:$0xff] }
   0x4   :  { %1199 = vmatprep.subr.msk.bf16.mxu0 %vm1378_vm1, %v1197_v3  ;;  %v37_v11 = vld [vmem:[%s1660_s0 + $0x18] sm:$0xff]  ;;  %v1209_v12 = vpack.c.bf16 %v35_v9, %v34_v8  ;;  %v38_v14 = vld [vmem:[%s1660_s0 + $0x20] sm:$0xff]  ;;  %v39_v15 = vld [vmem:[%s1660_s0 + $0x28] sm:$0xff] }
   0x5   :  { %1202 = vmatpush3.bf16.xpose.msk.msra.mxu0 %vm1378_vm1, %v1197_v3  ;;  %v1215_v13 = vpack.c.bf16 %v37_v11, %v36_v10  ;;  %v1221_v16 = vpack.c.bf16 %v39_v15, %v38_v14  ;;  %v1430_v17 = vld [vmem:[%s1659_s1 + $0x8] sm:$0xff]  ;;  %v30_v18 = vld [vmem:[%s1659_s1 + $0x10] sm:$0xff]  ;;  %v41_v20 = vld [vmem:[%s1660_s0 + $0x38] sm:$0xff] }
   0x6   :  { %1205 = vmatprep.subr.msk.bf16.mxu0 %vm1378_vm1, %v1203_v7  ;;  %1211 = vmatprep.subr.msk.bf16.mxu1 %vm1378_vm1, %v1209_v12  ;;  %v40_v19 = vld [vmem:[%s1660_s0 + $0x30] sm:$0xff]  ;;  %v1451_v21 = vld [vmem:[%s1659_s1 + $0x18] sm:$0xff]  ;;  %v1456_v22 = vld [vmem:[%s1659_s1 + $0x20] sm:$0xff] }
   0x7   :  { %1214 = vmatpush3.bf16.xpose.msk.msra.mxu1 %vm1378_vm1, %v1209_v12  ;;  %v1227_v23 = vpack.c.bf16 %v41_v20, %v40_v19  ;;  %v1465_v24 = vld [vmem:[%s1659_s1 + $0x28] sm:$0xff]  ;;  %v311_v31 = vld [vmem:[%s1661_s5] sm:$0xff]  ;;  %v313_v33 = vld [vmem:[%s1661_s5 + $0x10] sm:$0xff] }
   0x8   :  { %1217 = vmatprep.subr.msk.bf16.mxu1 %vm1378_vm1, %v1215_v13  ;;  %v312_v32 = vld [vmem:[%s1661_s5 + $0x8] sm:$0xff]  ;;  %vm323_vm2 = vcmp.eq.s32.totalorder %v311_v31, 2  ;;  %vm317_vm4 = vcmp.eq.s32.totalorder %v311_v31, 3  ;;  %v314_v36 = vld [vmem:[%s1661_s5 + $0x18] sm:$0xff]  ;;  %vm325_vm6 = vcmp.eq.s32.totalorder %v313_v33, 2  ;;  %v315_v40 = vld [vmem:[%s1661_s5 + $0x20] sm:$0xff] }
   0x9   :  { %vm324_vm3 = vcmp.eq.s32.totalorder %v312_v32, 2  ;;  %v329_v35 = vsel %vm323_vm2, -10000.0, %v1323_v34  ;;  %vm318_vm7 = vcmp.eq.s32.totalorder %v312_v32, 3  ;;  %vm326_vm8 = vcmp.eq.s32.totalorder %v314_v36, 2  ;;  %v316_v44 = vld [vmem:[%s1661_s5 + $0x28] sm:$0xff] }
   0xa   :  { %v330_v39 = vsel %vm324_vm3, -10000.0, %v1323_v34  ;;  %vm319_vm9 = vcmp.eq.s32.totalorder %v313_v33, 3  ;;  %v331_v43 = vsel %vm325_vm6, -10000.0, %v1323_v34  ;;  %vm327_vm10 = vcmp.eq.s32.totalorder %v315_v40, 2 }
   0xb   :  { %vm320_vm11 = vcmp.eq.s32.totalorder %v314_v36, 3  ;;  %v332_v48 = vsel %vm326_vm8, -10000.0, %v1323_v34  ;;  %vm328_vm12 = vcmp.eq.s32.totalorder %v316_v44, 2  ;;  %vm321_vm13 = vcmp.eq.s32.totalorder %v315_v40, 3  ;;  %v528_v36 = vld [vmem:[%s1662_s4 + $0x8] sm:$0xff] }
   0xc   :  { %v333_v52 = vsel %vm327_vm10, -10000.0, %v1323_v34  ;;  %vm322_vm14 = vcmp.eq.s32.totalorder %v316_v44, 3  ;;  %v334_v56 = vsel %vm328_vm12, -10000.0, %v1323_v34  ;;  %vm775_vm3 = vcmask 80896  }
   0xd   :  { %1208 = vmatpush3.bf16.xpose.msk.msra.mxu0 %vm1378_vm1, %v1203_v7 }
   0xe   :  { %1234 = vmatprep.subr.bf16.mxu0 %v1209_v12 }
   0xf   :  { %1220 = vmatpush3.bf16.xpose.msk.msra.mxu1 %vm1378_vm1, %v1215_v13 }
  0x10   :  { %1223 = vmatprep.subr.msk.bf16.mxu1 %vm1378_vm1, %v1221_v16 }
  0x14   :  { %1096 = vmatmul.mubr.msk.f32.vlgmr.msra.gmra.mrb[0].mxu0 %vm48_vm0, %v1430_v17 }
  0x15   :  { %1098 = vmatprep.mubr.msk.f32.mxu0 %vm48_vm0, %v30_v18  ;;  %1236 = vmatpush3.bf16.msra.mxu0 %v1209_v12 }
  0x16   :  { %1238 = vmatprep.subr.bf16.mxu0 %v1215_v13 }
  0x17   :  { %1226 = vmatpush3.bf16.xpose.msk.msra.mxu1 %vm1378_vm1, %v1221_v16 }
  0x18   :  { %1099 = vmatmul.mubr.msk.f32.gmra.mrb[2].mxu0 %vm48_vm0, %v1451_v21  ;;  %1229 = vmatprep.subr.msk.bf16.mxu1 %vm1378_vm1, %v1227_v23 }
  0x19   :  { %1101 = vmatprep.mubr.msk.f32.mxu0 %vm48_vm0, %v1456_v22  ;;  %1240 = vmatpush3.bf16.msra.mxu0 %v1215_v13 }
  0x1a   :  { %1242 = vmatprep.subr.bf16.mxu0 %v1221_v16 }
  0x1c   :  { %1102 = vmatmul.mubr.msk.f32.gmra.mrb[4].mxu0 %vm48_vm0, %v1465_v24 }
  0x1d   :  { %1244 = vmatpush3.bf16.msra.mxu0 %v1221_v16 }
  0x1e   :  { %1246 = vmatprep.subr.bf16.mxu0 %v1227_v23 }
  0x1f   :  { %1232 = vmatpush3.bf16.xpose.msk.msra.mxu1 %vm1378_vm1, %v1227_v23 }
  0x21   :  { %1248 = vmatpush3.bf16.msra.mxu0 %v1227_v23 }
  0xe7   :  { %v1097_v25 = vpop.f32.mrb[0].mxu0 }
  0xe8   :  { %v145_v26 = vpop.f32.mrb[1].mxu0 }
  0xe9   :  { %1120 = vmatprep.mubr.msk.f32.mxu1 %vm48_vm0, %v145_v26 }
  0xea   :  { %1121 = vmatmul.mubr.msk.f32.vlgmr.msra.gmra.mrb[0].mxu1 %vm48_vm0, %v1097_v25 }
  0xeb   :  { %v1100_v27 = vpop.f32.mrb[2].mxu0 }
  0xec   :  { %v155_v28 = vpop.f32.mrb[3].mxu0 }
  0xed   :  { %1123 = vmatprep.mubr.msk.f32.mxu1 %vm48_vm0, %v155_v28 }
  0xee   :  { %1124 = vmatmul.mubr.msk.f32.gmra.mrb[2].mxu1 %vm48_vm0, %v1100_v27 }
  0xef   :  { %v1103_v29 = vpop.f32.mrb[4].mxu0 }
  0xf0   :  { %v165_v30 = vpop.f32.mrb[5].mxu0 }
  0xf1   :  { %1126 = vmatprep.mubr.msk.f32.mxu1 %vm48_vm0, %v165_v30 }
  0xf2   :  { %1127 = vmatmul.mubr.msk.f32.gmra.mrb[4].mxu1 %vm48_vm0, %v1103_v29 }
  0xf3   :  { %1165 = vmatprep.mubr.msk.f32.mxu1 %vm48_vm0, %v30_v18 }
 0x1bd   :  { %v1122_v37 = vpop.f32.mrb[0].mxu1 }
 0x1be   :  { %v282_v38 = vpop.f32.mrb[1].mxu1  ;;  %v336_v46 = vsel %vm318_vm7, %v1122_v37, %v330_v39  ;;  %v530_v39 = vld [vmem:[%s1662_s4 + $0x18] sm:$0xff] }
 0x1bf   :  { %v335_v41 = vsel %vm317_vm4, %v282_v38, %v329_v35  ;;  %v345_v50 = vsel %vm341_vm5, %v336_v46, -inf  ;;  %v527_v35 = vld [vmem:[%s1662_s4] sm:$0xff]  ;;  %v529_v38 = vld [vmem:[%s1662_s4 + $0x10] sm:$0xff] }
 0x1c0   :  { %v342_v42 = vsel %vm341_vm5, %v335_v41, -inf  ;;  %v1249_v37 = vpack.c.bf16 %v528_v36, %v527_v35  ;;  %v1253_v40 = vpack.c.bf16 %v530_v39, %v529_v38 }
 0x1c1   :  { %343 = vmax.xlane.f32.xlu0 %v342_v42  ;;  %v1125_v45 = vpop.f32.mrb[2].mxu1 }
 0x1c2   :  { %v292_v47 = vpop.f32.mrb[3].mxu1  ;;  %v338_v54 = vsel %vm320_vm11, %v1125_v45, %v332_v48  ;;  %1250 = vmatprep.subr.bf16.mxu0 %v1249_v37  ;;  %1269 = vmatprep.subr.bf16.mxu1 %v1249_v37 }
 0x1c3   :  { %v337_v49 = vsel %vm319_vm9, %v292_v47, %v331_v43  ;;  %v351_v58 = vsel %vm341_vm5, %v338_v54, -inf  ;;  %1271 = vmatpush3.bf16.msra.mxu1 %v1249_v37 }
 0x1c4   :  { %v348_v51 = vsel %vm341_vm5, %v337_v49, -inf  ;;  %1270 = vmatprep.subr.bf16.mxu1 %v1253_v40 }
 0x1c5   :  { %346 = vmax.xlane.f32.xlu0 %v345_v50  ;;  %349 = vmax.xlane.f32.xlu1 %v348_v51  ;;  %v1128_v53 = vpop.f32.mrb[4].mxu1 }
 0x1c6   :  { %v302_v55 = vpop.f32.mrb[5].mxu1  ;;  %v340_v60 = vsel %vm322_vm14, %v1128_v53, %v334_v56  ;;  %v42_v56 = vld [vmem:[%s1663_s2] sm:$0xff]  ;;  %vm1324_vm14 = vmmov 1  }
 0x1c7   :  { %v339_v57 = vsel %vm321_vm13, %v302_v55, %v333_v52  ;;  %v357_v61 = vsel %vm341_vm5, %v340_v60, -inf  ;;  %1272 = vmatpush3.bf16.msra.mxu1 %v1253_v40  ;;  %vm860_vm13 = vcmask 1041408  }
 0x1c8   :  { %v354_v59 = vsel %vm341_vm5, %v339_v57, -inf }
 0x1c9   :  { %352 = vmax.xlane.f32.xlu1 %v351_v58  ;;  %355 = vmax.xlane.f32.xlu0 %v354_v59 }
 0x1ca   :  { %1166 = vmatmul.mubr.msk.f32.vlgmr.msra.gmra.mrb[6].mxu1 %vm48_vm0, %v1451_v21 }
 0x1cb   :  { %1168 = vmatprep.mubr.msk.f32.mxu1 %vm48_vm0, %v1456_v22 }
 0x1cd   :  { %358 = vmax.xlane.f32.xlu1 %v357_v61 }
 0x1ce   :  { %1169 = vmatmul.mubr.msk.f32.gmra.mrb[8].mxu1 %vm48_vm0, %v1465_v24 }
 0x24e   :  { %v344_v62 = vpop.xlane.xlu0 %343 }
 0x24f   :  { %v360_v63 = vsub.f32 %v335_v41, %v344_v62 }
 0x251   :  { %v366_v0 = vmul.f32 1.442695, %v360_v63 }
 0x252   :  { %v347_v1 = vpop.xlane.xlu0 %346  ;;  %v350_v3 = vpop.xlane.xlu1 %349 }
 0x253   :  { %1275 = vpow2.f32 %v366_v0  ;;  %v361_v4 = vsub.f32 %v336_v46, %v347_v1  ;;  %v362_v5 = vsub.f32 %v337_v49, %v350_v3 }
 0x255   :  { %v368_v7 = vmul.f32 1.442695, %v361_v4  ;;  %v370_v8 = vmul.f32 1.442695, %v362_v5  ;;  %v746_v5 = vld [vmem:[%s1665_s6 + $0x8] sm:$0xff] }
 0x256   :  { %v353_v9 = vpop.xlane.xlu1 %352  ;;  %v356_v10 = vpop.xlane.xlu0 %355  ;;  %vm758_vm15 = vcmp.eq.s32.totalorder %v746_v5, 2  ;;  %vm752_vm2 = vcmp.eq.s32.totalorder %v746_v5, 3 }
 0x257   :  { %1277 = vpow2.f32 %v368_v7  ;;  %v363_v11 = vsub.f32 %v338_v54, %v353_v9  ;;  %v364_v12 = vsub.f32 %v339_v57, %v356_v10  ;;  %v43_v57 = vld [vmem:[%s1663_s2 + $0x8] sm:$0x3]  ;;  %v745_v7 = vld [vmem:[%s1665_s6] sm:$0xff]  ;;  %v747_v9 = vld [vmem:[%s1665_s6 + $0x10] sm:$0xff]  ;;  %v764_v10 = vsel %vm758_vm15, -10000.0, %v1323_v34 }
 0x258   :  { %1279 = vpow2.f32 %v370_v8  ;;  %v1552_v58 = vpack.c.bf16 %v43_v57, %v42_v56  ;;  %v748_v8 = vld [vmem:[%s1665_s6 + $0x18] sm:$0xff]  ;;  %vm751_vm4 = vcmp.eq.s32.totalorder %v745_v7, 3  ;;  %vm759_vm6 = vcmp.eq.s32.totalorder %v747_v9, 2  ;;  %vm1264_vm15 = vmpackc.low %vm860_vm13, %vm1324_vm14 }
 0x259   :  { %v372_v13 = vmul.f32 1.442695, %v363_v11  ;;  %v374_v14 = vmul.f32 1.442695, %v364_v12  ;;  %vm754_vm7 = vcmp.eq.s32.totalorder %v748_v8, 3  ;;  %vm753_vm8 = vcmp.eq.s32.totalorder %v747_v9, 3 }
 0x25a   :  { %v359_v15 = vpop.xlane.xlu1 %358  ;;  %1259 = vmatprep.subr.msk.bf16.mxu1 %vm1378_vm1, %v1552_v58 }
 0x25b   :  { %1281 = vpow2.f32 %v372_v13  ;;  %v365_v16 = vsub.f32 %v340_v60, %v359_v15  ;;  %1262 = vmatpush3.bf16.xpose.msk.msra.mxu1 %vm1378_vm1, %v1552_v58  ;;  %vm757_vm1 = vcmp.eq.s32.totalorder %v745_v7, 2  ;;  %v750_v13 = vld [vmem:[%s1665_s6 + $0x28] sm:$0xff] }
 0x25c   :  { %1283 = vpow2.f32 %v374_v14  ;;  %v763_v11 = vsel %vm757_vm1, -10000.0, %v1323_v34  ;;  %vm762_vm9 = vcmp.eq.s32.totalorder %v750_v13, 2  ;;  %vm756_vm11 = vcmp.eq.s32.totalorder %v750_v13, 3 }
 0x25d   :  { %v1276_v18 = vpop.eup %1275  ;;  %v376_v19 = vmul.f32 1.442695, %v365_v16  ;;  %v749_v16 = vld [vmem:[%s1665_s6 + $0x20] sm:$0xff] }
 0x25e   :  { %v378_v20 = vsel %vm341_vm5, %v1276_v18, 0.0  ;;  %vm761_vm10 = vcmp.eq.s32.totalorder %v749_v16, 2  ;;  %vm755_vm12 = vcmp.eq.s32.totalorder %v749_v16, 3 }
 0x25f   :  { %1285 = vpow2.f32 %v376_v19  ;;  %379 = vadd.xlane.f32.xlu0 %v378_v20 }
 0x261   :  { %v1278_v23 = vpop.eup %1277 }
 0x262   :  { %v1280_v25 = vpop.eup %1279  ;;  %v381_v26 = vsel %vm341_vm5, %v1278_v23, 0.0 }
 0x263   :  { %382 = vadd.xlane.f32.xlu1 %v381_v26  ;;  %v384_v27 = vsel %vm341_vm5, %v1280_v25, 0.0 }
 0x264   :  { %385 = vadd.xlane.f32.xlu0 %v384_v27 }
 0x265   :  { %v1282_v28 = vpop.eup %1281 }
 0x266   :  { %v1284_v29 = vpop.eup %1283  ;;  %v387_v30 = vsel %vm341_vm5, %v1282_v28, 0.0 }
 0x267   :  { %388 = vadd.xlane.f32.xlu1 %v387_v30  ;;  %v390_v31 = vsel %vm341_vm5, %v1284_v29, 0.0 }
 0x268   :  { %391 = vadd.xlane.f32.xlu0 %v390_v31  ;;  %v768_v31 = vsel %vm762_vm9, -10000.0, %v1323_v34 }
 0x269   :  { %v1286_v32 = vpop.eup %1285 }
 0x26a   :  { %v393_v33 = vsel %vm341_vm5, %v1286_v32, 0.0 }
 0x26b   :  { %394 = vadd.xlane.f32.xlu1 %v393_v33  ;;  %v767_v33 = vsel %vm761_vm10, -10000.0, %v1323_v34 }
 0x2ec   :  { %v380_v41 = vpop.xlane.xlu0 %379 }
 0x2ed   :  { %1287 = vrcp.f32 %v380_v41 }
 0x2f0   :  { %v383_v42 = vpop.xlane.xlu1 %382 }
 0x2f1   :  { %1289 = vrcp.f32 %v383_v42  ;;  %v386_v43 = vpop.xlane.xlu0 %385 }
 0x2f2   :  { %1291 = vrcp.f32 %v386_v43 }
 0x2f4   :  { %v389_v44 = vpop.xlane.xlu1 %388 }
 0x2f5   :  { %1293 = vrcp.f32 %v389_v44  ;;  %v392_v45 = vpop.xlane.xlu0 %391 }
 0x2f6   :  { %1295 = vrcp.f32 %v392_v45 }
 0x2f7   :  { %v1288_v46 = vpop.eup %1287 }
 0x2f8   :  { %v395_v47 = vpop.xlane.xlu1 %394  ;;  %v397_v48 = vmul.f32 %v1288_v46, %v1276_v18 }
 0x2f9   :  { %1297 = vrcp.f32 %v395_v47 }
 0x2fa   :  { %1145 = vmatprep.mubr.msk.f32.mxu0 %vm341_vm5, %v397_v48 }
 0x2fb   :  { %v1290_v21 = vpop.eup %1289 }
 0x2fc   :  { %v1292_v22 = vpop.eup %1291  ;;  %v399_v49 = vmul.f32 %v1290_v21, %v1278_v23 }
 0x2fd   :  { %v401_v24 = vmul.f32 %v1292_v22, %v1280_v25  ;;  %v765_v25 = vsel %vm759_vm6, -10000.0, %v1323_v34 }
 0x2fe   :  { %1146 = vmatmul.mubr.msk.f32.vlgmr.msra.gmra.mrb[6].mxu0 %vm341_vm5, %v399_v49 }
 0x2ff   :  { %v1294_v50 = vpop.eup %1293  ;;  %1252 = vmatpush3.bf16.msra.mxu0 %v1249_v37  ;;  %1148 = vmatprep.mubr.msk.f32.mxu0 %vm341_vm5, %v401_v24 }
 0x300   :  { %v1296_v51 = vpop.eup %1295  ;;  %v403_v52 = vmul.f32 %v1294_v50, %v1282_v28  ;;  %1254 = vmatprep.subr.bf16.mxu0 %v1253_v40 }
 0x301   :  { %v405_v53 = vmul.f32 %v1296_v51, %v1284_v29 }
 0x302   :  { %1149 = vmatmul.mubr.msk.f32.gmra.mrb[8].mxu0 %vm341_vm5, %v403_v52 }
 0x303   :  { %v1298_v54 = vpop.eup %1297  ;;  %1151 = vmatprep.mubr.msk.f32.mxu0 %vm341_vm5, %v405_v53  ;;  %1256 = vmatpush3.bf16.msra.mxu0 %v1253_v40 }
 0x304   :  { %v407_v55 = vmul.f32 %v1298_v54, %v1286_v32  ;;  %1265 = vmatprep.subr.msk.bf16.mxu0 %vm1264_vm15, %v1552_v58 }
 0x306   :  { %1152 = vmatmul.mubr.msk.f32.gmra.mrb[10].mxu0 %vm341_vm5, %v407_v55  ;;  %vm760_vm5 = vcmp.eq.s32.totalorder %v748_v8, 2 }
 0x307   :  { %1162 = vmatprep.mubr.msk.f32.mxu0 %vm48_vm0, %v1391_v6  ;;  %v1167_v6 = vpop.f32.mrb[6].mxu1  ;;  %v766_v20 = vsel %vm760_vm5, -10000.0, %v1323_v34 }
 0x30a   :  { %1163 = vmatmul.mubr.msk.f32.vlgmr.msra.gmra.mrb[12].mxu0 %vm48_vm0, %v1430_v17  ;;  %v607_v17 = vpop.f32.mrb[7].mxu1 }
 0x30b   :  { %v1170_v59 = vpop.f32.mrb[8].mxu1  ;;  %1268 = vmatpush3.bf16.msk.msra.mxu0 %vm1264_vm15, %v1552_v58 }
 0x30c   :  { %v617_v60 = vpop.f32.mrb[9].mxu1 }
 0x3d1   :  { %v1147_v61 = vpop.f32.mrb[6].mxu0 }
 0x3d2   :  { %522 = vst.msk [vmem:[%s1664_s7 + $0x8] sm:$0xff] %vm48_vm0, %v1147_v61  ;;  %v492_v62 = vpop.f32.mrb[7].mxu0 }
 0x3d3   :  { %521 = vst.msk [vmem:[%s1664_s7] sm:$0xff] %vm48_vm0, %v492_v62 }
 0x3d5   :  { %v1150_v63 = vpop.f32.mrb[8].mxu0 }
 0x3d6   :  { %524 = vst.msk [vmem:[%s1664_s7 + $0x18] sm:$0xff] %vm48_vm0, %v1150_v63  ;;  %v502_v2 = vpop.f32.mrb[9].mxu0 }
 0x3d7   :  { %523 = vst.msk [vmem:[%s1664_s7 + $0x10] sm:$0xff] %vm48_vm0, %v502_v2 }
 0x3d9   :  { %v1153_v0 = vpop.f32.mrb[10].mxu0 }
 0x3da   :  { %526 = vst.msk [vmem:[%s1664_s7 + $0x28] sm:$0xff] %vm48_vm0, %v1153_v0  ;;  %v512_v1 = vpop.f32.mrb[11].mxu0 }
 0x3db   :  { %525 = vst.msk [vmem:[%s1664_s7 + $0x20] sm:$0xff] %vm48_vm0, %v512_v1 }
 0x3dd   :  { %v1164_v3 = vpop.f32.mrb[12].mxu0 }
 0x3de   :  { %v597_v4 = vpop.f32.mrb[13].mxu0 }
 0x3df   :  { %1175 = vmatprep.mubr.msk.f32.mxu1 %vm48_vm0, %v597_v4 }
 0x3e0   :  { %1176 = vmatmul.mubr.msk.f32.vlgmr.msra.gmra.mrb[10].mxu1 %vm48_vm0, %v1164_v3 }
 0x3e1   :  { %1178 = vmatprep.mubr.msk.f32.mxu1 %vm48_vm0, %v607_v17 }
 0x3e4   :  { %1179 = vmatmul.mubr.msk.f32.gmra.mrb[12].mxu1 %vm48_vm0, %v1167_v6 }
 0x3e5   :  { %1181 = vmatprep.mubr.msk.f32.mxu1 %vm48_vm0, %v617_v60 }
 0x3e8   :  { %1182 = vmatmul.mubr.msk.f32.gmra.mrb[14].mxu1 %vm48_vm0, %v1170_v59 }
 0x4b3   :  { %v1177_v12 = vpop.f32.mrb[10].mxu1 }
 0x4b4   :  { %v716_v14 = vpop.f32.mrb[11].mxu1  ;;  %v770_v15 = vsel %vm752_vm2, %v1177_v12, %v764_v10 }
 0x4b5   :  { %v779_v18 = vsel %vm775_vm3, %v770_v15, -inf  ;;  %v769_v19 = vsel %vm751_vm4, %v716_v14, %v763_v11 }
 0x4b6   :  { %780 = vmax.xlane.f32.xlu1 %v779_v18  ;;  %v776_v23 = vsel %vm775_vm3, %v769_v19, -inf }
 0x4b7   :  { %777 = vmax.xlane.f32.xlu0 %v776_v23  ;;  %v1180_v26 = vpop.f32.mrb[12].mxu1 }
 0x4b8   :  { %v726_v27 = vpop.f32.mrb[13].mxu1  ;;  %v772_v28 = vsel %vm754_vm7, %v1180_v26, %v766_v20 }
 0x4b9   :  { %v785_v29 = vsel %vm775_vm3, %v772_v28, -inf  ;;  %v771_v30 = vsel %vm753_vm8, %v726_v27, %v765_v25 }
 0x4ba   :  { %786 = vmax.xlane.f32.xlu1 %v785_v29  ;;  %v782_v32 = vsel %vm775_vm3, %v771_v30, -inf }
 0x4bb   :  { %783 = vmax.xlane.f32.xlu0 %v782_v32  ;;  %v1183_v35 = vpop.f32.mrb[14].mxu1 }
 0x4bc   :  { %v736_v36 = vpop.f32.mrb[15].mxu1  ;;  %v774_v37 = vsel %vm756_vm11, %v1183_v35, %v768_v31 }
 0x4bd   :  { %v791_v38 = vsel %vm775_vm3, %v774_v37, -inf  ;;  %v773_v39 = vsel %vm755_vm12, %v736_v36, %v767_v33 }
 0x4be   :  { %792 = vmax.xlane.f32.xlu1 %v791_v38  ;;  %v788_v40 = vsel %vm775_vm3, %v773_v39, -inf }
 0x4bf   :  { %789 = vmax.xlane.f32.xlu0 %v788_v40 }
 0x543   :  { %v781_v41 = vpop.xlane.xlu1 %780 }
 0x544   :  { %v795_v42 = vsub.f32 %v770_v15, %v781_v41  ;;  %v778_v43 = vpop.xlane.xlu0 %777 }
 0x545   :  { %v794_v44 = vsub.f32 %v769_v19, %v778_v43 }
 0x546   :  { %v802_v45 = vmul.f32 1.442695, %v795_v42 }
 0x547   :  { %v800_v46 = vmul.f32 1.442695, %v794_v44  ;;  %v787_v47 = vpop.xlane.xlu1 %786 }
 0x548   :  { %1299 = vpow2.f32 %v802_v45  ;;  %v797_v34 = vsub.f32 %v772_v28, %v787_v47  ;;  %v784_v48 = vpop.xlane.xlu0 %783 }
 0x549   :  { %1301 = vpow2.f32 %v800_v46  ;;  %v796_v21 = vsub.f32 %v771_v30, %v784_v48 }
 0x54a   :  { %v806_v22 = vmul.f32 1.442695, %v797_v34 }
 0x54b   :  { %v804_v49 = vmul.f32 1.442695, %v796_v21  ;;  %v793_v24 = vpop.xlane.xlu1 %792 }
 0x54c   :  { %1303 = vpow2.f32 %v806_v22  ;;  %v799_v50 = vsub.f32 %v774_v37, %v793_v24  ;;  %v790_v51 = vpop.xlane.xlu0 %789 }
 0x54d   :  { %1305 = vpow2.f32 %v804_v49  ;;  %v798_v52 = vsub.f32 %v773_v39, %v790_v51 }
 0x54e   :  { %v810_v53 = vmul.f32 1.442695, %v799_v50 }
 0x54f   :  { %v808_v54 = vmul.f32 1.442695, %v798_v52 }
 0x550   :  { %1307 = vpow2.f32 %v810_v53 }
 0x551   :  { %1309 = vpow2.f32 %v808_v54 }
 0x552   :  { %v1300_v55 = vpop.eup %1299 }
 0x553   :  { %v1302_v56 = vpop.eup %1301  ;;  %v815_v57 = vsel %vm775_vm3, %v1300_v55, 0.0 }
 0x554   :  { %816 = vadd.xlane.f32.xlu1 %v815_v57  ;;  %v812_v6 = vsel %vm775_vm3, %v1302_v56, 0.0 }
 0x555   :  { %813 = vadd.xlane.f32.xlu0 %v812_v6 }
 0x556   :  { %v1304_v17 = vpop.eup %1303 }
 0x557   :  { %v1306_v59 = vpop.eup %1305  ;;  %v821_v60 = vsel %vm775_vm3, %v1304_v17, 0.0 }
 0x558   :  { %822 = vadd.xlane.f32.xlu1 %v821_v60  ;;  %v818_v61 = vsel %vm775_vm3, %v1306_v59, 0.0 }
 0x559   :  { %819 = vadd.xlane.f32.xlu0 %v818_v61 }
 0x55a   :  { %v1308_v62 = vpop.eup %1307 }
 0x55b   :  { %v1310_v63 = vpop.eup %1309  ;;  %v827_v2 = vsel %vm775_vm3, %v1308_v62, 0.0 }
 0x55c   :  { %828 = vadd.xlane.f32.xlu1 %v827_v2  ;;  %v824_v0 = vsel %vm775_vm3, %v1310_v63, 0.0 }
 0x55d   :  { %825 = vadd.xlane.f32.xlu0 %v824_v0 }
 0x5e1   :  { %v817_v1 = vpop.xlane.xlu1 %816 }
 0x5e2   :  { %1311 = vrcp.f32 %v817_v1  ;;  %v814_v3 = vpop.xlane.xlu0 %813 }
 0x5e3   :  { %1313 = vrcp.f32 %v814_v3 }
 0x5e5   :  { %v823_v4 = vpop.xlane.xlu1 %822 }
 0x5e6   :  { %1315 = vrcp.f32 %v823_v4  ;;  %v820_v5 = vpop.xlane.xlu0 %819 }
 0x5e7   :  { %1317 = vrcp.f32 %v820_v5 }
 0x5e9   :  { %v829_v7 = vpop.xlane.xlu1 %828 }
 0x5ea   :  { %1319 = vrcp.f32 %v829_v7  ;;  %v826_v8 = vpop.xlane.xlu0 %825 }
 0x5eb   :  { %1321 = vrcp.f32 %v826_v8 }
 0x5ec   :  { %v1312_v9 = vpop.eup %1311 }
 0x5ed   :  { %v1314_v10 = vpop.eup %1313  ;;  %v833_v12 = vmul.f32 %v1312_v9, %v1300_v55 }
 0x5ee   :  { %v831_v11 = vmul.f32 %v1314_v10, %v1302_v56 }
 0x5f0   :  { %v1316_v13 = vpop.eup %1315  ;;  %1188 = vmatprep.mubr.msk.f32.mxu0 %vm775_vm3, %v831_v11 }
 0x5f1   :  { %v1318_v58 = vpop.eup %1317  ;;  %1189 = vmatmul.mubr.msk.f32.vlgmr.msra.gmra.mrb[14].mxu0 %vm775_vm3, %v833_v12  ;;  %v837_v15 = vmul.f32 %v1316_v13, %v1304_v17 }
 0x5f2   :  { %v835_v14 = vmul.f32 %v1318_v58, %v1306_v59 }
 0x5f4   :  { %v1320_v16 = vpop.eup %1319  ;;  %1191 = vmatprep.mubr.msk.f32.mxu0 %vm775_vm3, %v835_v14 }
 0x5f5   :  { %v1322_v18 = vpop.eup %1321  ;;  %1192 = vmatmul.mubr.msk.f32.gmra.mrb[16].mxu0 %vm775_vm3, %v837_v15  ;;  %v841_v20 = vmul.f32 %v1320_v16, %v1308_v62 }
 0x5f6   :  { %v839_v19 = vmul.f32 %v1322_v18, %v1310_v63 }
 0x5f8   :  { %1194 = vmatprep.mubr.msk.f32.mxu0 %vm775_vm3, %v839_v19 }
 0x5f9   :  { %1195 = vmatmul.mubr.msk.f32.gmra.mrb[18].mxu0 %vm775_vm3, %v841_v20 }
 0x6c4   :  { %v1190_v23 = vpop.f32.mrb[14].mxu0 }
 0x6c5   :  { %959 = vst.msk [vmem:[%s1666_s8 + $0x8] sm:$0xff] %vm48_vm0, %v1190_v23  ;;  %v929_v25 = vpop.f32.mrb[15].mxu0 }
 0x6c6   :  { %958 = vst.msk [vmem:[%s1666_s8] sm:$0xff] %vm48_vm0, %v929_v25 }
 0x6c8   :  { %v1193_v26 = vpop.f32.mrb[16].mxu0 }
 0x6c9   :  { %961 = vst.msk [vmem:[%s1666_s8 + $0x18] sm:$0xff] %vm48_vm0, %v1193_v26  ;;  %v939_v27 = vpop.f32.mrb[17].mxu0 }
 0x6ca   :  { %960 = vst.msk [vmem:[%s1666_s8 + $0x10] sm:$0xff] %vm48_vm0, %v939_v27 }
 0x6cc   :  { %v1196_v28 = vpop.f32.mrb[18].mxu0 }
 0x6cd   :  { %963 = vst.msk [vmem:[%s1666_s8 + $0x28] sm:$0xff] %vm48_vm0, %v1196_v28  ;;  %v949_v29 = vpop.f32.mrb[19].mxu0 }
 0x6ce   :  { %962 = vst.msk [vmem:[%s1666_s8 + $0x20] sm:$0xff] %vm48_vm0, %v949_v29 }

// kernel: attention_qa_forward.3
= control target key start
LH: loop header
LB: loop body
LE: loop exit
PB: predicated region body
PF: predicated region fallthrough
CT: control target
= control target key end

     0   :  { %v4502_v0 = vmov 0.0|0.0   ;;  %vm4503_vm0 = vmmov 0   ;;  %v4504_v6 = vmov 0.0   ;;  %vm162_vm1 = vcmask 785408   ;;  %s4505_s15 = smov 96   ;;  %s4506_s16 = smov 16   ;;  %s5322_s2 = inlined_call_operand.vmem [shape: f32[96,64], index: 2, kind: input, shape index: {}]   ;;  %s5323_s3 = inlined_call_operand.vmem [shape: f32[16,64], index: 3, kind: input, shape index: {}]   ;;  %s5324_s0 = inlined_call_operand.vmem [shape: f32[8,6,96], index: 0, kind: input, shape index: {}]   ;;  %s5325_s4 = inlined_call_operand.vmem [shape: f32[1,64], index: 4, kind: input, shape index: {}]   ;;  %s5326_s6 = inlined_call_operand.vmem [shape: f32[16,64], index: 6, kind: input, shape index: {}]   ;;  %s5327_s5 = inlined_call_operand.vmem [shape: f32[96,64], index: 5, kind: input, shape index: {}]   ;;  %s5328_s7 = inlined_call_operand.vmem [shape: f32[1,64], index: 7, kind: input, shape index: {}]   ;;  %s5329_s1 = inlined_call_operand.vmem [shape: f32[8,6,1], index: 1, kind: input, shape index: {}]   ;;  %s5330_s8 = inlined_call_operand.vmem [shape: f32[32,32], index: 8, kind: input, shape index: {}]   ;;  %s5331_s11 = inlined_call_operand.<no memory space> [shape: f32[1,1], index: 11, kind: input, shape index: {}]   ;;  %s5332_s9 = inlined_call_operand.vmem [shape: f32[1,32], index: 9, kind: input, shape index: {}]   ;;  %s5333_s10 = inlined_call_operand.vmem [shape: f32[1,32], index: 10, kind: input, shape index: {}]   ;;  %s5334_s12 = inlined_call_operand.vmem [shape: f32[8,1], index: 12, kind: output, shape index: {}]  }
   0x1   :  { %4021 = vmatprep.subr.bf16.mxu1 %v4502_v0  ;;  %v43_v1 = vld [vmem:[%s5322_s2] sm:$0xff]  ;;  %v44_v2 = vld [vmem:[%s5322_s2 + $0x8] sm:$0xff]  ;;  %v45_v3 = vld [vmem:[%s5322_s2 + $0x10] sm:$0xff]  ;;  %4018 = vmatprep.subr.bf16.mxu0 %v4502_v0  ;;  %s4507_s17 = smov 32   ;;  %s4508_s18 = smov 80   ;;  %vm88_vm2 = vcmask 130048  }
   0x2   :  { %v4586_v4 = vpack.c.bf16 %v44_v2, %v43_v1  ;;  %v46_v5 = vld [vmem:[%s5322_s2 + $0x18] sm:$0xff]  ;;  %3467 = vmatprep.mubr.msk.f32.mxu0 %vm4503_vm0, %v4504_v6  ;;  %3494 = vmatprep.mubr.msk.f32.mxu1 %vm4503_vm0, %v4504_v6  ;;  %v55_v8 = vld [vmem:[%s5323_s3] sm:$0xff]  ;;  %v56_v9 = vld [vmem:[%s5323_s3 + $0x8] sm:$0xff]  ;;  %vm2853_vm15 = vcmask 259072  }
   0x3   :  { %v4596_v7 = vpack.c.bf16 %v46_v5, %v45_v3  ;;  %v47_v10 = vld [vmem:[%s5322_s2 + $0x20] sm:$0xff]  ;;  %v48_v11 = vld [vmem:[%s5322_s2 + $0x28] sm:$0xff]  ;;  %v4611_v12 = vpack.c.bf16 %v56_v9, %v55_v8  ;;  %v49_v14 = vld [vmem:[%s5322_s2 + $0x30] sm:$0xff] }
   0x4   :  { %4023 = vmatpush3.bf16.msra.mxu1 %v4586_v4  ;;  %v4615_v13 = vpack.c.bf16 %v48_v11, %v47_v10  ;;  %v50_v15 = vld [vmem:[%s5322_s2 + $0x38] sm:$0xff]  ;;  %v51_v17 = vld [vmem:[%s5322_s2 + $0x40] sm:$0xff]  ;;  %v52_v18 = vld [vmem:[%s5322_s2 + $0x48] sm:$0xff] }
   0x5   :  { %4024 = vmatprep.subr.bf16.mxu1 %v4502_v0  ;;  %4020 = vmatpush3.bf16.msra.mxu0 %v4611_v12  ;;  %v4630_v16 = vpack.c.bf16 %v50_v15, %v49_v14  ;;  %v4641_v19 = vpack.c.bf16 %v52_v18, %v51_v17  ;;  %v53_v20 = vld [vmem:[%s5322_s2 + $0x50] sm:$0xff]  ;;  %v54_v21 = vld [vmem:[%s5322_s2 + $0x58] sm:$0xff]  ;;  %v73_v23 = vld [vmem:[%s5324_s0] sm:$0x3f] }
   0x6   :  { %4039 = vmatprep.subr.bf16.mxu0 %v4502_v0  ;;  %v4651_v22 = vpack.c.bf16 %v54_v21, %v53_v20  ;;  %v4667_v26 = vld [vmem:[%s5325_s4] ss:$0 sm:$0xff]  ;;  %v3136_v45 = vld [vmem:[%s5324_s0 + $0x8] sm:$0x3f]  ;;  %v3137_v3 = vld [vmem:[%s5324_s0 + $0x10] sm:$0x3f] }
   0x8   :  { %4026 = vmatpush3.bf16.msra.mxu1 %v4596_v7  ;;  %3468 = vmatmul.mubr.f32.vlgmr.msra.gmra.mrb[0].mxu0 %v4504_v6 }
   0x9   :  { %4027 = vmatprep.subr.bf16.mxu1 %v4502_v0  ;;  %4041 = vmatpush3.bf16.msra.mxu0 %v4611_v12 }
   0xa   :  { %3501 = vmatprep.mubr.msk.f32.mxu0 %vm4503_vm0, %v4504_v6  ;;  %4042 = vmatprep.subr.bf16.mxu0 %v4502_v0 }
   0xc   :  { %4029 = vmatpush3.bf16.msra.mxu1 %v4615_v13 }
   0xd   :  { %4030 = vmatprep.subr.bf16.mxu1 %v4502_v0 }
  0x10   :  { %4032 = vmatpush3.bf16.msra.mxu1 %v4630_v16 }
  0x11   :  { %4033 = vmatprep.subr.bf16.mxu1 %v4502_v0 }
  0x14   :  { %4035 = vmatpush3.bf16.msra.mxu1 %v4641_v19 }
  0x15   :  { %4036 = vmatprep.subr.bf16.mxu1 %v4502_v0 }
  0x18   :  { %4038 = vmatpush3.bf16.msra.mxu1 %v4651_v22 }
  0x19   :  { %4060 = vmatprep.subr.bf16.mxu1 %v4502_v0 }
  0x1b   :  { %3495 = vmatmul.mubr.msk.f32.vlgmr.msra.gmra.mrb[0].mxu1 %vm162_vm1, %v73_v23 }
  0x1c   :  { %4062 = vmatpush3.bf16.msra.mxu1 %v4611_v12  ;;  %3535 = vmatprep.mubr.msk.f32.mxu1 %vm4503_vm0, %v4504_v6 }
  0x1d   :  { %4063 = vmatprep.subr.bf16.mxu1 %v4502_v0 }
  0xdb   :  { %v158_v24 = vpop.f32.mrb[0].mxu0 }
  0xdc   :  { %v3469_v25 = vpop.f32.mrb[1].mxu0 }
  0xee   :  { %v232_v27 = vpop.f32.mrb[0].mxu1 }
  0xef   :  { %v233_v28 = vadd.f32 %v232_v27, %v158_v24  ;;  %v3496_v29 = vpop.f32.mrb[1].mxu1 }
  0xf1   :  { %v242_v30 = vadd.f32 %v4667_v26, %v233_v28 }
  0xf3   :  { %4370 = vtanh.f32 %v242_v30  ;;  %v3145_v32 = vmul.f32 -1.442695, %v242_v30 }
  0xf5   :  { %4372 = vpow2.f32 %v3145_v32 }
  0xfd   :  { %v4371_v31 = vpop.eup %4370 }
  0xfe   :  { %252 = vrot.lane.b32.xlu0 %v4371_v31, %s4505_s15 }
  0xff   :  { %v4373_v33 = vpop.eup %4372 }
 0x100   :  { %v246_v34 = vadd.f32 1.0, %v4373_v33  ;;  %v4756_v33 = vld [vmem:[%s5324_s0 + $0x18] sm:$0x3f] }
 0x102   :  { %4374 = vrcp.f32 %v246_v34 }
 0x10c   :  { %v4375_v35 = vpop.eup %4374 }
 0x10d   :  { %v250_v38 = vmul.f32 0.0, %v4375_v35 }
 0x170   :  { %v253_v36 = vpop.permute.xlu0 %252 }
 0x171   :  { %v255_v37 = vmul.f32 %v4375_v35, %v253_v36 }
 0x173   :  { %257 = vrot.lane.b32.xlu0 %v255_v37, %s4506_s16 }
 0x1e5   :  { %v258_v39 = vpop.permute.xlu0 %257 }
 0x1e6   :  { %v260_v40 = vadd.f32 %v258_v39, %v250_v38 }
 0x1e8   :  { %4376 = vtanh.f32 %v260_v40 }
 0x1f2   :  { %v4377_v41 = vpop.eup %4376 }
 0x1f3   :  { %263 = vrot.lane.b32.xlu1 %v4377_v41, %s4507_s17 }
 0x265   :  { %v264_v42 = vpop.permute.xlu1 %263 }
 0x266   :  { %v266_v43 = vmul.f32 %v4375_v35, %v264_v42 }
 0x268   :  { %268 = vrot.lane.b32.xlu1 %v266_v43, %s4508_s18 }
 0x2da   :  { %v4674_v44 = vpop.permute.xlu1 %268 }
 0x2db   :  { %3502 = vmatmul.mubr.msk.f32.vlgmr.msra.gmra.mrb[2].mxu0 %vm88_vm2, %v4674_v44 }
 0x2dc   :  { %4044 = vmatpush3.bf16.msra.mxu0 %v4586_v4  ;;  %3528 = vmatprep.mubr.msk.f32.mxu0 %vm4503_vm0, %v4504_v6 }
 0x2dd   :  { %4045 = vmatprep.subr.bf16.mxu0 %v4502_v0 }
 0x2e0   :  { %4047 = vmatpush3.bf16.msra.mxu0 %v4596_v7 }
 0x2e1   :  { %4048 = vmatprep.subr.bf16.mxu0 %v4502_v0 }
 0x2e4   :  { %4050 = vmatpush3.bf16.msra.mxu0 %v4615_v13 }
 0x2e5   :  { %4051 = vmatprep.subr.bf16.mxu0 %v4502_v0 }
 0x2e8   :  { %4053 = vmatpush3.bf16.msra.mxu0 %v4630_v16 }
 0x2e9   :  { %4054 = vmatprep.subr.bf16.mxu0 %v4502_v0 }
 0x2ec   :  { %4056 = vmatpush3.bf16.msra.mxu0 %v4641_v19 }
 0x2ed   :  { %4057 = vmatprep.subr.bf16.mxu0 %v4502_v0 }
 0x2f0   :  { %4059 = vmatpush3.bf16.msra.mxu0 %v4651_v22 }
 0x2f1   :  { %4081 = vmatprep.subr.bf16.mxu0 %v4502_v0 }
 0x2f3   :  { %3529 = vmatmul.mubr.msk.f32.vlgmr.msra.gmra.mrb[4].mxu0 %vm162_vm1, %v3136_v45 }
 0x2f4   :  { %4083 = vmatpush3.bf16.msra.mxu0 %v4611_v12  ;;  %3569 = vmatprep.mubr.msk.f32.mxu0 %vm4503_vm0, %v4504_v6 }
 0x2f5   :  { %4084 = vmatprep.subr.bf16.mxu0 %v4502_v0 }
 0x3ae   :  { %v338_v46 = vpop.f32.mrb[2].mxu0 }
 0x3af   :  { %v3503_v47 = vpop.f32.mrb[3].mxu0 }
 0x3c6   :  { %v411_v48 = vpop.f32.mrb[4].mxu0 }
 0x3c7   :  { %v412_v49 = vadd.f32 %v411_v48, %v338_v46  ;;  %v3530_v50 = vpop.f32.mrb[5].mxu0 }
 0x3c9   :  { %v415_v51 = vadd.f32 %v4667_v26, %v412_v49 }
 0x3cb   :  { %4378 = vtanh.f32 %v415_v51  ;;  %v3148_v53 = vmul.f32 -1.442695, %v415_v51 }
 0x3cd   :  { %4380 = vpow2.f32 %v3148_v53 }
 0x3d5   :  { %v4379_v52 = vpop.eup %4378 }
 0x3d6   :  { %425 = vrot.lane.b32.xlu0 %v4379_v52, %s4505_s15 }
 0x3d7   :  { %v4381_v54 = vpop.eup %4380 }
 0x3d8   :  { %v419_v55 = vadd.f32 1.0, %v4381_v54 }
 0x3da   :  { %4382 = vrcp.f32 %v419_v55  ;;  %v4790_v55 = vld [vmem:[%s5324_s0 + $0x20] sm:$0x3f] }
 0x3e4   :  { %v4383_v56 = vpop.eup %4382 }
 0x3e5   :  { %v423_v59 = vmul.f32 %v4383_v56, %v260_v40 }
 0x448   :  { %v426_v57 = vpop.permute.xlu0 %425 }
 0x449   :  { %v428_v58 = vmul.f32 %v4383_v56, %v426_v57 }
 0x44b   :  { %430 = vrot.lane.b32.xlu1 %v428_v58, %s4506_s16 }
 0x4bd   :  { %v431_v60 = vpop.permute.xlu1 %430 }
 0x4be   :  { %v433_v61 = vadd.f32 %v431_v60, %v423_v59 }
 0x4c0   :  { %4384 = vtanh.f32 %v433_v61 }
 0x4ca   :  { %v4385_v62 = vpop.eup %4384 }
 0x4cb   :  { %436 = vrot.lane.b32.xlu0 %v4385_v62, %s4507_s17 }
 0x53d   :  { %v437_v63 = vpop.permute.xlu0 %436 }
 0x53e   :  { %v439_v1 = vmul.f32 %v4383_v56, %v437_v63 }
 0x540   :  { %441 = vrot.lane.b32.xlu1 %v439_v1, %s4508_s18 }
 0x5b2   :  { %v4705_v2 = vpop.permute.xlu1 %441 }
 0x5b3   :  { %3536 = vmatmul.mubr.msk.f32.vlgmr.msra.gmra.mrb[2].mxu1 %vm88_vm2, %v4705_v2 }
 0x5b4   :  { %4065 = vmatpush3.bf16.msra.mxu1 %v4586_v4  ;;  %3562 = vmatprep.mubr.msk.f32.mxu1 %vm4503_vm0, %v4504_v6 }
 0x5b5   :  { %4066 = vmatprep.subr.bf16.mxu1 %v4502_v0 }
 0x5b8   :  { %4068 = vmatpush3.bf16.msra.mxu1 %v4596_v7 }
 0x5b9   :  { %4069 = vmatprep.subr.bf16.mxu1 %v4502_v0 }
 0x5bc   :  { %4071 = vmatpush3.bf16.msra.mxu1 %v4615_v13 }
 0x5bd   :  { %4072 = vmatprep.subr.bf16.mxu1 %v4502_v0 }
 0x5c0   :  { %4074 = vmatpush3.bf16.msra.mxu1 %v4630_v16 }
 0x5c1   :  { %4075 = vmatprep.subr.bf16.mxu1 %v4502_v0 }
 0x5c4   :  { %4077 = vmatpush3.bf16.msra.mxu1 %v4641_v19 }
 0x5c5   :  { %4078 = vmatprep.subr.bf16.mxu1 %v4502_v0 }
 0x5c8   :  { %4080 = vmatpush3.bf16.msra.mxu1 %v4651_v22 }
 0x5c9   :  { %4102 = vmatprep.subr.bf16.mxu1 %v4502_v0 }
 0x5cb   :  { %3563 = vmatmul.mubr.msk.f32.vlgmr.msra.gmra.mrb[4].mxu1 %vm162_vm1, %v3137_v3 }
 0x5cc   :  { %4104 = vmatpush3.bf16.msra.mxu1 %v4611_v12  ;;  %3603 = vmatprep.mubr.msk.f32.mxu1 %vm4503_vm0, %v4504_v6 }
 0x5cd   :  { %4105 = vmatprep.subr.bf16.mxu1 %v4502_v0 }
 0x686   :  { %v511_v5 = vpop.f32.mrb[2].mxu1 }
 0x687   :  { %v3537_v8 = vpop.f32.mrb[3].mxu1 }
 0x69e   :  { %v584_v9 = vpop.f32.mrb[4].mxu1 }
 0x69f   :  { %v585_v10 = vadd.f32 %v584_v9, %v511_v5  ;;  %v3564_v11 = vpop.f32.mrb[5].mxu1 }
 0x6a1   :  { %v588_v14 = vadd.f32 %v4667_v26, %v585_v10 }
 0x6a3   :  { %4386 = vtanh.f32 %v588_v14  ;;  %v3151_v17 = vmul.f32 -1.442695, %v588_v14 }
 0x6a5   :  { %4388 = vpow2.f32 %v3151_v17 }
 0x6ad   :  { %v4387_v15 = vpop.eup %4386 }
 0x6ae   :  { %598 = vrot.lane.b32.xlu0 %v4387_v15, %s4505_s15 }
 0x6af   :  { %v4389_v18 = vpop.eup %4388 }
 0x6b0   :  { %v592_v20 = vadd.f32 1.0, %v4389_v18 }
 0x6b2   :  { %4390 = vrcp.f32 %v592_v20 }
 0x6bc   :  { %v4391_v21 = vpop.eup %4390 }
 0x6bd   :  { %v596_v25 = vmul.f32 %v4391_v21, %v433_v61 }
 0x720   :  { %v599_v23 = vpop.permute.xlu0 %598 }
 0x721   :  { %v601_v24 = vmul.f32 %v4391_v21, %v599_v23 }
 0x723   :  { %603 = vrot.lane.b32.xlu1 %v601_v24, %s4506_s16 }
 0x795   :  { %v604_v27 = vpop.permute.xlu1 %603 }
 0x796   :  { %v606_v28 = vadd.f32 %v604_v27, %v596_v25 }
 0x798   :  { %4392 = vtanh.f32 %v606_v28 }
 0x7a2   :  { %v4393_v29 = vpop.eup %4392 }
 0x7a3   :  { %609 = vrot.lane.b32.xlu0 %v4393_v29, %s4507_s17 }
 0x815   :  { %v610_v30 = vpop.permute.xlu0 %609 }
 0x816   :  { %v612_v31 = vmul.f32 %v4391_v21, %v610_v30  ;;  %v4824_v21 = vld [vmem:[%s5324_s0 + $0x28] sm:$0x3f] }
 0x818   :  { %614 = vrot.lane.b32.xlu1 %v612_v31, %s4508_s18 }
 0x88a   :  { %v4736_v32 = vpop.permute.xlu1 %614 }
 0x88b   :  { %3570 = vmatmul.mubr.msk.f32.vlgmr.msra.gmra.mrb[6].mxu0 %vm88_vm2, %v4736_v32 }
 0x88c   :  { %4086 = vmatpush3.bf16.msra.mxu0 %v4586_v4  ;;  %3596 = vmatprep.mubr.msk.f32.mxu0 %vm4503_vm0, %v4504_v6 }
 0x88d   :  { %4087 = vmatprep.subr.bf16.mxu0 %v4502_v0 }
 0x890   :  { %4089 = vmatpush3.bf16.msra.mxu0 %v4596_v7 }
 0x891   :  { %4090 = vmatprep.subr.bf16.mxu0 %v4502_v0 }
 0x894   :  { %4092 = vmatpush3.bf16.msra.mxu0 %v4615_v13 }
 0x895   :  { %4093 = vmatprep.subr.bf16.mxu0 %v4502_v0 }
 0x898   :  { %4095 = vmatpush3.bf16.msra.mxu0 %v4630_v16 }
 0x899   :  { %4096 = vmatprep.subr.bf16.mxu0 %v4502_v0 }
 0x89c   :  { %4098 = vmatpush3.bf16.msra.mxu0 %v4641_v19 }
 0x89d   :  { %4099 = vmatprep.subr.bf16.mxu0 %v4502_v0 }
 0x8a0   :  { %4101 = vmatpush3.bf16.msra.mxu0 %v4651_v22 }
 0x8a1   :  { %4123 = vmatprep.subr.bf16.mxu0 %v4502_v0 }
 0x8a3   :  { %3597 = vmatmul.mubr.msk.f32.vlgmr.msra.gmra.mrb[8].mxu0 %vm162_vm1, %v4756_v33 }
 0x8a4   :  { %4125 = vmatpush3.bf16.msra.mxu0 %v4611_v12  ;;  %3637 = vmatprep.mubr.msk.f32.mxu0 %vm4503_vm0, %v4504_v6 }
 0x8a5   :  { %4126 = vmatprep.subr.bf16.mxu0 %v4502_v0 }
 0x95e   :  { %v684_v34 = vpop.f32.mrb[6].mxu0 }
 0x95f   :  { %v3571_v35 = vpop.f32.mrb[7].mxu0 }
 0x976   :  { %v757_v36 = vpop.f32.mrb[8].mxu0 }
 0x977   :  { %v758_v37 = vadd.f32 %v757_v36, %v684_v34  ;;  %v3598_v38 = vpop.f32.mrb[9].mxu0 }
 0x979   :  { %v761_v39 = vadd.f32 %v4667_v26, %v758_v37 }
 0x97b   :  { %4394 = vtanh.f32 %v761_v39  ;;  %v3154_v41 = vmul.f32 -1.442695, %v761_v39 }
 0x97d   :  { %4396 = vpow2.f32 %v3154_v41 }
 0x985   :  { %v4395_v40 = vpop.eup %4394 }
 0x986   :  { %771 = vrot.lane.b32.xlu0 %v4395_v40, %s4505_s15 }
 0x987   :  { %v4397_v42 = vpop.eup %4396 }
 0x988   :  { %v765_v43 = vadd.f32 1.0, %v4397_v42 }
 0x98a   :  { %4398 = vrcp.f32 %v765_v43 }
 0x994   :  { %v4399_v45 = vpop.eup %4398 }
 0x995   :  { %v769_v48 = vmul.f32 %v4399_v45, %v606_v28 }
 0x9f8   :  { %v772_v46 = vpop.permute.xlu0 %771 }
 0x9f9   :  { %v774_v47 = vmul.f32 %v4399_v45, %v772_v46  ;;  %v70_v46 = vld [vmem:[%s5326_s6] sm:$0xff] }
 0x9fb   :  { %776 = vrot.lane.b32.xlu1 %v774_v47, %s4506_s16  ;;  %v71_v47 = vld [vmem:[%s5326_s6 + $0x8] sm:$0xff] }
 0xa6d   :  { %v777_v49 = vpop.permute.xlu1 %776 }
 0xa6e   :  { %v779_v50 = vadd.f32 %v777_v49, %v769_v48  ;;  %v4867_v48 = vld [vmem:[%s5324_s0 + $0x30] sm:$0x3f]  ;;  %v4869_v49 = vpack.c.bf16 %v71_v47, %v70_v46 }
 0xa70   :  { %4400 = vtanh.f32 %v779_v50 }
 0xa7a   :  { %v4401_v51 = vpop.eup %4400 }
 0xa7b   :  { %782 = vrot.lane.b32.xlu0 %v4401_v51, %s4507_s17  ;;  %v59_v51 = vld [vmem:[%s5327_s5 + $0x8] sm:$0xff] }
 0xaed   :  { %v783_v52 = vpop.permute.xlu0 %782 }
 0xaee   :  { %v785_v53 = vmul.f32 %v4399_v45, %v783_v52 }
 0xaf0   :  { %787 = vrot.lane.b32.xlu1 %v785_v53, %s4508_s18  ;;  %v60_v53 = vld [vmem:[%s5327_s5 + $0x10] sm:$0xff] }
 0xb62   :  { %v4770_v54 = vpop.permute.xlu1 %787 }
 0xb63   :  { %3604 = vmatmul.mubr.msk.f32.vlgmr.msra.gmra.mrb[6].mxu1 %vm88_vm2, %v4770_v54 }
 0xb64   :  { %4107 = vmatpush3.bf16.msra.mxu1 %v4586_v4  ;;  %3630 = vmatprep.mubr.msk.f32.mxu1 %vm4503_vm0, %v4504_v6 }
 0xb65   :  { %4108 = vmatprep.subr.bf16.mxu1 %v4502_v0 }
 0xb68   :  { %4110 = vmatpush3.bf16.msra.mxu1 %v4596_v7 }
 0xb69   :  { %4111 = vmatprep.subr.bf16.mxu1 %v4502_v0 }
 0xb6c   :  { %4113 = vmatpush3.bf16.msra.mxu1 %v4615_v13 }
 0xb6d   :  { %4114 = vmatprep.subr.bf16.mxu1 %v4502_v0 }
 0xb70   :  { %4116 = vmatpush3.bf16.msra.mxu1 %v4630_v16 }
 0xb71   :  { %4117 = vmatprep.subr.bf16.mxu1 %v4502_v0 }
 0xb74   :  { %4119 = vmatpush3.bf16.msra.mxu1 %v4641_v19 }
 0xb75   :  { %4120 = vmatprep.subr.bf16.mxu1 %v4502_v0 }
 0xb78   :  { %4122 = vmatpush3.bf16.msra.mxu1 %v4651_v22 }
 0xb79   :  { %4144 = vmatprep.subr.bf16.mxu1 %v4502_v0 }
 0xb7b   :  { %3631 = vmatmul.mubr.msk.f32.vlgmr.msra.gmra.mrb[8].mxu1 %vm162_vm1, %v4790_v55 }
 0xb7c   :  { %4146 = vmatpush3.bf16.msra.mxu1 %v4611_v12  ;;  %3671 = vmatprep.mubr.msk.f32.mxu1 %vm4503_vm0, %v4504_v6 }
 0xb7d   :  { %4147 = vmatprep.subr.bf16.mxu1 %v4502_v0 }
 0xc36   :  { %v857_v56 = vpop.f32.mrb[6].mxu1 }
 0xc37   :  { %v3605_v57 = vpop.f32.mrb[7].mxu1 }
 0xc4e   :  { %v930_v58 = vpop.f32.mrb[8].mxu1 }
 0xc4f   :  { %v931_v59 = vadd.f32 %v930_v58, %v857_v56  ;;  %v3632_v60 = vpop.f32.mrb[9].mxu1  ;;  %v61_v56 = vld [vmem:[%s5327_s5 + $0x18] sm:$0xff]  ;;  %v62_v58 = vld [vmem:[%s5327_s5 + $0x20] sm:$0xff] }
 0xc50   :  { %v4894_v57 = vpack.c.bf16 %v61_v56, %v60_v53 }
 0xc51   :  { %v934_v61 = vadd.f32 %v4667_v26, %v931_v59  ;;  %v63_v59 = vld [vmem:[%s5327_s5 + $0x28] sm:$0xff] }
 0xc52   :  { %v4906_v60 = vpack.c.bf16 %v63_v59, %v62_v58 }
 0xc53   :  { %4402 = vtanh.f32 %v934_v61  ;;  %v3157_v63 = vmul.f32 -1.442695, %v934_v61  ;;  %v64_v61 = vld [vmem:[%s5327_s5 + $0x30] sm:$0xff] }
 0xc55   :  { %4404 = vpow2.f32 %v3157_v63 }
 0xc5d   :  { %v4403_v62 = vpop.eup %4402 }
 0xc5e   :  { %944 = vrot.lane.b32.xlu0 %v4403_v62, %s4505_s15  ;;  %v65_v62 = vld [vmem:[%s5327_s5 + $0x38] sm:$0xff] }
 0xc5f   :  { %v4405_v1 = vpop.eup %4404  ;;  %v4916_v63 = vpack.c.bf16 %v65_v62, %v64_v61 }
 0xc60   :  { %v938_v3 = vadd.f32 1.0, %v4405_v1  ;;  %v66_v1 = vld [vmem:[%s5327_s5 + $0x40] sm:$0xff] }
 0xc62   :  { %4406 = vrcp.f32 %v938_v3  ;;  %v67_v3 = vld [vmem:[%s5327_s5 + $0x48] sm:$0xff] }
 0xc6c   :  { %v4407_v5 = vpop.eup %4406 }
 0xc6d   :  { %v942_v10 = vmul.f32 %v4407_v5, %v779_v50  ;;  %v58_v50 = vld [vmem:[%s5327_s5] sm:$0xff] }
 0xc6e   :  { %v4883_v52 = vpack.c.bf16 %v59_v51, %v58_v50 }
 0xcd0   :  { %v945_v8 = vpop.permute.xlu0 %944 }
 0xcd1   :  { %v947_v9 = vmul.f32 %v4407_v5, %v945_v8  ;;  %v68_v8 = vld [vmem:[%s5327_s5 + $0x50] sm:$0xff] }
 0xcd3   :  { %949 = vrot.lane.b32.xlu1 %v947_v9, %s4506_s16  ;;  %v69_v9 = vld [vmem:[%s5327_s5 + $0x58] sm:$0xff] }
 0xd45   :  { %v950_v11 = vpop.permute.xlu1 %949 }
 0xd46   :  { %v952_v14 = vadd.f32 %v950_v11, %v942_v10  ;;  %v4936_v10 = vpack.c.bf16 %v69_v9, %v68_v8  ;;  %v4943_v11 = vld [vmem:[%s5324_s0 + $0x38] sm:$0x3f] }
 0xd48   :  { %4408 = vtanh.f32 %v952_v14 }
 0xd52   :  { %v4409_v15 = vpop.eup %4408 }
 0xd53   :  { %955 = vrot.lane.b32.xlu0 %v4409_v15, %s4507_s17 }
 0xdc5   :  { %v956_v17 = vpop.permute.xlu0 %955 }
 0xdc6   :  { %v958_v18 = vmul.f32 %v4407_v5, %v956_v17  ;;  %v4926_v5 = vpack.c.bf16 %v67_v3, %v66_v1 }
 0xdc8   :  { %960 = vrot.lane.b32.xlu1 %v958_v18, %s4508_s18 }
 0xe3a   :  { %v4804_v20 = vpop.permute.xlu1 %960 }
 0xe3b   :  { %3638 = vmatmul.mubr.msk.f32.vlgmr.msra.gmra.mrb[10].mxu0 %vm88_vm2, %v4804_v20 }
 0xe3c   :  { %4128 = vmatpush3.bf16.msra.mxu0 %v4586_v4  ;;  %3664 = vmatprep.mubr.msk.f32.mxu0 %vm4503_vm0, %v4504_v6 }
 0xe3d   :  { %4129 = vmatprep.subr.bf16.mxu0 %v4502_v0 }
 0xe40   :  { %4131 = vmatpush3.bf16.msra.mxu0 %v4596_v7 }
 0xe41   :  { %4132 = vmatprep.subr.bf16.mxu0 %v4502_v0 }
 0xe44   :  { %4134 = vmatpush3.bf16.msra.mxu0 %v4615_v13 }
 0xe45   :  { %4135 = vmatprep.subr.bf16.mxu0 %v4502_v0 }
 0xe48   :  { %4137 = vmatpush3.bf16.msra.mxu0 %v4630_v16 }
 0xe49   :  { %4138 = vmatprep.subr.bf16.mxu0 %v4502_v0 }
 0xe4c   :  { %4140 = vmatpush3.bf16.msra.mxu0 %v4641_v19 }
 0xe4d   :  { %4141 = vmatprep.subr.bf16.mxu0 %v4502_v0 }
 0xe50   :  { %4143 = vmatpush3.bf16.msra.mxu0 %v4651_v22 }
 0xe51   :  { %4165 = vmatprep.subr.bf16.mxu0 %v4502_v0 }
 0xe53   :  { %3665 = vmatmul.mubr.msk.f32.vlgmr.msra.gmra.mrb[12].mxu0 %vm162_vm1, %v4824_v21 }
 0xe54   :  { %4167 = vmatpush3.bf16.msra.mxu0 %v4611_v12  ;;  %3705 = vmatprep.mubr.msk.f32.mxu0 %vm4503_vm0, %v4504_v6 }
 0xe55   :  { %4168 = vmatprep.subr.bf16.mxu0 %v4502_v0 }
 0xf0e   :  { %v1030_v23 = vpop.f32.mrb[10].mxu0 }
 0xf0f   :  { %v3639_v24 = vpop.f32.mrb[11].mxu0 }
 0xf26   :  { %v1103_v25 = vpop.f32.mrb[12].mxu0 }
 0xf27   :  { %v1104_v27 = vadd.f32 %v1103_v25, %v1030_v23  ;;  %v3666_v28 = vpop.f32.mrb[13].mxu0 }
 0xf29   :  { %v1107_v29 = vadd.f32 %v4667_v26, %v1104_v27 }
 0xf2b   :  { %4410 = vtanh.f32 %v1107_v29  ;;  %v3160_v31 = vmul.f32 -1.442695, %v1107_v29  ;;  %v4957_v29 = vld [vmem:[%s5328_s7] ss:$0 sm:$0xff] }
 0xf2d   :  { %4412 = vpow2.f32 %v3160_v31 }
 0xf35   :  { %v4411_v30 = vpop.eup %4410 }
 0xf36   :  { %1117 = vrot.lane.b32.xlu0 %v4411_v30, %s4505_s15 }
 0xf37   :  { %v4413_v34 = vpop.eup %4412 }
 0xf38   :  { %v1111_v12 = vadd.f32 1.0, %v4413_v34 }
 0xf3a   :  { %4414 = vrcp.f32 %v1111_v12 }
 0xf44   :  { %v4415_v35 = vpop.eup %4414 }
 0xf45   :  { %v1115_v38 = vmul.f32 %v4415_v35, %v952_v14 }
 0xfa8   :  { %v1118_v36 = vpop.permute.xlu0 %1117 }
 0xfa9   :  { %v1120_v37 = vmul.f32 %v4415_v35, %v1118_v36 }
 0xfab   :  { %1122 = vrot.lane.b32.xlu1 %v1120_v37, %s4506_s16 }
0x101d   :  { %v1123_v39 = vpop.permute.xlu1 %1122 }
0x101e   :  { %v4836_v40 = vadd.f32 %v1123_v39, %v1115_v38 }
0x1020   :  { %4416 = vtanh.f32 %v4836_v40 }
0x102a   :  { %v4417_v41 = vpop.eup %4416 }
0x102b   :  { %1128 = vrot.lane.b32.xlu0 %v4417_v41, %s4507_s17 }
0x109d   :  { %v1129_v42 = vpop.permute.xlu0 %1128 }
0x109e   :  { %v1131_v43 = vmul.f32 %v4415_v35, %v1129_v42 }
0x10a0   :  { %1133 = vrot.lane.b32.xlu1 %v1131_v43, %s4508_s18 }
0x1112   :  { %v4841_v45 = vpop.permute.xlu1 %1133 }
0x1113   :  { %3672 = vmatmul.mubr.msk.f32.vlgmr.msra.gmra.mrb[10].mxu1 %vm88_vm2, %v4841_v45 }
0x1114   :  { %4149 = vmatpush3.bf16.msra.mxu1 %v4586_v4  ;;  %3698 = vmatprep.mubr.msk.f32.mxu1 %vm4503_vm0, %v4504_v6 }
0x1115   :  { %4150 = vmatprep.subr.bf16.mxu1 %v4502_v0 }
0x1118   :  { %4152 = vmatpush3.bf16.msra.mxu1 %v4596_v7 }
0x1119   :  { %4153 = vmatprep.subr.bf16.mxu1 %v4502_v0 }
0x111c   :  { %4155 = vmatpush3.bf16.msra.mxu1 %v4615_v13 }
0x111d   :  { %4156 = vmatprep.subr.bf16.mxu1 %v4502_v0 }
0x1120   :  { %4158 = vmatpush3.bf16.msra.mxu1 %v4630_v16 }
0x1121   :  { %4159 = vmatprep.subr.bf16.mxu1 %v4502_v0 }
0x1124   :  { %4161 = vmatpush3.bf16.msra.mxu1 %v4641_v19 }
0x1125   :  { %4162 = vmatprep.subr.bf16.mxu1 %v4502_v0 }
0x1128   :  { %4164 = vmatpush3.bf16.msra.mxu1 %v4651_v22 }
0x1129   :  { %4186 = vmatprep.subr.bf16.mxu1 %v4502_v0 }
0x112b   :  { %3699 = vmatmul.mubr.msk.f32.vlgmr.msra.gmra.mrb[12].mxu1 %vm162_vm1, %v4867_v48 }
0x112c   :  { %4188 = vmatpush3.bf16.msra.mxu1 %v4869_v49  ;;  %3739 = vmatprep.mubr.msk.f32.mxu1 %vm4503_vm0, %v4504_v6 }
0x112d   :  { %4189 = vmatprep.subr.bf16.mxu1 %v4502_v0 }
0x112f   :  { %3740 = vmatmul.mubr.f32.vlgmr.msra.gmra.mrb[14].mxu1 %v4504_v6 }
0x1130   :  { %4191 = vmatpush3.bf16.msra.mxu1 %v4883_v52  ;;  %3766 = vmatprep.mubr.msk.f32.mxu1 %vm4503_vm0, %v4504_v6 }
0x1131   :  { %4192 = vmatprep.subr.bf16.mxu1 %v4502_v0 }
0x1134   :  { %4194 = vmatpush3.bf16.msra.mxu1 %v4894_v57 }
0x1135   :  { %4195 = vmatprep.subr.bf16.mxu1 %v4502_v0 }
0x1138   :  { %4197 = vmatpush3.bf16.msra.mxu1 %v4906_v60 }
0x1139   :  { %4198 = vmatprep.subr.bf16.mxu1 %v4502_v0 }
0x113c   :  { %4200 = vmatpush3.bf16.msra.mxu1 %v4916_v63 }
0x113d   :  { %4201 = vmatprep.subr.bf16.mxu1 %v4502_v0 }
0x1140   :  { %4203 = vmatpush3.bf16.msra.mxu1 %v4926_v5 }
0x1141   :  { %4204 = vmatprep.subr.bf16.mxu1 %v4502_v0 }
0x1144   :  { %4206 = vmatpush3.bf16.msra.mxu1 %v4936_v10 }
0x1145   :  { %4228 = vmatprep.subr.bf16.mxu1 %v4502_v0 }
0x1147   :  { %3767 = vmatmul.mubr.msk.f32.vlgmr.msra.gmra.mrb[16].mxu1 %vm162_vm1, %v4943_v11 }
0x1148   :  { %4230 = vmatpush3.bf16.msra.mxu1 %v4869_v49  ;;  %3807 = vmatprep.mubr.msk.f32.mxu1 %vm4503_vm0, %v4504_v6 }
0x1149   :  { %4231 = vmatprep.subr.bf16.mxu1 %v4502_v0 }
0x11e6   :  { %v1203_v14 = vpop.f32.mrb[10].mxu1 }
0x11e7   :  { %v3673_v15 = vpop.f32.mrb[11].mxu1 }
0x11fe   :  { %v1276_v17 = vpop.f32.mrb[12].mxu1 }
0x11ff   :  { %v1277_v18 = vadd.f32 %v1276_v17, %v1203_v14  ;;  %v3700_v23 = vpop.f32.mrb[13].mxu1 }
0x1201   :  { %v1280_v24 = vadd.f32 %v4667_v26, %v1277_v18 }
0x1202   :  { %v1544_v25 = vpop.f32.mrb[14].mxu1 }
0x1203   :  { %4418 = vtanh.f32 %v1280_v24  ;;  %v3741_v27 = vpop.f32.mrb[15].mxu1  ;;  %v3163_v26 = vmul.f32 -1.442695, %v1280_v24 }
0x120d   :  { %v4419_v28 = vpop.eup %4418 }
0x120e   :  { %1290 = vrot.lane.b32.xlu0 %v4419_v28, %s4505_s15 }
0x121a   :  { %v1614_v30 = vpop.f32.mrb[16].mxu1 }
0x121b   :  { %v1615_v31 = vadd.f32 %v1614_v30, %v1544_v25  ;;  %v3768_v34 = vpop.f32.mrb[17].mxu1 }
0x121d   :  { %v1624_v12 = vadd.f32 %v4957_v29, %v1615_v31 }
0x121f   :  { %4420 = vtanh.f32 %v1624_v12  ;;  %v3169_v38 = vmul.f32 -1.442695, %v1624_v12 }
0x1220   :  { %4422 = vpow2.f32 %v3163_v26 }
0x1229   :  { %v4421_v35 = vpop.eup %4420 }
0x122a   :  { %1634 = vrot.lane.b32.xlu1 %v4421_v35, %s4505_s15  ;;  %v4423_v36 = vpop.eup %4422 }
0x122b   :  { %v1284_v37 = vadd.f32 1.0, %v4423_v36 }
0x122d   :  { %4424 = vrcp.f32 %v1284_v37 }
0x122e   :  { %4426 = vpow2.f32 %v3169_v38 }
0x1237   :  { %v4425_v39 = vpop.eup %4424 }
0x1238   :  { %v4427_v43 = vpop.eup %4426  ;;  %v1288_v53 = vmul.f32 %v4425_v39, %v4836_v40 }
0x1239   :  { %v1628_v46 = vadd.f32 1.0, %v4427_v43 }
0x123b   :  { %4428 = vrcp.f32 %v1628_v46 }
0x1245   :  { %v4429_v47 = vpop.eup %4428 }
0x1246   :  { %v1632_v61 = vmul.f32 0.0, %v4429_v47 }
0x1280   :  { %v1291_v41 = vpop.permute.xlu0 %1290 }
0x1281   :  { %v1293_v42 = vmul.f32 %v4425_v39, %v1291_v41 }
0x1283   :  { %1295 = vrot.lane.b32.xlu0 %v1293_v42, %s4506_s16 }
0x129c   :  { %v1635_v50 = vpop.permute.xlu1 %1634 }
0x129d   :  { %v1637_v51 = vmul.f32 %v4429_v47, %v1635_v50 }
0x129f   :  { %1639 = vrot.lane.b32.xlu1 %v1637_v51, %s4506_s16 }
0x12f5   :  { %v1296_v56 = vpop.permute.xlu0 %1295 }
0x12f6   :  { %v4964_v58 = vadd.f32 %v1296_v56, %v1288_v53 }
0x12f8   :  { %4430 = vtanh.f32 %v4964_v58 }
0x1302   :  { %v4431_v59 = vpop.eup %4430 }
0x1303   :  { %1301 = vrot.lane.b32.xlu0 %v4431_v59, %s4507_s17 }
0x1311   :  { %v1640_v62 = vpop.permute.xlu1 %1639 }
0x1312   :  { %v4968_v1 = vadd.f32 %v1640_v62, %v1632_v61 }
0x1314   :  { %4432 = vtanh.f32 %v4968_v1 }
0x131e   :  { %v4433_v3 = vpop.eup %4432 }
0x131f   :  { %1645 = vrot.lane.b32.xlu1 %v4433_v3, %s4507_s17 }
0x1375   :  { %v1302_v8 = vpop.permute.xlu0 %1301 }
0x1376   :  { %v1304_v9 = vmul.f32 %v4425_v39, %v1302_v8 }
0x1378   :  { %1306 = vrot.lane.b32.xlu0 %v1304_v9, %s4508_s18 }
0x1391   :  { %v1646_v40 = vpop.permute.xlu1 %1645 }
0x1392   :  { %v4973_v14 = vmul.f32 %v4429_v47, %v1646_v40 }
0x1394   :  { %1650 = vrot.lane.b32.xlu1 %v4973_v14, %s4508_s18 }
0x13ea   :  { %v4977_v15 = vpop.permute.xlu0 %1306 }
0x13eb   :  { %3706 = vmatmul.mubr.msk.f32.vlgmr.msra.gmra.mrb[14].mxu0 %vm88_vm2, %v4977_v15 }
0x13ec   :  { %4170 = vmatpush3.bf16.msra.mxu0 %v4586_v4  ;;  %3732 = vmatprep.mubr.msk.f32.mxu0 %vm4503_vm0, %v4504_v6 }
0x13ed   :  { %4171 = vmatprep.subr.bf16.mxu0 %v4502_v0 }
0x13f0   :  { %4173 = vmatpush3.bf16.msra.mxu0 %v4596_v7 }
0x13f1   :  { %4174 = vmatprep.subr.bf16.mxu0 %v4502_v0 }
0x13f4   :  { %4176 = vmatpush3.bf16.msra.mxu0 %v4615_v13 }
0x13f5   :  { %4177 = vmatprep.subr.bf16.mxu0 %v4502_v0 }
0x13f8   :  { %4179 = vmatpush3.bf16.msra.mxu0 %v4630_v16 }
0x13f9   :  { %4180 = vmatprep.subr.bf16.mxu0 %v4502_v0 }
0x13fc   :  { %4182 = vmatpush3.bf16.msra.mxu0 %v4641_v19 }
0x13fd   :  { %4183 = vmatprep.subr.bf16.mxu0 %v4502_v0 }
0x1400   :  { %4185 = vmatpush3.bf16.msra.mxu0 %v4651_v22 }
0x1401   :  { %4207 = vmatprep.subr.bf16.mxu0 %v4502_v0 }
0x1403   :  { %3733 = vmatmul.mubr.msk.f32.vlgmr.msra.gmra.mrb[16].mxu0 %vm162_vm1, %v4943_v11 }
0x1404   :  { %4209 = vmatpush3.bf16.msra.mxu0 %v4869_v49  ;;  %3773 = vmatprep.mubr.msk.f32.mxu0 %vm4503_vm0, %v4504_v6 }
0x1405   :  { %4210 = vmatprep.subr.bf16.mxu0 %v4502_v0 }
0x1406   :  { %v1651_v4 = vpop.permute.xlu1 %1650 }
0x1407   :  { %3774 = vmatmul.mubr.msk.f32.vlgmr.msra.gmra.mrb[18].mxu0 %vm88_vm2, %v1651_v4 }
0x1408   :  { %4212 = vmatpush3.bf16.msra.mxu0 %v4883_v52  ;;  %3800 = vmatprep.mubr.msk.f32.mxu0 %vm4503_vm0, %v4504_v6 }
0x1409   :  { %4213 = vmatprep.subr.bf16.mxu0 %v4502_v0 }
0x140c   :  { %4215 = vmatpush3.bf16.msra.mxu0 %v4894_v57 }
0x140d   :  { %4216 = vmatprep.subr.bf16.mxu0 %v4502_v0 }
0x1410   :  { %4218 = vmatpush3.bf16.msra.mxu0 %v4906_v60 }
0x1411   :  { %4219 = vmatprep.subr.bf16.mxu0 %v4502_v0 }
0x1414   :  { %4221 = vmatpush3.bf16.msra.mxu0 %v4916_v63 }
0x1415   :  { %4222 = vmatprep.subr.bf16.mxu0 %v4502_v0 }
0x1418   :  { %4224 = vmatpush3.bf16.msra.mxu0 %v4926_v5 }
0x1419   :  { %4225 = vmatprep.subr.bf16.mxu0 %v4502_v0 }
0x141c   :  { %4227 = vmatpush3.bf16.msra.mxu0 %v4936_v10 }
0x141d   :  { %4249 = vmatprep.subr.bf16.mxu0 %v4502_v0 }
0x141f   :  { %3801 = vmatmul.mubr.msk.f32.vlgmr.msra.gmra.mrb[20].mxu0 %vm162_vm1, %v4867_v48 }
0x1420   :  { %4251 = vmatpush3.bf16.msra.mxu0 %v4869_v49  ;;  %3841 = vmatprep.mubr.msk.f32.mxu0 %vm4503_vm0, %v4504_v6 }
0x1421   :  { %4252 = vmatprep.subr.bf16.mxu0 %v4502_v0 }
0x14be   :  { %v1376_v7 = vpop.f32.mrb[14].mxu0 }
0x14bf   :  { %v3707_v13 = vpop.f32.mrb[15].mxu0 }
0x14d6   :  { %v1449_v16 = vpop.f32.mrb[16].mxu0 }
0x14d7   :  { %v5022_v19 = vadd.f32 %v1449_v16, %v1376_v7  ;;  %v3734_v22 = vpop.f32.mrb[17].mxu0 }
0x14da   :  { %v1720_v11 = vpop.f32.mrb[18].mxu0 }
0x14db   :  { %v3775_v17 = vpop.f32.mrb[19].mxu0 }
0x14f2   :  { %v1790_v18 = vpop.f32.mrb[20].mxu0 }
0x14f3   :  { %v1791_v23 = vadd.f32 %v1790_v18, %v1720_v11  ;;  %v3802_v24 = vpop.f32.mrb[21].mxu0 }
0x14f5   :  { %v1794_v48 = vadd.f32 %v4957_v29, %v1791_v23 }
0x14f7   :  { %4434 = vtanh.f32 %v1794_v48  ;;  %v3172_v27 = vmul.f32 -1.442695, %v1794_v48 }
0x14f9   :  { %4436 = vpow2.f32 %v3172_v27 }
0x1501   :  { %v4435_v25 = vpop.eup %4434 }
0x1502   :  { %1804 = vrot.lane.b32.xlu0 %v4435_v25, %s4505_s15 }
0x1503   :  { %v4437_v28 = vpop.eup %4436 }
0x1504   :  { %v1798_v30 = vadd.f32 1.0, %v4437_v28 }
0x1506   :  { %4438 = vrcp.f32 %v1798_v30 }
0x1510   :  { %v4439_v31 = vpop.eup %4438 }
0x1511   :  { %v1802_v35 = vmul.f32 %v4439_v31, %v4968_v1 }
0x1574   :  { %v1805_v34 = vpop.permute.xlu0 %1804 }
0x1575   :  { %v1807_v12 = vmul.f32 %v4439_v31, %v1805_v34 }
0x1577   :  { %1809 = vrot.lane.b32.xlu1 %v1807_v12, %s4506_s16 }
0x15e9   :  { %v1810_v26 = vpop.permute.xlu1 %1809 }
0x15ea   :  { %v1812_v36 = vadd.f32 %v1810_v26, %v1802_v35 }
0x15ec   :  { %4440 = vtanh.f32 %v1812_v36 }
0x15f6   :  { %v4441_v37 = vpop.eup %4440 }
0x15f7   :  { %1815 = vrot.lane.b32.xlu0 %v4441_v37, %s4507_s17 }
0x1669   :  { %v1816_v38 = vpop.permute.xlu0 %1815 }
0x166a   :  { %v5029_v39 = vmul.f32 %v4439_v31, %v1816_v38 }
0x166c   :  { %1820 = vrot.lane.b32.xlu1 %v5029_v39, %s4508_s18 }
0x16de   :  { %v1821_v41 = vpop.permute.xlu1 %1820 }
0x16df   :  { %3808 = vmatmul.mubr.msk.f32.vlgmr.msra.gmra.mrb[18].mxu1 %vm88_vm2, %v1821_v41 }
0x16e0   :  { %4233 = vmatpush3.bf16.msra.mxu1 %v4883_v52  ;;  %3834 = vmatprep.mubr.msk.f32.mxu1 %vm4503_vm0, %v4504_v6 }
0x16e1   :  { %4234 = vmatprep.subr.bf16.mxu1 %v4502_v0 }
0x16e4   :  { %4236 = vmatpush3.bf16.msra.mxu1 %v4894_v57 }
0x16e5   :  { %4237 = vmatprep.subr.bf16.mxu1 %v4502_v0 }
0x16e8   :  { %4239 = vmatpush3.bf16.msra.mxu1 %v4906_v60 }
0x16e9   :  { %4240 = vmatprep.subr.bf16.mxu1 %v4502_v0 }
0x16ec   :  { %4242 = vmatpush3.bf16.msra.mxu1 %v4916_v63 }
0x16ed   :  { %4243 = vmatprep.subr.bf16.mxu1 %v4502_v0 }
0x16f0   :  { %4245 = vmatpush3.bf16.msra.mxu1 %v4926_v5 }
0x16f1   :  { %4246 = vmatprep.subr.bf16.mxu1 %v4502_v0 }
0x16f4   :  { %4248 = vmatpush3.bf16.msra.mxu1 %v4936_v10 }
0x16f5   :  { %4270 = vmatprep.subr.bf16.mxu1 %v4502_v0 }
0x16f7   :  { %3835 = vmatmul.mubr.msk.f32.vlgmr.msra.gmra.mrb[20].mxu1 %vm162_vm1, %v4824_v21 }
0x16f8   :  { %4272 = vmatpush3.bf16.msra.mxu1 %v4869_v49  ;;  %3875 = vmatprep.mubr.msk.f32.mxu1 %vm4503_vm0, %v4504_v6 }
0x16f9   :  { %4273 = vmatprep.subr.bf16.mxu1 %v4502_v0 }
0x17b2   :  { %v1890_v42 = vpop.f32.mrb[18].mxu1 }
0x17b3   :  { %v3809_v43 = vpop.f32.mrb[19].mxu1 }
0x17ca   :  { %v1960_v46 = vpop.f32.mrb[20].mxu1 }
0x17cb   :  { %v1961_v47 = vadd.f32 %v1960_v46, %v1890_v42  ;;  %v3836_v50 = vpop.f32.mrb[21].mxu1 }
0x17cd   :  { %v1964_v51 = vadd.f32 %v4957_v29, %v1961_v47 }
0x17cf   :  { %4442 = vtanh.f32 %v1964_v51  ;;  %v3175_v56 = vmul.f32 -1.442695, %v1964_v51 }
0x17d1   :  { %4444 = vpow2.f32 %v3175_v56 }
0x17d9   :  { %v4443_v53 = vpop.eup %4442 }
0x17da   :  { %1974 = vrot.lane.b32.xlu0 %v4443_v53, %s4505_s15 }
0x17db   :  { %v4445_v21 = vpop.eup %4444 }
0x17dc   :  { %v1968_v59 = vadd.f32 1.0, %v4445_v21 }
0x17de   :  { %4446 = vrcp.f32 %v1968_v59 }
0x17e8   :  { %v4447_v61 = vpop.eup %4446 }
0x17e9   :  { %v1972_v3 = vmul.f32 %v4447_v61, %v1812_v36 }
0x184c   :  { %v1975_v62 = vpop.permute.xlu0 %1974 }
0x184d   :  { %v1977_v1 = vmul.f32 %v4447_v61, %v1975_v62 }
0x184f   :  { %1979 = vrot.lane.b32.xlu1 %v1977_v1, %s4506_s16 }
0x18c1   :  { %v1980_v8 = vpop.permute.xlu1 %1979 }
0x18c2   :  { %v1982_v9 = vadd.f32 %v1980_v8, %v1972_v3 }
0x18c4   :  { %4448 = vtanh.f32 %v1982_v9 }
0x18ce   :  { %v4449_v40 = vpop.eup %4448 }
0x18cf   :  { %1985 = vrot.lane.b32.xlu0 %v4449_v40, %s4507_s17 }
0x1941   :  { %v1986_v4 = vpop.permute.xlu0 %1985 }
0x1942   :  { %v5058_v7 = vmul.f32 %v4447_v61, %v1986_v4  ;;  %v4498_v4 = vld [vmem:[%s5324_s0 + $0x10] sm:$0x3f] }
0x1944   :  { %1990 = vrot.lane.b32.xlu1 %v5058_v7, %s4508_s18 }
0x19b6   :  { %v1991_v13 = vpop.permute.xlu1 %1990 }
0x19b7   :  { %3842 = vmatmul.mubr.msk.f32.vlgmr.msra.gmra.mrb[22].mxu0 %vm88_vm2, %v1991_v13 }
0x19b8   :  { %4254 = vmatpush3.bf16.msra.mxu0 %v4883_v52  ;;  %3868 = vmatprep.mubr.msk.f32.mxu0 %vm4503_vm0, %v4504_v6 }
0x19b9   :  { %4255 = vmatprep.subr.bf16.mxu0 %v4502_v0 }
0x19bc   :  { %4257 = vmatpush3.bf16.msra.mxu0 %v4894_v57 }
0x19bd   :  { %4258 = vmatprep.subr.bf16.mxu0 %v4502_v0 }
0x19c0   :  { %4260 = vmatpush3.bf16.msra.mxu0 %v4906_v60 }
0x19c1   :  { %4261 = vmatprep.subr.bf16.mxu0 %v4502_v0 }
0x19c4   :  { %4263 = vmatpush3.bf16.msra.mxu0 %v4916_v63 }
0x19c5   :  { %4264 = vmatprep.subr.bf16.mxu0 %v4502_v0 }
0x19c8   :  { %4266 = vmatpush3.bf16.msra.mxu0 %v4926_v5 }
0x19c9   :  { %4267 = vmatprep.subr.bf16.mxu0 %v4502_v0 }
0x19cc   :  { %4269 = vmatpush3.bf16.msra.mxu0 %v4936_v10 }
0x19cd   :  { %4291 = vmatprep.subr.bf16.mxu0 %v4502_v0 }
0x19cf   :  { %3869 = vmatmul.mubr.msk.f32.vlgmr.msra.gmra.mrb[24].mxu0 %vm162_vm1, %v4790_v55 }
0x19d0   :  { %4293 = vmatpush3.bf16.msra.mxu0 %v4869_v49  ;;  %3909 = vmatprep.mubr.msk.f32.mxu0 %vm4503_vm0, %v4504_v6 }
0x19d1   :  { %4294 = vmatprep.subr.bf16.mxu0 %v4502_v0 }
0x1a8a   :  { %v2060_v16 = vpop.f32.mrb[22].mxu0 }
0x1a8b   :  { %v3843_v22 = vpop.f32.mrb[23].mxu0 }
0x1aa2   :  { %v2130_v11 = vpop.f32.mrb[24].mxu0 }
0x1aa3   :  { %v2131_v17 = vadd.f32 %v2130_v11, %v2060_v16  ;;  %v3870_v18 = vpop.f32.mrb[25].mxu0 }
0x1aa5   :  { %v2134_v23 = vadd.f32 %v4957_v29, %v2131_v17 }
0x1aa7   :  { %4450 = vtanh.f32 %v2134_v23  ;;  %v3178_v48 = vmul.f32 -1.442695, %v2134_v23 }
0x1aa9   :  { %4452 = vpow2.f32 %v3178_v48 }
0x1ab1   :  { %v4451_v24 = vpop.eup %4450 }
0x1ab2   :  { %2144 = vrot.lane.b32.xlu0 %v4451_v24, %s4505_s15 }
0x1ab3   :  { %v4453_v55 = vpop.eup %4452 }
0x1ab4   :  { %v2138_v25 = vadd.f32 1.0, %v4453_v55 }
0x1ab6   :  { %4454 = vrcp.f32 %v2138_v25 }
0x1ac0   :  { %v4455_v27 = vpop.eup %4454 }
0x1ac1   :  { %v2142_v31 = vmul.f32 %v4455_v27, %v1982_v9 }
0x1b24   :  { %v2145_v28 = vpop.permute.xlu0 %2144 }
0x1b25   :  { %v2147_v30 = vmul.f32 %v4455_v27, %v2145_v28 }
0x1b27   :  { %2149 = vrot.lane.b32.xlu1 %v2147_v30, %s4506_s16 }
0x1b99   :  { %v2150_v34 = vpop.permute.xlu1 %2149 }
0x1b9a   :  { %v2152_v12 = vadd.f32 %v2150_v34, %v2142_v31 }
0x1b9c   :  { %4456 = vtanh.f32 %v2152_v12 }
0x1ba6   :  { %v4457_v35 = vpop.eup %4456 }
0x1ba7   :  { %2155 = vrot.lane.b32.xlu0 %v4457_v35, %s4507_s17 }
0x1c19   :  { %v2156_v26 = vpop.permute.xlu0 %2155 }
0x1c1a   :  { %v5087_v36 = vmul.f32 %v4455_v27, %v2156_v26 }
0x1c1c   :  { %2160 = vrot.lane.b32.xlu1 %v5087_v36, %s4508_s18 }
0x1c8e   :  { %v2161_v37 = vpop.permute.xlu1 %2160 }
0x1c8f   :  { %3876 = vmatmul.mubr.msk.f32.vlgmr.msra.gmra.mrb[22].mxu1 %vm88_vm2, %v2161_v37  ;;  %v4499_v37 = vld [vmem:[%s5324_s0 + $0x8] sm:$0x3f] }
0x1c90   :  { %4275 = vmatpush3.bf16.msra.mxu1 %v4883_v52  ;;  %3902 = vmatprep.mubr.msk.f32.mxu1 %vm4503_vm0, %v4504_v6 }
0x1c91   :  { %4276 = vmatprep.subr.bf16.mxu1 %v4502_v0 }
0x1c94   :  { %4278 = vmatpush3.bf16.msra.mxu1 %v4894_v57 }
0x1c95   :  { %4279 = vmatprep.subr.bf16.mxu1 %v4502_v0 }
0x1c98   :  { %4281 = vmatpush3.bf16.msra.mxu1 %v4906_v60 }
0x1c99   :  { %4282 = vmatprep.subr.bf16.mxu1 %v4502_v0 }
0x1c9c   :  { %4284 = vmatpush3.bf16.msra.mxu1 %v4916_v63 }
0x1c9d   :  { %4285 = vmatprep.subr.bf16.mxu1 %v4502_v0 }
0x1ca0   :  { %4287 = vmatpush3.bf16.msra.mxu1 %v4926_v5 }
0x1ca1   :  { %4288 = vmatprep.subr.bf16.mxu1 %v4502_v0 }
0x1ca4   :  { %4290 = vmatpush3.bf16.msra.mxu1 %v4936_v10 }
0x1ca5   :  { %4312 = vmatprep.subr.bf16.mxu1 %v4502_v0 }
0x1ca7   :  { %3903 = vmatmul.mubr.msk.f32.vlgmr.msra.gmra.mrb[24].mxu1 %vm162_vm1, %v4756_v33 }
0x1ca8   :  { %4314 = vmatpush3.bf16.msra.mxu1 %v4869_v49  ;;  %3943 = vmatprep.mubr.msk.f32.mxu1 %vm4503_vm0, %v4504_v6 }
0x1ca9   :  { %4315 = vmatprep.subr.bf16.mxu1 %v4502_v0 }
0x1d62   :  { %v2230_v38 = vpop.f32.mrb[22].mxu1 }
0x1d63   :  { %v3877_v41 = vpop.f32.mrb[23].mxu1 }
0x1d7a   :  { %v2300_v42 = vpop.f32.mrb[24].mxu1 }
0x1d7b   :  { %v2301_v43 = vadd.f32 %v2300_v42, %v2230_v38  ;;  %v3904_v46 = vpop.f32.mrb[25].mxu1 }
0x1d7d   :  { %v2304_v47 = vadd.f32 %v4957_v29, %v2301_v43 }
0x1d7f   :  { %4458 = vtanh.f32 %v2304_v47  ;;  %v3181_v51 = vmul.f32 -1.442695, %v2304_v47 }
0x1d81   :  { %4460 = vpow2.f32 %v3181_v51 }
0x1d89   :  { %v4459_v50 = vpop.eup %4458 }
0x1d8a   :  { %2314 = vrot.lane.b32.xlu0 %v4459_v50, %s4505_s15 }
0x1d8b   :  { %v4461_v33 = vpop.eup %4460 }
0x1d8c   :  { %v2308_v53 = vadd.f32 1.0, %v4461_v33 }
0x1d8e   :  { %4462 = vrcp.f32 %v2308_v53 }
0x1d98   :  { %v4463_v56 = vpop.eup %4462 }
0x1d99   :  { %v2312_v61 = vmul.f32 %v4463_v56, %v2152_v12 }
0x1dfc   :  { %v2315_v21 = vpop.permute.xlu0 %2314 }
0x1dfd   :  { %v2317_v59 = vmul.f32 %v4463_v56, %v2315_v21 }
0x1dff   :  { %2319 = vrot.lane.b32.xlu1 %v2317_v59, %s4506_s16 }
0x1e71   :  { %v2320_v62 = vpop.permute.xlu1 %2319 }
0x1e72   :  { %v2322_v1 = vadd.f32 %v2320_v62, %v2312_v61 }
0x1e74   :  { %4464 = vtanh.f32 %v2322_v1 }
0x1e7e   :  { %v4465_v3 = vpop.eup %4464 }
0x1e7f   :  { %2325 = vrot.lane.b32.xlu0 %v4465_v3, %s4507_s17 }
0x1ef1   :  { %v2326_v8 = vpop.permute.xlu0 %2325 }
0x1ef2   :  { %v5116_v9 = vmul.f32 %v4463_v56, %v2326_v8  ;;  %v4500_v8 = vld [vmem:[%s5325_s4] ss:$0 sm:$0xff] }
0x1ef4   :  { %2330 = vrot.lane.b32.xlu1 %v5116_v9, %s4508_s18 }
0x1f66   :  { %v2331_v40 = vpop.permute.xlu1 %2330 }
0x1f67   :  { %3910 = vmatmul.mubr.msk.f32.vlgmr.msra.gmra.mrb[26].mxu0 %vm88_vm2, %v2331_v40  ;;  %v1453_v40 = vadd.f32 %v4500_v8, %v5022_v19 }
0x1f68   :  { %4296 = vmatpush3.bf16.msra.mxu0 %v4883_v52  ;;  %3936 = vmatprep.mubr.msk.f32.mxu0 %vm4503_vm0, %v4504_v6 }
0x1f69   :  { %4297 = vmatprep.subr.bf16.mxu0 %v4502_v0 }
0x1f6c   :  { %4299 = vmatpush3.bf16.msra.mxu0 %v4894_v57 }
0x1f6d   :  { %4300 = vmatprep.subr.bf16.mxu0 %v4502_v0 }
0x1f70   :  { %4302 = vmatpush3.bf16.msra.mxu0 %v4906_v60 }
0x1f71   :  { %4303 = vmatprep.subr.bf16.mxu0 %v4502_v0 }
0x1f74   :  { %4305 = vmatpush3.bf16.msra.mxu0 %v4916_v63 }
0x1f75   :  { %4306 = vmatprep.subr.bf16.mxu0 %v4502_v0 }
0x1f78   :  { %4308 = vmatpush3.bf16.msra.mxu0 %v4926_v5 }
0x1f79   :  { %4309 = vmatprep.subr.bf16.mxu0 %v4502_v0 }
0x1f7c   :  { %4311 = vmatpush3.bf16.msra.mxu0 %v4936_v10 }
0x1f7d   :  { %4333 = vmatprep.subr.bf16.mxu0 %v4502_v0 }
0x1f7f   :  { %3937 = vmatmul.mubr.msk.f32.vlgmr.msra.gmra.mrb[28].mxu0 %vm162_vm1, %v4498_v4 }
0x1f80   :  { %4335 = vmatpush3.bf16.msra.mxu0 %v4869_v49  ;;  %3977 = vmatprep.mubr.msk.f32.mxu0 %vm4503_vm0, %v4504_v6 }
0x1f81   :  { %4336 = vmatprep.subr.bf16.mxu0 %v4502_v0 }
0x203a   :  { %v2400_v13 = vpop.f32.mrb[26].mxu0 }
0x203b   :  { %v3911_v16 = vpop.f32.mrb[27].mxu0 }
0x2052   :  { %v2470_v22 = vpop.f32.mrb[28].mxu0 }
0x2053   :  { %v2471_v11 = vadd.f32 %v2470_v22, %v2400_v13  ;;  %v3938_v17 = vpop.f32.mrb[29].mxu0  ;;  %v3166_v22 = vmul.f32 -1.442695, %v1453_v40 }
0x2055   :  { %v2474_v18 = vadd.f32 %v4957_v29, %v2471_v11 }
0x2057   :  { %4466 = vtanh.f32 %v2474_v18  ;;  %v3184_v24 = vmul.f32 -1.442695, %v2474_v18 }
0x2059   :  { %4468 = vpow2.f32 %v3184_v24 }
0x2061   :  { %v4467_v23 = vpop.eup %4466 }
0x2062   :  { %2484 = vrot.lane.b32.xlu0 %v4467_v23, %s4505_s15 }
0x2063   :  { %v4469_v48 = vpop.eup %4468 }
0x2064   :  { %v2478_v49 = vadd.f32 1.0, %v4469_v48  ;;  %v4509_v48 = vmov 0  }
0x2065   :  { %4369 = vset.pattern.permute.xlu1 %v4509_v48  ;;  %4368 = vset.pattern.permute.xlu0 %v4509_v48 }
0x2066   :  { %4470 = vrcp.f32 %v2478_v49 }
0x2070   :  { %v4471_v55 = vpop.eup %4470 }
0x2071   :  { %v2482_v28 = vmul.f32 %v4471_v55, %v2322_v1 }
0x20d4   :  { %v2485_v25 = vpop.permute.xlu0 %2484 }
0x20d5   :  { %v2487_v27 = vmul.f32 %v4471_v55, %v2485_v25  ;;  %v3196_v25 = vld [vmem:[%s5329_s1 + $0x30] sm:$0x3f] }
0x20d6   :  { %vm2973_vm6 = vcmp.gt.f32.partialorder %v3196_v25, 0.0 }
0x20d7   :  { %2489 = vrot.lane.b32.xlu1 %v2487_v27, %s4506_s16 }
0x2149   :  { %v2490_v30 = vpop.permute.xlu1 %2489 }
0x214a   :  { %v2492_v31 = vadd.f32 %v2490_v30, %v2482_v28  ;;  %v2974_v28 = vsel %vm2973_vm6, 1, %v4509_v48  ;;  %vm3013_vm6 = vcmask 1041408  }
0x214c   :  { %4472 = vtanh.f32 %v2492_v31 }
0x2156   :  { %v4473_v34 = vpop.eup %4472 }
0x2157   :  { %2495 = vrot.lane.b32.xlu0 %v4473_v34, %s4507_s17 }
0x21c9   :  { %v2496_v12 = vpop.permute.xlu0 %2495 }
0x21ca   :  { %v5147_v35 = vmul.f32 %v4471_v55, %v2496_v12 }
0x21cc   :  { %2500 = vrot.lane.b32.xlu1 %v5147_v35, %s4508_s18 }
0x223e   :  { %v2501_v26 = vpop.permute.xlu1 %2500 }
0x223f   :  { %3944 = vmatmul.mubr.msk.f32.vlgmr.msra.gmra.mrb[26].mxu1 %vm88_vm2, %v2501_v26 }
0x2240   :  { %4317 = vmatpush3.bf16.msra.mxu1 %v4883_v52  ;;  %3970 = vmatprep.mubr.msk.f32.mxu1 %vm4503_vm0, %v4504_v6 }
0x2241   :  { %4318 = vmatprep.subr.bf16.mxu1 %v4502_v0 }
0x2244   :  { %4320 = vmatpush3.bf16.msra.mxu1 %v4894_v57 }
0x2245   :  { %4321 = vmatprep.subr.bf16.mxu1 %v4502_v0 }
0x2248   :  { %4323 = vmatpush3.bf16.msra.mxu1 %v4906_v60 }
0x2249   :  { %4324 = vmatprep.subr.bf16.mxu1 %v4502_v0 }
0x224c   :  { %4326 = vmatpush3.bf16.msra.mxu1 %v4916_v63 }
0x224d   :  { %4327 = vmatprep.subr.bf16.mxu1 %v4502_v0 }
0x2250   :  { %4329 = vmatpush3.bf16.msra.mxu1 %v4926_v5 }
0x2251   :  { %4330 = vmatprep.subr.bf16.mxu1 %v4502_v0 }
0x2254   :  { %4332 = vmatpush3.bf16.msra.mxu1 %v4936_v10 }
0x2255   :  { %4354 = vmatprep.subr.bf16.mxu1 %v4502_v0 }
0x2257   :  { %3971 = vmatmul.mubr.msk.f32.vlgmr.msra.gmra.mrb[28].mxu1 %vm162_vm1, %v4499_v37 }
0x2258   :  { %4015 = vmatprep.mubr.msk.f32.mxu1 %vm4503_vm0, %v4504_v6 }
0x2312   :  { %v2570_v38 = vpop.f32.mrb[26].mxu1 }
0x2313   :  { %v3945_v41 = vpop.f32.mrb[27].mxu1 }
0x232a   :  { %v2640_v42 = vpop.f32.mrb[28].mxu1 }
0x232b   :  { %v2641_v43 = vadd.f32 %v2640_v42, %v2570_v38  ;;  %v3972_v46 = vpop.f32.mrb[29].mxu1 }
0x232d   :  { %v2644_v47 = vadd.f32 %v4957_v29, %v2641_v43 }
0x232f   :  { %4474 = vtanh.f32 %v2644_v47  ;;  %v3187_v51 = vmul.f32 -1.442695, %v2644_v47 }
0x2331   :  { %4476 = vpow2.f32 %v3187_v51 }
0x2339   :  { %v4475_v50 = vpop.eup %4474 }
0x233a   :  { %2654 = vrot.lane.b32.xlu0 %v4475_v50, %s4505_s15 }
0x233b   :  { %v4477_v33 = vpop.eup %4476 }
0x233c   :  { %v2648_v53 = vadd.f32 1.0, %v4477_v33 }
0x233e   :  { %4478 = vrcp.f32 %v2648_v53  ;;  %v3193_v53 = vld [vmem:[%s5329_s1 + $0x18] sm:$0x3f] }
0x233f   :  { %vm2910_vm8 = vcmp.gt.f32.partialorder %v3193_v53, 0.0 }
0x2348   :  { %v4479_v56 = vpop.eup %4478 }
0x2349   :  { %v2652_v61 = vmul.f32 %v4479_v56, %v2492_v31 }
0x23ac   :  { %v2655_v21 = vpop.permute.xlu0 %2654 }
0x23ad   :  { %v2657_v59 = vmul.f32 %v4479_v56, %v2655_v21  ;;  %v3195_v21 = vld [vmem:[%s5329_s1 + $0x28] sm:$0x3f] }
0x23ae   :  { %vm2952_vm9 = vcmp.gt.f32.partialorder %v3195_v21, 0.0 }
0x23af   :  { %2659 = vrot.lane.b32.xlu1 %v2657_v59, %s4506_s16  ;;  %v2911_v59 = vsel %vm2910_vm8, 1, %v4509_v48  ;;  %vm3019_vm8 = vcmask 1044480  }
0x2421   :  { %v2660_v62 = vpop.permute.xlu1 %2659 }
0x2422   :  { %v5175_v1 = vadd.f32 %v2660_v62, %v2652_v61  ;;  %v3197_v61 = vld [vmem:[%s5329_s1 + $0x38] sm:$0x3f]  ;;  %v2953_v62 = vsel %vm2952_vm9, 1, %v4509_v48  ;;  %vm3021_vm9 = vcmask 1045504  }
0x2423   :  { %vm2997_vm10 = vcmp.gt.f32.partialorder %v3197_v61, 0.0 }
0x2424   :  { %4480 = vtanh.f32 %v5175_v1 }
0x2425   :  { %4482 = vtanh.f32 %v1453_v40 }
0x2426   :  { %4484 = vpow2.f32 %v3166_v22  ;;  %v3028_v22 = vld [vmem:[%s5330_s8 + $0x18] sm:$0xff] }
0x242e   :  { %v4481_v3 = vpop.eup %4480 }
0x242f   :  { %2665 = vrot.lane.b32.xlu0 %v4481_v3, %s4507_s17  ;;  %v4483_v16 = vpop.eup %4482 }
0x2430   :  { %v4485_v11 = vpop.eup %4484 }
0x2431   :  { %v1457_v17 = vadd.f32 1.0, %v4485_v11 }
0x2433   :  { %4486 = vrcp.f32 %v1457_v17 }
0x243d   :  { %v5193_v19 = vpop.eup %4486 }
0x24a1   :  { %v2666_v4 = vpop.permute.xlu0 %2665 }
0x24a2   :  { %v5183_v13 = vmul.f32 %v4479_v56, %v2666_v4 }
0x24a4   :  { %2670 = vrot.lane.b32.xlu1 %v5183_v13, %s4508_s18 }
0x24a8   :  { %1463 = vrot.lane.b32.xlu1 %v4483_v16, %s4505_s15  ;;  %v3025_v16 = vld [vmem:[%s5330_s8] sm:$0xff] }
0x2516   :  { %v2671_v18 = vpop.permute.xlu1 %2670 }
0x2517   :  { %3978 = vmatmul.mubr.msk.f32.vlgmr.msra.gmra.mrb[30].mxu0 %vm88_vm2, %v2671_v18 }
0x2518   :  { %4338 = vmatpush3.bf16.msra.mxu0 %v4883_v52  ;;  %4004 = vmatprep.mubr.msk.f32.mxu0 %vm4503_vm0, %v4504_v6  ;;  %v4501_v6 = vld [vmem:[%s5324_s0] sm:$0x3f]  ;;  %v1461_v52 = vmul.f32 %v5193_v19, %v4964_v58 }
0x2519   :  { %4339 = vmatprep.subr.bf16.mxu0 %v4502_v0  ;;  %v3194_v58 = vld [vmem:[%s5329_s1 + $0x20] sm:$0x3f] }
0x251a   :  { %v1464_v23 = vpop.permute.xlu1 %1463  ;;  %vm2931_vm5 = vcmp.gt.f32.partialorder %v3194_v58, 0.0 }
0x251b   :  { %v1466_v24 = vmul.f32 %v5193_v19, %v1464_v23  ;;  %v2932_v27 = vsel %vm2931_vm5, 1, %v4509_v48  ;;  %vm3011_vm5 = vcmask 1040384  }
0x251c   :  { %4341 = vmatpush3.bf16.msra.mxu0 %v4894_v57 }
0x251d   :  { %1468 = vrot.lane.b32.xlu1 %v1466_v24, %s4506_s16  ;;  %4342 = vmatprep.subr.bf16.mxu0 %v4502_v0 }
0x2520   :  { %4344 = vmatpush3.bf16.msra.mxu0 %v4906_v60 }
0x2521   :  { %4345 = vmatprep.subr.bf16.mxu0 %v4502_v0 }
0x2524   :  { %4347 = vmatpush3.bf16.msra.mxu0 %v4916_v63  ;;  %v3191_v63 = vld [vmem:[%s5329_s1 + $0x8] sm:$0x3f] }
0x2525   :  { %4348 = vmatprep.subr.bf16.mxu0 %v4502_v0  ;;  %vm2868_vm3 = vcmp.gt.f32.partialorder %v3191_v63, 0.0 }
0x2526   :  { %v2869_v49 = vsel %vm2868_vm3, 1, %v4509_v48 }
0x2528   :  { %4350 = vmatpush3.bf16.msra.mxu0 %v4926_v5 }
0x2529   :  { %4351 = vmatprep.subr.bf16.mxu0 %v4502_v0 }
0x252c   :  { %4353 = vmatpush3.bf16.msra.mxu0 %v4936_v10  ;;  %v3192_v10 = vld [vmem:[%s5329_s1 + $0x10] sm:$0x3f] }
0x252d   :  { %vm2889_vm4 = vcmp.gt.f32.partialorder %v3192_v10, 0.0 }
0x252e   :  { %v2890_v55 = vsel %vm2889_vm4, 1, %v4509_v48 }
0x252f   :  { %4005 = vmatmul.mubr.msk.f32.vlgmr.msra.gmra.mrb[32].mxu0 %vm162_vm1, %v4501_v6 }
0x258f   :  { %v1469_v57 = vpop.permute.xlu1 %1468 }
0x2590   :  { %v1471_v60 = vadd.f32 %v1469_v57, %v1461_v52 }
0x2592   :  { %4488 = vtanh.f32 %v1471_v60 }
0x259c   :  { %v4489_v5 = vpop.eup %4488 }
0x259d   :  { %1474 = vrot.lane.b32.xlu1 %v4489_v5, %s4507_s17 }
0x25a1   :  { %2871 = vperm.xlu1 %4369, %v2869_v49  }
0x25a5   :  { %2892 = vperm.xlu1 %4369, %v2890_v55  }
0x25a9   :  { %2934 = vperm.xlu1 %4369, %v2932_v27  }
0x25ad   :  { %2976 = vperm.xlu1 %4369, %v2974_v28  }
0x25b1   :  { %2883 = vrot.lane.b32.xlu1 %v5147_v35, %s4505_s15 }
0x25b5   :  { %2925 = vrot.lane.b32.xlu1 %v5087_v36, %s4505_s15 }
0x25ea   :  { %v2740_v30 = vpop.f32.mrb[30].mxu0 }
0x25eb   :  { %v3979_v31 = vpop.f32.mrb[31].mxu0 }
0x2602   :  { %v2810_v34 = vpop.f32.mrb[32].mxu0 }
0x2603   :  { %v2811_v12 = vadd.f32 %v2810_v34, %v2740_v30  ;;  %v4006_v26 = vpop.f32.mrb[33].mxu0 }
0x2605   :  { %v2814_v37 = vadd.f32 %v4957_v29, %v2811_v12  ;;  %v2845_v29 = vld [vmem:[%s5329_s1] sm:$0x3f] }
0x2606   :  { %vm2846_vm7 = vcmp.gt.f32.partialorder %v2845_v29, 0.0 }
0x2607   :  { %4490 = vtanh.f32 %v2814_v37  ;;  %v3190_v41 = vmul.f32 -1.442695, %v2814_v37  ;;  %v2847_v56 = vsel %vm2846_vm7, 1, %v4509_v48  ;;  %vm3017_vm7 = vcmask 1043456  }
0x2609   :  { %4492 = vpow2.f32 %v3190_v41 }
0x260f   :  { %v1475_v3 = vpop.permute.xlu1 %1474 }
0x2610   :  { %v1477_v8 = vmul.f32 %v5193_v19, %v1475_v3 }
0x2611   :  { %v4491_v38 = vpop.eup %4490 }
0x2612   :  { %2824 = vrot.lane.b32.xlu0 %v4491_v38, %s4505_s15 }
0x2613   :  { %v4493_v42 = vpop.eup %4492 }
0x2614   :  { %v2818_v43 = vadd.f32 1.0, %v4493_v42 }
0x2616   :  { %4494 = vrcp.f32 %v2818_v43 }
0x2620   :  { %v4495_v35 = vpop.eup %4494  ;;  %v2872_v18 = vpop.permute.xlu1 %2871 }
0x2621   :  { %v2822_v36 = vmul.f32 %v4495_v35, %v5175_v1  ;;  %v2998_v1 = vsel %vm2997_vm10, 1, %v4509_v48  ;;  %vm2873_vm11 = vcmp.eq.s32.totalorder %v2872_v18, 1  ;;  %vm3023_vm10 = vcmask 1046528  }
0x2684   :  { %v2825_v46 = vpop.permute.xlu0 %2824 }
0x2685   :  { %v2827_v47 = vmul.f32 %v4495_v35, %v2825_v46 }
0x2687   :  { %2829 = vrot.lane.b32.xlu0 %v2827_v47, %s4506_s16 }
0x26f9   :  { %v2830_v50 = vpop.permute.xlu0 %2829 }
0x26fa   :  { %v2832_v51 = vadd.f32 %v2830_v50, %v2822_v36 }
0x26fc   :  { %4496 = vtanh.f32 %v2832_v51 }
0x2706   :  { %v4497_v33 = vpop.eup %4496 }
0x2707   :  { %2835 = vrot.lane.b32.xlu0 %v4497_v33, %s4507_s17 }
0x270b   :  { %2849 = vperm.xlu0 %4368, %v2847_v56  }
0x270f   :  { %2913 = vperm.xlu0 %4368, %v2911_v59  }
0x2713   :  { %2955 = vperm.xlu0 %4368, %v2953_v62  }
0x2717   :  { %3000 = vperm.xlu0 %4368, %v2998_v1  }
0x271b   :  { %2862 = vrot.lane.b32.xlu0 %v5183_v13, %s4505_s15 }
0x271f   :  { %2904 = vrot.lane.b32.xlu0 %v5116_v9, %s4505_s15  ;;  %v3026_v9 = vld [vmem:[%s5330_s8 + $0x8] sm:$0xff] }
0x2720   :  { %v4355_v13 = vpack.c.bf16 %v3026_v9, %v3025_v16 }
0x2722   :  { %4356 = vmatpush3.bf16.msra.mxu1 %v4355_v13 }
0x2723   :  { %2946 = vrot.lane.b32.xlu0 %v5058_v7, %s4505_s15  ;;  %4357 = vmatprep.subr.bf16.mxu1 %v4502_v0  ;;  %v3027_v7 = vld [vmem:[%s5330_s8 + $0x10] sm:$0xff] }
0x2724   :  { %v4358_v11 = vpack.c.bf16 %v3028_v22, %v3027_v7 }
0x2726   :  { %4359 = vmatpush3.bf16.msra.mxu1 %v4358_v11 }
0x2727   :  { %2988 = vrot.lane.b32.xlu0 %v1477_v8, %s4508_s18 }
0x2779   :  { %v2836_v40 = vpop.permute.xlu0 %2835 }
0x277a   :  { %v2838_v4 = vmul.f32 %v4495_v35, %v2836_v40 }
0x277c   :  { %2841 = vrot.lane.b32.xlu1 %v2838_v4, %s4505_s15 }
0x2780   :  { %2967 = vrot.lane.b32.xlu1 %v5029_v39, %s4505_s15  ;;  %v2893_v39 = vpop.permute.xlu1 %2892 }
0x2781   :  { %vm2894_vm12 = vcmp.eq.s32.totalorder %v2893_v39, 1 }
0x2784   :  { %2991 = vrot.lane.b32.xlu1 %v4973_v14, %s4505_s15  ;;  %v2935_v24 = vpop.permute.xlu1 %2934 }
0x2785   :  { %vm2936_vm14 = vcmp.eq.s32.totalorder %v2935_v24, 1 }
0x2788   :  { %v2977_v48 = vpop.permute.xlu1 %2976 }
0x2789   :  { %vm2978_vm3 = vcmp.eq.s32.totalorder %v2977_v48, 1 }
0x278a   :  { %v2850_v17 = vpop.permute.xlu0 %2849 }
0x278b   :  { %vm2851_vm1 = vcmp.eq.s32.totalorder %v2850_v17, 1 }
0x278c   :  { %v2884_v52 = vpop.permute.xlu1 %2883 }
0x278d   :  { %v2886_v14 = vsel %vm88_vm2, %v4736_v32, %v2884_v52 }
0x278e   :  { %v2914_v19 = vpop.permute.xlu0 %2913  ;;  %v2895_v55 = vsel %vm2894_vm12, %v2886_v14, -10000000.0  ;;  %vm3130_vm12 = vcmask 7168  }
0x278f   :  { %vm2915_vm13 = vcmp.eq.s32.totalorder %v2914_v19, 1  ;;  %v2896_v28 = vsel %vm2853_vm15, %v2895_v55, -inf }
0x2790   :  { %v2926_v63 = vpop.permute.xlu1 %2925  ;;  %v2897_v12 = vrot.slane %v2896_v28, 4 }
0x2791   :  { %v2928_v58 = vsel %vm88_vm2, %v4804_v20, %v2926_v63 }
0x2792   :  { %v2956_v23 = vpop.permute.xlu0 %2955  ;;  %v2937_v32 = vsel %vm2936_vm14, %v2928_v58, -10000000.0 }
0x2793   :  { %vm2957_vm0 = vcmp.eq.s32.totalorder %v2956_v23, 1  ;;  %v2938_v34 = vsel %vm2853_vm15, %v2937_v32, -inf }
0x2794   :  { %v2939_v37 = vrot.slane %v2938_v34, 4 }
0x2796   :  { %v5282_v0 = vpop.permute.xlu0 %3000  ;;  %v2940_v35 = vmax.f32 %v2938_v34, %v2939_v37 }
0x2797   :  { %vm3002_vm4 = vcmp.eq.s32.totalorder %v5282_v0, 1 }
0x2798   :  { %v2941_v21 = vrot.slane %v2940_v35, 2 }
0x279a   :  { %v2863_v6 = vpop.permute.xlu0 %2862  ;;  %v2942_v7 = vmax.f32 %v2940_v35, %v2941_v21  ;;  %v3200_v35 = vld [vmem:[%s5333_s10] ss:$0 sm:$0xff] }
0x279b   :  { %v2865_v60 = vsel %vm88_vm2, %v4705_v2, %v2863_v6 }
0x279c   :  { %v2874_v10 = vsel %vm2873_vm11, %v2865_v60, -10000000.0  ;;  %vm3036_vm11 = vcmask 261120  }
0x279d   :  { %v2875_v25 = vsel %vm2853_vm15, %v2874_v10, -inf }
0x279e   :  { %v2905_v57 = vpop.permute.xlu0 %2904  ;;  %v2876_v31 = vrot.slane %v2875_v25, 4 }
0x279f   :  { %v2907_v49 = vsel %vm88_vm2, %v4770_v54, %v2905_v57  ;;  %v2943_v57 = vrot.slane %v2942_v7, 1 }
0x27a0   :  { %v2916_v27 = vsel %vm2915_vm13, %v2907_v49, -10000000.0  ;;  %v2877_v38 = vmax.f32 %v2875_v25, %v2876_v31 }
0x27a1   :  { %v2917_v54 = vsel %vm2853_vm15, %v2916_v27, -inf  ;;  %v2944_v25 = vmax.f32 %v2942_v7, %v2943_v57 }
0x27a2   :  { %v2947_v5 = vpop.permute.xlu0 %2946  ;;  %v2918_v26 = vrot.slane %v2917_v54, 4  ;;  %v2878_v46 = vrot.slane %v2877_v38, 2 }
0x27a3   :  { %v2949_v2 = vsel %vm88_vm2, %v4841_v45, %v2947_v5  ;;  %v2898_v45 = vmax.f32 %v2896_v28, %v2897_v12 }
0x27a4   :  { %v2958_v30 = vsel %vm2957_vm0, %v2949_v2, -10000000.0  ;;  %v2919_v42 = vmax.f32 %v2917_v54, %v2918_v26  ;;  %v2879_v59 = vmax.f32 %v2877_v38, %v2878_v46  ;;  %v17_v38 = vstv %s5331_s11 }
0x27a5   :  { %v2959_v20 = vsel %vm2853_vm15, %v2958_v30, -inf  ;;  %v2899_v51 = vrot.slane %v2898_v45, 2  ;;  %18 = vst [vmem:[#allocation2] sm:$0x1] %v17_v38 }
0x27a6   :  { %v2960_v41 = vrot.slane %v2959_v20, 4  ;;  %v2920_v33 = vrot.slane %v2919_v42, 2  ;;  %v2989_v4 = vpop.permute.xlu0 %2988  ;;  %v2880_v22 = vrot.slane %v2879_v59, 1 }
0x27a7   :  { %v2900_v8 = vmax.f32 %v2898_v45, %v2899_v51 }
0x27a8   :  { %v2961_v36 = vmax.f32 %v2959_v20, %v2960_v41  ;;  %v2921_v40 = vmax.f32 %v2919_v42, %v2920_v33  ;;  %v2881_v60 = vmax.f32 %v2879_v59, %v2880_v22  ;;  %v3198_v41 = vld [vmem:[%s5332_s9] ss:$0 sm:$0xff] }
0x27a9   :  { %v2901_v39 = vrot.slane %v2900_v8, 1 }
0x27aa   :  { %v2962_v62 = vrot.slane %v2961_v36, 2  ;;  %v2922_v24 = vrot.slane %v2921_v40, 1 }
0x27ab   :  { %v2902_v10 = vmax.f32 %v2900_v8, %v2901_v39 }
0x27ac   :  { %v2963_v17 = vmax.f32 %v2961_v36, %v2962_v62  ;;  %v2923_v49 = vmax.f32 %v2921_v40, %v2922_v24 }
0x27ae   :  { %v2964_v63 = vrot.slane %v2963_v17, 1 }
0x27b0   :  { %v2965_v32 = vmax.f32 %v2963_v17, %v2964_v63 }
0x27ee   :  { %v2842_v43 = vpop.permute.xlu1 %2841 }
0x27ef   :  { %v2844_v47 = vsel %vm88_vm2, %v4674_v44, %v2842_v43 }
0x27f0   :  { %v2852_v50 = vsel %vm2851_vm1, %v2844_v47, -10000000.0 }
0x27f1   :  { %v2854_v29 = vsel %vm2853_vm15, %v2852_v50, -inf  ;;  %v3201_v50 = vld [vmem:[#allocation2] ss:$0 sm:$0xff] }
0x27f2   :  { %v2855_v53 = vrot.slane %v2854_v29, 4  ;;  %v2968_v56 = vpop.permute.xlu1 %2967 }
0x27f3   :  { %v2970_v61 = vsel %vm88_vm2, %v4977_v15, %v2968_v56 }
0x27f4   :  { %v2856_v1 = vmax.f32 %v2854_v29, %v2855_v53  ;;  %v2979_v3 = vsel %vm2978_vm3, %v2970_v61, -10000000.0 }
0x27f5   :  { %v2980_v44 = vsel %vm2853_vm15, %v2979_v3, -inf }
0x27f6   :  { %v2857_v16 = vrot.slane %v2856_v1, 2  ;;  %v2981_v9 = vrot.slane %v2980_v44, 4  ;;  %v2992_v13 = vpop.permute.xlu1 %2991 }
0x27f7   :  { %v2994_v11 = vsel %vm88_vm2, %v2989_v4, %v2992_v13  ;;  %vm3015_vm2 = vcmask 1042432  }
0x27f8   :  { %v2858_v18 = vmax.f32 %v2856_v1, %v2857_v16  ;;  %v2982_v15 = vmax.f32 %v2980_v44, %v2981_v9  ;;  %v3003_v19 = vsel %vm3002_vm4, %v2994_v11, -10000000.0 }
0x27f9   :  { %v3004_v23 = vsel %vm2853_vm15, %v3003_v19, -inf }
0x27fa   :  { %v2859_v48 = vrot.slane %v2858_v18, 1  ;;  %v2983_v6 = vrot.slane %v2982_v15, 2  ;;  %v3005_v52 = vrot.slane %v3004_v23, 4 }
0x27fc   :  { %v2860_v0 = vmax.f32 %v2858_v18, %v2859_v48  ;;  %v2984_v14 = vmax.f32 %v2982_v15, %v2983_v6  ;;  %v3006_v5 = vmax.f32 %v3004_v23, %v3005_v52 }
0x27fe   :  { %v3012_v58 = vsel %vm3011_vm5, %v2860_v0, %v2881_v60  ;;  %v2985_v55 = vrot.slane %v2984_v14, 1  ;;  %v3007_v2 = vrot.slane %v3006_v5, 2 }
0x27ff   :  { %v3014_v27 = vsel %vm3013_vm6, %v3012_v58, %v2902_v10 }
0x2800   :  { %v3008_v28 = vmax.f32 %v3006_v5, %v3007_v2  ;;  %v3016_v30 = vsel %vm3015_vm2, %v3014_v27, %v2923_v49  ;;  %v2986_v31 = vmax.f32 %v2984_v14, %v2985_v55 }
0x2801   :  { %v3018_v54 = vsel %vm3017_vm7, %v3016_v30, %v2944_v25 }
0x2802   :  { %v3009_v34 = vrot.slane %v3008_v28, 1  ;;  %v3020_v12 = vsel %vm3019_vm8, %v3018_v54, %v2965_v32 }
0x2803   :  { %v3022_v26 = vsel %vm3021_vm9, %v3020_v12, %v2986_v31 }
0x2804   :  { %v3010_v20 = vmax.f32 %v3008_v28, %v3009_v34 }
0x2806   :  { %v3024_v37 = vsel %vm3023_vm10, %v3022_v26, %v3010_v20 }
0x2807   :  { %4016 = vmatmul.mubr.msk.f32.vlgmr.msra.gmra.mrb[30].mxu1 %vm3036_vm11, %v3024_v37 }
0x28da   :  { %v3106_v45 = vpop.f32.mrb[30].mxu1 }
0x28db   :  { %v3107_v42 = vadd.f32 %v3198_v41, %v3106_v45  ;;  %v4017_v43 = vpop.f32.mrb[31].mxu1 }
0x28dd   :  { %v3110_v46 = vmax.f32 %v3107_v42, 0.0 }
0x28df   :  { %v3118_v47 = vmul.f32 %v3200_v35, %v3110_v46 }
0x28e1   :  { %v3119_v36 = vsel %vm3036_vm11, %v3118_v47, 0.0 }
0x28e2   :  { %3120 = vadd.xlane.f32.xlu0 %v3119_v36 }
0x296f   :  { %v3121_v51 = vpop.xlane.xlu0 %3120 }
0x2970   :  { %v3129_v29 = vadd.f32 %v3201_v50, %v3121_v51 }
0x2972   :  { %3131 = vst.msk [vmem:[%s5334_s12] sm:$0xff] %vm3130_vm12, %v3129_v29 }

</bundles_post_ra>
